<compile_context>
chip_gen: v7x
topology: tpu7x:2x2x1
jax: 0.10.0
libtpu: 0.0.40
codegen_flags: <defaults>
</compile_context>

<pallas_src>
import functools

import jax
import jax.numpy as jnp
from jax.experimental import pallas as pl
from jax.experimental.pallas import tpu as pltpu

LRELU_SLOPE = 0.1
VMEM_LIMIT = 48 * 1024 * 1024  # explicit scoped-VMEM limit (safe on v5e/v6e/v7x)


def _round_up(x, m):
    return ((x + m - 1) // m) * m


# ----------------------------------------------------------------------------
# Pallas kernels
# ----------------------------------------------------------------------------
def _conv_gemm_kernel(a_ref, w_ref, b_ref, o_ref):
    """One M-tile of (im2col patches @ conv weight) + bias + LeakyReLU(0.1)."""
    acc = jnp.dot(a_ref[...], w_ref[...], preferred_element_type=jnp.float32)
    acc = acc + b_ref[...]
    o_ref[...] = jnp.where(acc >= 0.0, acc, LRELU_SLOPE * acc).astype(o_ref.dtype)


def _conv_pool_kernel(a_ref, w_ref, b_ref, o_ref, *, s_valid, tile_s):
    """conv7 GEMM + bias + LeakyReLU fused with AdaptiveAvgPool((1,1)).

    Grid = (N, spatial_tiles).  The pooled (1, Cout) running mean is
    accumulated directly in the (revisited, VMEM-resident) output block across
    the spatial grid axis; rows past the true spatial extent are masked out.
    """
    s_idx = pl.program_id(1)

    @pl.when(s_idx == 0)
    def _():
        o_ref[...] = jnp.zeros_like(o_ref)

    acc = jnp.dot(a_ref[0], w_ref[...], preferred_element_type=jnp.float32)
    acc = acc + b_ref[...]
    acc = jnp.where(acc >= 0.0, acc, LRELU_SLOPE * acc)        # (tile_s, Cout)

    row = jax.lax.broadcasted_iota(jnp.int32, acc.shape, 0) + s_idx * tile_s
    acc = jnp.where(row < s_valid, acc, 0.0)                   # drop padded rows
    part = jnp.sum(acc, axis=0, keepdims=True) * (1.0 / s_valid)  # (1, Cout)
    o_ref[...] = o_ref[...] + part[:, None, :]                 # broadcast rows


def _head_kernel(f_ref, w1, b1, w2, b2, w3, b3, wo, bo, dirs_ref, ints_ref):
    """3x(Linear,ReLU) + output Linear + light-direction/intensity post-process."""
    h = f_ref[...]                                              # (N, 256) f32
    for w_r, b_r in ((w1, b1), (w2, b2), (w3, b3)):
        h = jnp.dot(h, w_r[...], preferred_element_type=jnp.float32) + b_r[...]
        h = jnp.maximum(h, 0.0)                                 # ReLU

    o = jnp.dot(h, wo[...], preferred_element_type=jnp.float32) + bo[...]  # (N, 4)

    # columns: 0,1 -> xy ; 2 -> -|z| - 0.1 ; 3 -> |intensity|
    col = jax.lax.broadcasted_iota(jnp.int32, o.shape, 1)
    ld = jnp.where(col == 2, -jnp.abs(o) - 0.1, o)
    sq = jnp.where(col < 3, ld * ld, 0.0)
    norm = jnp.sqrt(jnp.sum(sq, axis=-1, keepdims=True))
    # F.normalize(p=2, eps=1e-12); column 3 is junk and is sliced off outside.
    dirs_ref[...] = ld / jnp.maximum(norm, 1e-12)
    ints_ref[...] = jnp.sum(jnp.where(col == 3, jnp.abs(o), 0.0),
                            axis=-1, keepdims=True)


# ----------------------------------------------------------------------------
# Wrappers
# ----------------------------------------------------------------------------
def _im2col(x, k, stride, pad):
    """(N,H,W,C) -> (N*Ho*Wo, k*k*C) patches, ordered (kh, kw, cin)."""
    N, H, W, C = x.shape
    xp = jnp.pad(x, ((0, 0), (pad, pad), (pad, pad), (0, 0)))
    Ho = (H + 2 * pad - k) // stride + 1
    Wo = (W + 2 * pad - k) // stride + 1
    cols = []
    for ki in range(k):
        for kj in range(k):
            sl = jax.lax.slice(
                xp,
                (0, ki, kj, 0),
                (N, ki + (Ho - 1) * stride + 1, kj + (Wo - 1) * stride + 1, C),
                (1, stride, stride, 1))
            cols.append(sl)
    patches = jnp.concatenate(cols, axis=-1)                 # (N, Ho, Wo, k*k*C)
    return patches.reshape(N * Ho * Wo, k * k * C), Ho, Wo


def _pick_tile_m(M):
    """Biggest MXU-friendly M tile that fits comfortably (bigger tile = better
    pipeline efficiency); sublane-aligned fallback for tiny layers."""
    for t in (512, 256, 128):
        if M >= t:
            return t
    return _round_up(M, 8)


def conv_lrelu(x, wmat, b, stride, k=3):
    """3x3 conv (pad=1) + bias + LeakyReLU(0.1).

    x:    (N,H,W,Cin) bf16
    wmat: (Kp, Cout) bf16 GEMM weight (Kp = k*k*Cin padded to mult of 128)
    b:    (1, Cout)  f32
    """
    N, H, W, Cin = x.shape
    Kp, Cout = wmat.shape
    a, Ho, Wo = _im2col(x, k, stride, (k - 1) // 2)          # (M, K) bf16
    M, K = a.shape
    if K != Kp:                                              # match padded weight K
        a = jnp.pad(a, ((0, 0), (0, Kp - K)))

    tile_m = _pick_tile_m(M)
    Mp = _round_up(M, tile_m)
    if Mp != M:
        a = jnp.pad(a, ((0, Mp - M), (0, 0)))

    out = pl.pallas_call(
        _conv_gemm_kernel,
        out_shape=jax.ShapeDtypeStruct((Mp, Cout), jnp.bfloat16),
        grid=(Mp // tile_m,),
        in_specs=[
            pl.BlockSpec((tile_m, Kp), lambda i: (i, 0)),
            pl.BlockSpec((Kp, Cout), lambda i: (0, 0)),
            pl.BlockSpec((1, Cout), lambda i: (0, 0)),
        ],
        out_specs=pl.BlockSpec((tile_m, Cout), lambda i: (i, 0)),
        compiler_params=pltpu.CompilerParams(
            dimension_semantics=("parallel",),
            vmem_limit_bytes=VMEM_LIMIT),
    )(a, wmat, b)
    if Mp != M:
        out = out[:M]
    return out.reshape(N, Ho, Wo, Cout)


def conv7_pool(x, wmat, b, k=3):
    """conv7 (3x3, stride 1, pad 1) + bias + LeakyReLU fused with global avg-pool."""
    N, H, W, Cin = x.shape
    Kp, Cout = wmat.shape
    a, Ho, Wo = _im2col(x, k, 1, (k - 1) // 2)               # (N*S, K) bf16
    K = a.shape[1]
    S = Ho * Wo
    a = a.reshape(N, S, K)
    if K != Kp:
        a = jnp.pad(a, ((0, 0), (0, 0), (0, Kp - K)))

    Sp = _round_up(S, 8)
    tile_s = Sp if Sp <= 512 else 256
    Sp = _round_up(S, tile_s)
    if Sp != S:
        a = jnp.pad(a, ((0, 0), (0, Sp - S), (0, 0)))

    kernel = functools.partial(_conv_pool_kernel, s_valid=S, tile_s=tile_s)

    pooled = pl.pallas_call(
        kernel,
        out_shape=jax.ShapeDtypeStruct((N, 8, Cout), jnp.float32),
        grid=(N, Sp // tile_s),
        in_specs=[
            pl.BlockSpec((1, tile_s, Kp), lambda n, s: (n, s, 0)),
            pl.BlockSpec((Kp, Cout), lambda n, s: (0, 0)),
            pl.BlockSpec((1, Cout), lambda n, s: (0, 0)),
        ],
        out_specs=pl.BlockSpec((1, 8, Cout), lambda n, s: (n, 0, 0)),
        compiler_params=pltpu.CompilerParams(
            dimension_semantics=("parallel", "arbitrary"),
            vmem_limit_bytes=VMEM_LIMIT),
    )(a, wmat, b)
    return pooled[:, 0, :]                                   # (N, Cout) f32


def head(pooled, hp):
    N, C = pooled.shape
    hidden = hp["w1"].shape[1]

    dirs4, ints = pl.pallas_call(
        _head_kernel,
        out_shape=(jax.ShapeDtypeStruct((N, 4), jnp.float32),
                   jax.ShapeDtypeStruct((N, 1), jnp.float32)),
        grid=(1,),
        in_specs=[
            pl.BlockSpec((N, C), lambda i: (0, 0)),
            pl.BlockSpec((C, hidden), lambda i: (0, 0)),
            pl.BlockSpec((1, hidden), lambda i: (0, 0)),
            pl.BlockSpec((hidden, hidden), lambda i: (0, 0)),
            pl.BlockSpec((1, hidden), lambda i: (0, 0)),
            pl.BlockSpec((hidden, hidden), lambda i: (0, 0)),
            pl.BlockSpec((1, hidden), lambda i: (0, 0)),
            pl.BlockSpec((hidden, 4), lambda i: (0, 0)),
            pl.BlockSpec((1, 4), lambda i: (0, 0)),
        ],
        out_specs=(pl.BlockSpec((N, 4), lambda i: (0, 0)),
                   pl.BlockSpec((N, 1), lambda i: (0, 0))),
        compiler_params=pltpu.CompilerParams(vmem_limit_bytes=VMEM_LIMIT),
    )(pooled,
      hp["w1"], hp["b1"], hp["w2"], hp["b2"], hp["w3"], hp["b3"],
      hp["wo"], hp["bo"])
    return dirs4[:, :3], ints


# ----------------------------------------------------------------------------
# Parameters (deterministic in-script init; PyTorch-style uniform(+-1/sqrt(fan_in)))
# ----------------------------------------------------------------------------
def _uniform(key, shape, fan_in):
    bound = 1.0 / jnp.sqrt(jnp.float32(fan_in))
    return jax.random.uniform(key, shape, jnp.float32, -bound, bound)


def init_params(key, hidden=64, out_ch=4):
    conv_channels = [(4, 64), (64, 128), (128, 128), (128, 128),
                     (128, 128), (128, 256), (256, 256)]
    params = {}
    keys = iter(jax.random.split(key, 2 * len(conv_channels) + 8))
    for idx, (cin, cout) in enumerate(conv_channels, start=1):
        fan_in = cin * 9
        params[f"conv{idx}_w"] = _uniform(next(keys), (3, 3, cin, cout), fan_in)
        params[f"conv{idx}_b"] = _uniform(next(keys), (cout,), fan_in)
    # dir_linears: Linear(256,hidden) + 2x Linear(hidden,hidden); output Linear(hidden,4)
    params["w1"] = _uniform(next(keys), (256, hidden), 256)
    params["b1"] = _uniform(next(keys), (hidden,), 256)
    params["w2"] = _uniform(next(keys), (hidden, hidden), hidden)
    params["b2"] = _uniform(next(keys), (hidden,), hidden)
    params["w3"] = _uniform(next(keys), (hidden, hidden), hidden)
    params["b3"] = _uniform(next(keys), (hidden,), hidden)
    params["wo"] = _uniform(next(keys), (hidden, out_ch), hidden)
    params["bo"] = _uniform(next(keys), (out_ch,), hidden)
    return params


def _lane_pad_first_layers(params):
    """Zero-pad conv1's Cout (64->128) and conv2's Cin to match.

    Makes conv1's output stores full 128-lane (no masked vst); the extra
    channels are exactly zero (zero weight + zero bias -> LReLU(0)=0) and
    conv2's padded weight rows are zero, so the math is unchanged.
    """
    w1, b1, w2 = params["conv1_w"], params["conv1_b"], params["conv2_w"]
    c1 = w1.shape[-1]
    c1p = _round_up(c1, 128)
    if c1p != c1:
        w1 = jnp.pad(w1, ((0, 0), (0, 0), (0, 0), (0, c1p - c1)))
        b1 = jnp.pad(b1, (0, c1p - c1))
        w2 = jnp.pad(w2, ((0, 0), (0, 0), (0, c1p - c1), (0, 0)))
    return w1, b1, w2


def _prep_conv(w_hwio, b, stride):
    """HWIO conv weight -> (Kp, Cout) bf16 GEMM matrix (K padded to 128), f32 bias row."""
    k, _, cin, cout = w_hwio.shape
    K = k * k * cin
    Kp = _round_up(K, 128)
    wmat = w_hwio.reshape(K, cout)
    if Kp != K:
        wmat = jnp.pad(wmat, ((0, Kp - K), (0, 0)))
    return {"w": wmat.astype(jnp.bfloat16),
            "b": b.reshape(1, cout).astype(jnp.float32),
            "stride": stride}


def prepare_params(params):
    """One-time weight prep (outside the per-call hot path): lane padding,
    GEMM flattening, K padding, dtype casts."""
    w1p, b1p, w2p = _lane_pad_first_layers(params)
    convs = [
        _prep_conv(w1p, b1p, 2),
        _prep_conv(w2p, params["conv2_b"], 2),
        _prep_conv(params["conv3_w"], params["conv3_b"], 1),
        _prep_conv(params["conv4_w"], params["conv4_b"], 2),
        _prep_conv(params["conv5_w"], params["conv5_b"], 1),
        _prep_conv(params["conv6_w"], params["conv6_b"], 2),
    ]
    conv7 = _prep_conv(params["conv7_w"], params["conv7_b"], 1)
    head_p = {
        "w1": params["w1"].astype(jnp.float32), "b1": params["b1"].reshape(1, -1).astype(jnp.float32),
        "w2": params["w2"].astype(jnp.float32), "b2": params["b2"].reshape(1, -1).astype(jnp.float32),
        "w3": params["w3"].astype(jnp.float32), "b3": params["b3"].reshape(1, -1).astype(jnp.float32),
        "wo": params["wo"].astype(jnp.float32), "bo": params["bo"].reshape(1, -1).astype(jnp.float32),
    }
    return {"convs": convs, "conv7": conv7, "head": head_p}


# ----------------------------------------------------------------------------
# Forward pass (matches Light_Model_CNN.forward; batchNorm=False branch)
# ----------------------------------------------------------------------------
def forward(prepared, x_nchw):
    x = jnp.transpose(x_nchw, (0, 2, 3, 1)).astype(jnp.bfloat16)   # NCHW -> NHWC
    for layer in prepared["convs"]:                                # conv1..conv6
        x = conv_lrelu(x, layer["w"], layer["b"], stride=layer["stride"])
    pooled = conv7_pool(x, prepared["conv7"]["w"], prepared["conv7"]["b"])
    dirs, ints = head(pooled, prepared["head"])
    return {"dirs": dirs, "ints": ints}


if __name__ == "__main__":
    key = jax.random.PRNGKey(0)
    x = jax.random.normal(key, (2, 4, 16, 16), jnp.float32)        # NCHW like PyTorch
    params = init_params(jax.random.PRNGKey(1), hidden=64, out_ch=4)
    prepared = prepare_params(params)                              # one-time weight prep

    fwd = jax.jit(functools.partial(forward, prepared))
    out = fwd(x)
    jax.block_until_ready(out)

    assert out["dirs"].shape == (2, 3) and out["ints"].shape == (2, 1)
    # unit-norm sanity check on the light directions
    nrm = jnp.linalg.norm(out["dirs"], axis=-1)
    assert bool(jnp.all(jnp.abs(nrm - 1.0) < 1e-2))
    # TODO(synk): set_images / get_all_lights are host-side data iteration helpers,
    # not part of the forward hot path; they are intentionally not ported.
    print("KERNEL_OK")
</pallas_src>

<mosaic_0001>
module attributes {stable_mosaic.version = 11 : i64} {
  func.func @_conv_gemm_kernel(%arg0: i32, %arg1: memref<128x128xbf16, #tpu.memory_space<vmem>>, %arg2: memref<128x128xbf16, #tpu.memory_space<vmem>>, %arg3: memref<1x128xf32, #tpu.memory_space<vmem>>, %arg4: memref<128x128xbf16, #tpu.memory_space<vmem>>) attributes {dimension_semantics = [#tpu.dimension_semantics<parallel>], iteration_bounds = array<i64: 1>, scalar_prefetch = 0 : i64, scratch_operands = 0 : i64, tpu.core_type = #tpu.core_type<tc>, window_params = [{transform_indices = @transform_0, window_bounds = array<i64: 128, 128>}, {pipeline_mode = #tpu.pipeline_mode<synchronous>, transform_indices = @transform_1, window_bounds = array<i64: 128, 128>}, {pipeline_mode = #tpu.pipeline_mode<synchronous>, transform_indices = @transform_2, window_bounds = array<i64: 1, 128>}, {transform_indices = @transform_3, window_bounds = array<i64: 128, 128>}]} {
    %c0 = arith.constant 0 : index
    %c0_0 = arith.constant 0 : index
    %0 = vector.load %arg1[%c0, %c0_0] : memref<128x128xbf16, #tpu.memory_space<vmem>>, vector<128x128xbf16>
    %c0_1 = arith.constant 0 : index
    %c0_2 = arith.constant 0 : index
    %1 = vector.load %arg2[%c0_1, %c0_2] : memref<128x128xbf16, #tpu.memory_space<vmem>>, vector<128x128xbf16>
    %cst = arith.constant dense<0.000000e+00> : vector<128x128xf32>
    %2 = tpu.matmul %0, %1, %cst {dimension_numbers = #tpu.dot_dimension_numbers<[1], [0], [0], [1], [0, 0, 1, 1], [], []>} : vector<128x128xbf16>, vector<128x128xbf16>, vector<128x128xf32> -> vector<128x128xf32>
    %c0_3 = arith.constant 0 : index
    %c0_4 = arith.constant 0 : index
    %3 = vector.load %arg3[%c0_3, %c0_4] : memref<1x128xf32, #tpu.memory_space<vmem>>, vector<1x128xf32>
    %4 = vector.broadcast %3 : vector<1x128xf32> to vector<128x128xf32>
    %5 = arith.addf %2, %4 : vector<128x128xf32>
    %cst_5 = arith.constant 0.000000e+00 : f32
    %6 = vector.broadcast %cst_5 : f32 to vector<128x128xf32>
    %7 = arith.cmpf oge, %5, %6 : vector<128x128xf32>
    %cst_6 = arith.constant 1.000000e-01 : f32
    %8 = vector.broadcast %cst_6 : f32 to vector<128x128xf32>
    %9 = arith.mulf %8, %5 : vector<128x128xf32>
    %10 = arith.select %7, %5, %9 : vector<128x128xi1>, vector<128x128xf32>
    %11 = arith.truncf %10 : vector<128x128xf32> to vector<128x128xbf16>
    %c0_7 = arith.constant 0 : index
    %c0_8 = arith.constant 0 : index
    %12 = vector.load %arg4[%c0_7, %c0_8] : memref<128x128xbf16, #tpu.memory_space<vmem>>, vector<128x128xbf16>
    tpu.vector_store %arg4[%c0_7, %c0_8], %11 {strides = array<i32>} : memref<128x128xbf16, #tpu.memory_space<vmem>>, vector<128x128xbf16>,
    return
  }
  func.func @transform_0(%arg0: i32) -> (i32, i32) {
    %c0_i32 = arith.constant 0 : i32
    %c0_i32_0 = arith.constant 0 : i32
    return %arg0, %c0_i32 : i32, i32
  }
  func.func @transform_1(%arg0: i32) -> (i32, i32) {
    %c0_i32 = arith.constant 0 : i32
    %c0_i32_0 = arith.constant 0 : i32
    %c0_i32_1 = arith.constant 0 : i32
    return %c0_i32, %c0_i32_0 : i32, i32
  }
  func.func @transform_2(%arg0: i32) -> (i32, i32) {
    %c0_i32 = arith.constant 0 : i32
    %c0_i32_0 = arith.constant 0 : i32
    %c0_i32_1 = arith.constant 0 : i32
    return %c0_i32, %c0_i32_0 : i32, i32
  }
  func.func @transform_3(%arg0: i32) -> (i32, i32) {
    %c0_i32 = arith.constant 0 : i32
    %c0_i32_0 = arith.constant 0 : i32
    return %arg0, %c0_i32 : i32, i32
  }
}

module attributes {stable_mosaic.version = 11 : i64} {
  func.func @_conv_gemm_kernel(%arg0: i32, %arg1: memref<32x1152xbf16, #tpu.memory_space<vmem>>, %arg2: memref<1152x128xbf16, #tpu.memory_space<vmem>>, %arg3: memref<1x128xf32, #tpu.memory_space<vmem>>, %arg4: memref<32x128xbf16, #tpu.memory_space<vmem>>) attributes {dimension_semantics = [#tpu.dimension_semantics<parallel>], iteration_bounds = array<i64: 1>, scalar_prefetch = 0 : i64, scratch_operands = 0 : i64, tpu.core_type = #tpu.core_type<tc>, window_params = [{transform_indices = @transform_0, window_bounds = array<i64: 32, 1152>}, {pipeline_mode = #tpu.pipeline_mode<synchronous>, transform_indices = @transform_1, window_bounds = array<i64: 1152, 128>}, {pipeline_mode = #tpu.pipeline_mode<synchronous>, transform_indices = @transform_2, window_bounds = array<i64: 1, 128>}, {transform_indices = @transform_3, window_bounds = array<i64: 32, 128>}]} {
    %c0 = arith.constant 0 : index
    %c0_0 = arith.constant 0 : index
    %0 = vector.load %arg1[%c0, %c0_0] : memref<32x1152xbf16, #tpu.memory_space<vmem>>, vector<32x1152xbf16>
    %c0_1 = arith.constant 0 : index
    %c0_2 = arith.constant 0 : index
    %1 = vector.load %arg2[%c0_1, %c0_2] : memref<1152x128xbf16, #tpu.memory_space<vmem>>, vector<1152x128xbf16>
    %cst = arith.constant dense<0.000000e+00> : vector<32x128xf32>
    %2 = tpu.matmul %0, %1, %cst {dimension_numbers = #tpu.dot_dimension_numbers<[1], [0], [0], [1], [0, 0, 1, 1], [], []>} : vector<32x1152xbf16>, vector<1152x128xbf16>, vector<32x128xf32> -> vector<32x128xf32>
    %c0_3 = arith.constant 0 : index
    %c0_4 = arith.constant 0 : index
    %3 = vector.load %arg3[%c0_3, %c0_4] : memref<1x128xf32, #tpu.memory_space<vmem>>, vector<1x128xf32>
    %4 = vector.broadcast %3 : vector<1x128xf32> to vector<32x128xf32>
    %5 = arith.addf %2, %4 : vector<32x128xf32>
    %cst_5 = arith.constant 0.000000e+00 : f32
    %6 = vector.broadcast %cst_5 : f32 to vector<32x128xf32>
    %7 = arith.cmpf oge, %5, %6 : vector<32x128xf32>
    %cst_6 = arith.constant 1.000000e-01 : f32
    %8 = vector.broadcast %cst_6 : f32 to vector<32x128xf32>
    %9 = arith.mulf %8, %5 : vector<32x128xf32>
    %10 = arith.select %7, %5, %9 : vector<32x128xi1>, vector<32x128xf32>
    %11 = arith.truncf %10 : vector<32x128xf32> to vector<32x128xbf16>
    %c0_7 = arith.constant 0 : index
    %c0_8 = arith.constant 0 : index
    %12 = vector.load %arg4[%c0_7, %c0_8] : memref<32x128xbf16, #tpu.memory_space<vmem>>, vector<32x128xbf16>
    tpu.vector_store %arg4[%c0_7, %c0_8], %11 {strides = array<i32>} : memref<32x128xbf16, #tpu.memory_space<vmem>>, vector<32x128xbf16>,
    return
  }
  func.func @transform_0(%arg0: i32) -> (i32, i32) {
    %c0_i32 = arith.constant 0 : i32
    %c0_i32_0 = arith.constant 0 : i32
    return %arg0, %c0_i32 : i32, i32
  }
  func.func @transform_1(%arg0: i32) -> (i32, i32) {
    %c0_i32 = arith.constant 0 : i32
    %c0_i32_0 = arith.constant 0 : i32
    %c0_i32_1 = arith.constant 0 : i32
    return %c0_i32, %c0_i32_0 : i32, i32
  }
  func.func @transform_2(%arg0: i32) -> (i32, i32) {
    %c0_i32 = arith.constant 0 : i32
    %c0_i32_0 = arith.constant 0 : i32
    %c0_i32_1 = arith.constant 0 : i32
    return %c0_i32, %c0_i32_0 : i32, i32
  }
  func.func @transform_3(%arg0: i32) -> (i32, i32) {
    %c0_i32 = arith.constant 0 : i32
    %c0_i32_0 = arith.constant 0 : i32
    return %arg0, %c0_i32 : i32, i32
  }
}

module attributes {stable_mosaic.version = 11 : i64} {
  func.func @_conv_gemm_kernel(%arg0: i32, %arg1: memref<8x1152xbf16, #tpu.memory_space<vmem>>, %arg2: memref<1152x128xbf16, #tpu.memory_space<vmem>>, %arg3: memref<1x128xf32, #tpu.memory_space<vmem>>, %arg4: memref<8x128xbf16, #tpu.memory_space<vmem>>) attributes {dimension_semantics = [#tpu.dimension_semantics<parallel>], iteration_bounds = array<i64: 1>, scalar_prefetch = 0 : i64, scratch_operands = 0 : i64, tpu.core_type = #tpu.core_type<tc>, window_params = [{transform_indices = @transform_0, window_bounds = array<i64: 8, 1152>}, {pipeline_mode = #tpu.pipeline_mode<synchronous>, transform_indices = @transform_1, window_bounds = array<i64: 1152, 128>}, {pipeline_mode = #tpu.pipeline_mode<synchronous>, transform_indices = @transform_2, window_bounds = array<i64: 1, 128>}, {transform_indices = @transform_3, window_bounds = array<i64: 8, 128>}]} {
    %c0 = arith.constant 0 : index
    %c0_0 = arith.constant 0 : index
    %0 = vector.load %arg1[%c0, %c0_0] : memref<8x1152xbf16, #tpu.memory_space<vmem>>, vector<8x1152xbf16>
    %c0_1 = arith.constant 0 : index
    %c0_2 = arith.constant 0 : index
    %1 = vector.load %arg2[%c0_1, %c0_2] : memref<1152x128xbf16, #tpu.memory_space<vmem>>, vector<1152x128xbf16>
    %cst = arith.constant dense<0.000000e+00> : vector<8x128xf32>
    %2 = tpu.matmul %0, %1, %cst {dimension_numbers = #tpu.dot_dimension_numbers<[1], [0], [0], [1], [0, 0, 1, 1], [], []>} : vector<8x1152xbf16>, vector<1152x128xbf16>, vector<8x128xf32> -> vector<8x128xf32>
    %c0_3 = arith.constant 0 : index
    %c0_4 = arith.constant 0 : index
    %3 = vector.load %arg3[%c0_3, %c0_4] : memref<1x128xf32, #tpu.memory_space<vmem>>, vector<1x128xf32>
    %4 = vector.broadcast %3 : vector<1x128xf32> to vector<8x128xf32>
    %5 = arith.addf %2, %4 : vector<8x128xf32>
    %cst_5 = arith.constant 0.000000e+00 : f32
    %6 = vector.broadcast %cst_5 : f32 to vector<8x128xf32>
    %7 = arith.cmpf oge, %5, %6 : vector<8x128xf32>
    %cst_6 = arith.constant 1.000000e-01 : f32
    %8 = vector.broadcast %cst_6 : f32 to vector<8x128xf32>
    %9 = arith.mulf %8, %5 : vector<8x128xf32>
    %10 = arith.select %7, %5, %9 : vector<8x128xi1>, vector<8x128xf32>
    %11 = arith.truncf %10 : vector<8x128xf32> to vector<8x128xbf16>
    %c0_7 = arith.constant 0 : index
    %c0_8 = arith.constant 0 : index
    %12 = vector.load %arg4[%c0_7, %c0_8] : memref<8x128xbf16, #tpu.memory_space<vmem>>, vector<8x128xbf16>
    tpu.vector_store %arg4[%c0_7, %c0_8], %11 {strides = array<i32>} : memref<8x128xbf16, #tpu.memory_space<vmem>>, vector<8x128xbf16>,
    return
  }
  func.func @transform_0(%arg0: i32) -> (i32, i32) {
    %c0_i32 = arith.constant 0 : i32
    %c0_i32_0 = arith.constant 0 : i32
    return %arg0, %c0_i32 : i32, i32
  }
  func.func @transform_1(%arg0: i32) -> (i32, i32) {
    %c0_i32 = arith.constant 0 : i32
    %c0_i32_0 = arith.constant 0 : i32
    %c0_i32_1 = arith.constant 0 : i32
    return %c0_i32, %c0_i32_0 : i32, i32
  }
  func.func @transform_2(%arg0: i32) -> (i32, i32) {
    %c0_i32 = arith.constant 0 : i32
    %c0_i32_0 = arith.constant 0 : i32
    %c0_i32_1 = arith.constant 0 : i32
    return %c0_i32, %c0_i32_0 : i32, i32
  }
  func.func @transform_3(%arg0: i32) -> (i32, i32) {
    %c0_i32 = arith.constant 0 : i32
    %c0_i32_0 = arith.constant 0 : i32
    return %arg0, %c0_i32 : i32, i32
  }
}

module attributes {stable_mosaic.version = 11 : i64} {
  func.func @_conv_gemm_kernel(%arg0: i32, %arg1: memref<8x1152xbf16, #tpu.memory_space<vmem>>, %arg2: memref<1152x256xbf16, #tpu.memory_space<vmem>>, %arg3: memref<1x256xf32, #tpu.memory_space<vmem>>, %arg4: memref<8x256xbf16, #tpu.memory_space<vmem>>) attributes {dimension_semantics = [#tpu.dimension_semantics<parallel>], iteration_bounds = array<i64: 1>, scalar_prefetch = 0 : i64, scratch_operands = 0 : i64, tpu.core_type = #tpu.core_type<tc>, window_params = [{transform_indices = @transform_0, window_bounds = array<i64: 8, 1152>}, {pipeline_mode = #tpu.pipeline_mode<synchronous>, transform_indices = @transform_1, window_bounds = array<i64: 1152, 256>}, {pipeline_mode = #tpu.pipeline_mode<synchronous>, transform_indices = @transform_2, window_bounds = array<i64: 1, 256>}, {transform_indices = @transform_3, window_bounds = array<i64: 8, 256>}]} {
    %c0 = arith.constant 0 : index
    %c0_0 = arith.constant 0 : index
    %0 = vector.load %arg1[%c0, %c0_0] : memref<8x1152xbf16, #tpu.memory_space<vmem>>, vector<8x1152xbf16>
    %c0_1 = arith.constant 0 : index
    %c0_2 = arith.constant 0 : index
    %1 = vector.load %arg2[%c0_1, %c0_2] : memref<1152x256xbf16, #tpu.memory_space<vmem>>, vector<1152x256xbf16>
    %cst = arith.constant dense<0.000000e+00> : vector<8x256xf32>
    %2 = tpu.matmul %0, %1, %cst {dimension_numbers = #tpu.dot_dimension_numbers<[1], [0], [0], [1], [0, 0, 1, 1], [], []>} : vector<8x1152xbf16>, vector<1152x256xbf16>, vector<8x256xf32> -> vector<8x256xf32>
    %c0_3 = arith.constant 0 : index
    %c0_4 = arith.constant 0 : index
    %3 = vector.load %arg3[%c0_3, %c0_4] : memref<1x256xf32, #tpu.memory_space<vmem>>, vector<1x256xf32>
    %4 = vector.broadcast %3 : vector<1x256xf32> to vector<8x256xf32>
    %5 = arith.addf %2, %4 : vector<8x256xf32>
    %cst_5 = arith.constant 0.000000e+00 : f32
    %6 = vector.broadcast %cst_5 : f32 to vector<8x256xf32>
    %7 = arith.cmpf oge, %5, %6 : vector<8x256xf32>
    %cst_6 = arith.constant 1.000000e-01 : f32
    %8 = vector.broadcast %cst_6 : f32 to vector<8x256xf32>
    %9 = arith.mulf %8, %5 : vector<8x256xf32>
    %10 = arith.select %7, %5, %9 : vector<8x256xi1>, vector<8x256xf32>
    %11 = arith.truncf %10 : vector<8x256xf32> to vector<8x256xbf16>
    %c0_7 = arith.constant 0 : index
    %c0_8 = arith.constant 0 : index
    %12 = vector.load %arg4[%c0_7, %c0_8] : memref<8x256xbf16, #tpu.memory_space<vmem>>, vector<8x256xbf16>
    tpu.vector_store %arg4[%c0_7, %c0_8], %11 {strides = array<i32>} : memref<8x256xbf16, #tpu.memory_space<vmem>>, vector<8x256xbf16>,
    return
  }
  func.func @transform_0(%arg0: i32) -> (i32, i32) {
    %c0_i32 = arith.constant 0 : i32
    %c0_i32_0 = arith.constant 0 : i32
    return %arg0, %c0_i32 : i32, i32
  }
  func.func @transform_1(%arg0: i32) -> (i32, i32) {
    %c0_i32 = arith.constant 0 : i32
    %c0_i32_0 = arith.constant 0 : i32
    %c0_i32_1 = arith.constant 0 : i32
    return %c0_i32, %c0_i32_0 : i32, i32
  }
  func.func @transform_2(%arg0: i32) -> (i32, i32) {
    %c0_i32 = arith.constant 0 : i32
    %c0_i32_0 = arith.constant 0 : i32
    %c0_i32_1 = arith.constant 0 : i32
    return %c0_i32, %c0_i32_0 : i32, i32
  }
  func.func @transform_3(%arg0: i32) -> (i32, i32) {
    %c0_i32 = arith.constant 0 : i32
    %c0_i32_0 = arith.constant 0 : i32
    return %arg0, %c0_i32 : i32, i32
  }
}

module attributes {stable_mosaic.version = 11 : i64} {
  func.func @_head_kernel(%arg0: i32, %arg1: memref<2x256xf32, #tpu.memory_space<vmem>>, %arg2: memref<256x64xf32, #tpu.memory_space<vmem>>, %arg3: memref<1x64xf32, #tpu.memory_space<vmem>>, %arg4: memref<64x64xf32, #tpu.memory_space<vmem>>, %arg5: memref<1x64xf32, #tpu.memory_space<vmem>>, %arg6: memref<64x64xf32, #tpu.memory_space<vmem>>, %arg7: memref<1x64xf32, #tpu.memory_space<vmem>>, %arg8: memref<64x4xf32, #tpu.memory_space<vmem>>, %arg9: memref<1x4xf32, #tpu.memory_space<vmem>>, %arg10: memref<2x4xf32, #tpu.memory_space<vmem>>, %arg11: memref<2x1xf32, #tpu.memory_space<vmem>>) attributes {dimension_semantics = [#tpu.dimension_semantics<arbitrary>], iteration_bounds = array<i64: 1>, scalar_prefetch = 0 : i64, scratch_operands = 0 : i64, tpu.core_type = #tpu.core_type<tc>, window_params = [{pipeline_mode = #tpu.pipeline_mode<synchronous>, transform_indices = @transform_0, window_bounds = array<i64: 2, 256>}, {pipeline_mode = #tpu.pipeline_mode<synchronous>, transform_indices = @transform_1, window_bounds = array<i64: 256, 64>}, {pipeline_mode = #tpu.pipeline_mode<synchronous>, transform_indices = @transform_2, window_bounds = array<i64: 1, 64>}, {pipeline_mode = #tpu.pipeline_mode<synchronous>, transform_indices = @transform_3, window_bounds = array<i64: 64, 64>}, {pipeline_mode = #tpu.pipeline_mode<synchronous>, transform_indices = @transform_4, window_bounds = array<i64: 1, 64>}, {pipeline_mode = #tpu.pipeline_mode<synchronous>, transform_indices = @transform_5, window_bounds = array<i64: 64, 64>}, {pipeline_mode = #tpu.pipeline_mode<synchronous>, transform_indices = @transform_6, window_bounds = array<i64: 1, 64>}, {pipeline_mode = #tpu.pipeline_mode<synchronous>, transform_indices = @transform_7, window_bounds = array<i64: 64, 4>}, {pipeline_mode = #tpu.pipeline_mode<synchronous>, transform_indices = @transform_8, window_bounds = array<i64: 1, 4>}, {pipeline_mode = #tpu.pipeline_mode<synchronous>, transform_indices = @transform_9, window_bounds = array<i64: 2, 4>}, {pipeline_mode = #tpu.pipeline_mode<synchronous>, transform_indices = @transform_10, window_bounds = array<i64: 2, 1>}]} {
    %c0 = arith.constant 0 : index
    %c0_0 = arith.constant 0 : index
    %0 = vector.load %arg1[%c0, %c0_0] : memref<2x256xf32, #tpu.memory_space<vmem>>, vector<2x256xf32>
    %c0_1 = arith.constant 0 : index
    %c0_2 = arith.constant 0 : index
    %1 = vector.load %arg2[%c0_1, %c0_2] : memref<256x64xf32, #tpu.memory_space<vmem>>, vector<256x64xf32>
    %cst = arith.constant dense<0.000000e+00> : vector<2x64xf32>
    %2 = tpu.matmul %0, %1, %cst {dimension_numbers = #tpu.dot_dimension_numbers<[1], [0], [0], [1], [0, 0, 1, 1], [], []>} : vector<2x256xf32>, vector<256x64xf32>, vector<2x64xf32> -> vector<2x64xf32>
    %c0_3 = arith.constant 0 : index
    %c0_4 = arith.constant 0 : index
    %3 = vector.load %arg3[%c0_3, %c0_4] : memref<1x64xf32, #tpu.memory_space<vmem>>, vector<1x64xf32>
    %4 = vector.broadcast %3 : vector<1x64xf32> to vector<2x64xf32>
    %5 = arith.addf %2, %4 : vector<2x64xf32>
    %cst_5 = arith.constant 0.000000e+00 : f32
    %6 = vector.broadcast %cst_5 : f32 to vector<2x64xf32>
    %7 = arith.maximumf %5, %6 : vector<2x64xf32>
    %c0_6 = arith.constant 0 : index
    %c0_7 = arith.constant 0 : index
    %8 = vector.load %arg4[%c0_6, %c0_7] : memref<64x64xf32, #tpu.memory_space<vmem>>, vector<64x64xf32>
    %cst_8 = arith.constant dense<0.000000e+00> : vector<2x64xf32>
    %9 = tpu.matmul %7, %8, %cst_8 {dimension_numbers = #tpu.dot_dimension_numbers<[1], [0], [0], [1], [0, 0, 1, 1], [], []>} : vector<2x64xf32>, vector<64x64xf32>, vector<2x64xf32> -> vector<2x64xf32>
    %c0_9 = arith.constant 0 : index
    %c0_10 = arith.constant 0 : index
    %10 = vector.load %arg5[%c0_9, %c0_10] : memref<1x64xf32, #tpu.memory_space<vmem>>, vector<1x64xf32>
    %11 = vector.broadcast %10 : vector<1x64xf32> to vector<2x64xf32>
    %12 = arith.addf %9, %11 : vector<2x64xf32>
    %cst_11 = arith.constant 0.000000e+00 : f32
    %13 = vector.broadcast %cst_11 : f32 to vector<2x64xf32>
    %14 = arith.maximumf %12, %13 : vector<2x64xf32>
    %c0_12 = arith.constant 0 : index
    %c0_13 = arith.constant 0 : index
    %15 = vector.load %arg6[%c0_12, %c0_13] : memref<64x64xf32, #tpu.memory_space<vmem>>, vector<64x64xf32>
    %cst_14 = arith.constant dense<0.000000e+00> : vector<2x64xf32>
    %16 = tpu.matmul %14, %15, %cst_14 {dimension_numbers = #tpu.dot_dimension_numbers<[1], [0], [0], [1], [0, 0, 1, 1], [], []>} : vector<2x64xf32>, vector<64x64xf32>, vector<2x64xf32> -> vector<2x64xf32>
    %c0_15 = arith.constant 0 : index
    %c0_16 = arith.constant 0 : index
    %17 = vector.load %arg7[%c0_15, %c0_16] : memref<1x64xf32, #tpu.memory_space<vmem>>, vector<1x64xf32>
    %18 = vector.broadcast %17 : vector<1x64xf32> to vector<2x64xf32>
    %19 = arith.addf %16, %18 : vector<2x64xf32>
    %cst_17 = arith.constant 0.000000e+00 : f32
    %20 = vector.broadcast %cst_17 : f32 to vector<2x64xf32>
    %21 = arith.maximumf %19, %20 : vector<2x64xf32>
    %c0_18 = arith.constant 0 : index
    %c0_19 = arith.constant 0 : index
    %22 = vector.load %arg8[%c0_18, %c0_19] : memref<64x4xf32, #tpu.memory_space<vmem>>, vector<64x4xf32>
    %cst_20 = arith.constant dense<0.000000e+00> : vector<2x4xf32>
    %23 = tpu.matmul %21, %22, %cst_20 {dimension_numbers = #tpu.dot_dimension_numbers<[1], [0], [0], [1], [0, 0, 1, 1], [], []>} : vector<2x64xf32>, vector<64x4xf32>, vector<2x4xf32> -> vector<2x4xf32>
    %c0_21 = arith.constant 0 : index
    %c0_22 = arith.constant 0 : index
    %24 = vector.load %arg9[%c0_21, %c0_22] : memref<1x4xf32, #tpu.memory_space<vmem>>, vector<1x4xf32>
    %25 = vector.broadcast %24 : vector<1x4xf32> to vector<2x4xf32>
    %26 = arith.addf %23, %25 : vector<2x4xf32>
    %27 = tpu.iota {dimensions = array<i32: 1>} : vector<2x4xi32>
    %c2_i32 = arith.constant 2 : i32
    %28 = vector.broadcast %c2_i32 : i32 to vector<2x4xi32>
    %29 = arith.cmpi eq, %27, %28 : vector<2x4xi32>
    %30 = math.absf %26 : vector<2x4xf32>
    %cst_23 = arith.constant 0.000000e+00 : f32
    %31 = vector.broadcast %cst_23 : f32 to vector<2x4xf32>
    %32 = arith.subf %31, %30 : vector<2x4xf32>
    %cst_24 = arith.constant 1.000000e-01 : f32
    %33 = vector.broadcast %cst_24 : f32 to vector<2x4xf32>
    %34 = arith.subf %32, %33 : vector<2x4xf32>
    %35 = arith.select %29, %34, %26 : vector<2x4xi1>, vector<2x4xf32>
    %c3_i32 = arith.constant 3 : i32
    %36 = vector.broadcast %c3_i32 : i32 to vector<2x4xi32>
    %37 = arith.cmpi slt, %27, %36 : vector<2x4xi32>
    %38 = arith.mulf %35, %35 : vector<2x4xf32>
    %cst_25 = arith.constant 0.000000e+00 : f32
    %39 = vector.broadcast %cst_25 : f32 to vector<2x4xf32>
    %40 = arith.select %37, %38, %39 : vector<2x4xi1>, vector<2x4xf32>
    %cst_26 = arith.constant dense<0.000000e+00> : vector<2xf32>
    %41 = vector.multi_reduction <add>, %40, %cst_26 [1] : vector<2x4xf32> to vector<2xf32>
    %42 = vector.shape_cast %41 : vector<2xf32> to vector<2x1xf32>
    %43 = math.sqrt %42 : vector<2x1xf32>
    %cst_27 = arith.constant 9.99999996E-13 : f32
    %44 = vector.broadcast %cst_27 : f32 to vector<2x1xf32>
    %45 = arith.maximumf %43, %44 : vector<2x1xf32>
    %46 = vector.broadcast %45 : vector<2x1xf32> to vector<2x4xf32>
    %47 = arith.divf %35, %46 : vector<2x4xf32>
    %c0_28 = arith.constant 0 : index
    %c0_29 = arith.constant 0 : index
    %48 = vector.load %arg10[%c0_28, %c0_29] : memref<2x4xf32, #tpu.memory_space<vmem>>, vector<2x4xf32>
    tpu.vector_store %arg10[%c0_28, %c0_29], %47 {strides = array<i32>} : memref<2x4xf32, #tpu.memory_space<vmem>>, vector<2x4xf32>,
    %c3_i32_30 = arith.constant 3 : i32
    %49 = vector.broadcast %c3_i32_30 : i32 to vector<2x4xi32>
    %50 = arith.cmpi eq, %27, %49 : vector<2x4xi32>
    %51 = math.absf %26 : vector<2x4xf32>
    %cst_31 = arith.constant 0.000000e+00 : f32
    %52 = vector.broadcast %cst_31 : f32 to vector<2x4xf32>
    %53 = arith.select %50, %51, %52 : vector<2x4xi1>, vector<2x4xf32>
    %cst_32 = arith.constant dense<0.000000e+00> : vector<2xf32>
    %54 = vector.multi_reduction <add>, %53, %cst_32 [1] : vector<2x4xf32> to vector<2xf32>
    %55 = vector.shape_cast %54 : vector<2xf32> to vector<2x1xf32>
    %c0_33 = arith.constant 0 : index
    %c0_34 = arith.constant 0 : index
    %56 = vector.load %arg11[%c0_33, %c0_34] : memref<2x1xf32, #tpu.memory_space<vmem>>, vector<2x1xf32>
    tpu.vector_store %arg11[%c0_33, %c0_34], %55 {strides = array<i32>} : memref<2x1xf32, #tpu.memory_space<vmem>>, vector<2x1xf32>,
    return
  }
  func.func @transform_0(%arg0: i32) -> (i32, i32) {
    %c0_i32 = arith.constant 0 : i32
    %c0_i32_0 = arith.constant 0 : i32
    %c0_i32_1 = arith.constant 0 : i32
    return %c0_i32, %c0_i32_0 : i32, i32
  }
  func.func @transform_1(%arg0: i32) -> (i32, i32) {
    %c0_i32 = arith.constant 0 : i32
    %c0_i32_0 = arith.constant 0 : i32
    %c0_i32_1 = arith.constant 0 : i32
    return %c0_i32, %c0_i32_0 : i32, i32
  }
  func.func @transform_2(%arg0: i32) -> (i32, i32) {
    %c0_i32 = arith.constant 0 : i32
    %c0_i32_0 = arith.constant 0 : i32
    %c0_i32_1 = arith.constant 0 : i32
    return %c0_i32, %c0_i32_0 : i32, i32
  }
  func.func @transform_3(%arg0: i32) -> (i32, i32) {
    %c0_i32 = arith.constant 0 : i32
    %c0_i32_0 = arith.constant 0 : i32
    %c0_i32_1 = arith.constant 0 : i32
    return %c0_i32, %c0_i32_0 : i32, i32
  }
  func.func @transform_4(%arg0: i32) -> (i32, i32) {
    %c0_i32 = arith.constant 0 : i32
    %c0_i32_0 = arith.constant 0 : i32
    %c0_i32_1 = arith.constant 0 : i32
    return %c0_i32, %c0_i32_0 : i32, i32
  }
  func.func @transform_5(%arg0: i32) -> (i32, i32) {
    %c0_i32 = arith.constant 0 : i32
    %c0_i32_0 = arith.constant 0 : i32
    %c0_i32_1 = arith.constant 0 : i32
    return %c0_i32, %c0_i32_0 : i32, i32
  }
  func.func @transform_6(%arg0: i32) -> (i32, i32) {
    %c0_i32 = arith.constant 0 : i32
    %c0_i32_0 = arith.constant 0 : i32
    %c0_i32_1 = arith.constant 0 : i32
    return %c0_i32, %c0_i32_0 : i32, i32
  }
  func.func @transform_7(%arg0: i32) -> (i32, i32) {
    %c0_i32 = arith.constant 0 : i32
    %c0_i32_0 = arith.constant 0 : i32
    %c0_i32_1 = arith.constant 0 : i32
    return %c0_i32, %c0_i32_0 : i32, i32
  }
  func.func @transform_8(%arg0: i32) -> (i32, i32) {
    %c0_i32 = arith.constant 0 : i32
    %c0_i32_0 = arith.constant 0 : i32
    %c0_i32_1 = arith.constant 0 : i32
    return %c0_i32, %c0_i32_0 : i32, i32
  }
  func.func @transform_9(%arg0: i32) -> (i32, i32) {
    %c0_i32 = arith.constant 0 : i32
    %c0_i32_0 = arith.constant 0 : i32
    %c0_i32_1 = arith.constant 0 : i32
    return %c0_i32, %c0_i32_0 : i32, i32
  }
  func.func @transform_10(%arg0: i32) -> (i32, i32) {
    %c0_i32 = arith.constant 0 : i32
    %c0_i32_0 = arith.constant 0 : i32
    %c0_i32_1 = arith.constant 0 : i32
    return %c0_i32, %c0_i32_0 : i32, i32
  }
}

module attributes {stable_mosaic.version = 11 : i64} {
  func.func @_conv_pool_kernel(%arg0: i32, %arg1: i32, %arg2: memref<1x8x2304xbf16, #tpu.memory_space<vmem>>, %arg3: memref<2304x256xbf16, #tpu.memory_space<vmem>>, %arg4: memref<1x256xf32, #tpu.memory_space<vmem>>, %arg5: memref<1x8x256xf32, #tpu.memory_space<vmem>>) attributes {dimension_semantics = [#tpu.dimension_semantics<parallel>, #tpu.dimension_semantics<arbitrary>], iteration_bounds = array<i64: 2, 1>, scalar_prefetch = 0 : i64, scratch_operands = 0 : i64, tpu.core_type = #tpu.core_type<tc>, window_params = [{transform_indices = @transform_0, window_bounds = array<i64: 1, 8, 2304>}, {pipeline_mode = #tpu.pipeline_mode<synchronous>, transform_indices = @transform_1, window_bounds = array<i64: 2304, 256>}, {pipeline_mode = #tpu.pipeline_mode<synchronous>, transform_indices = @transform_2, window_bounds = array<i64: 1, 256>}, {transform_indices = @transform_3, window_bounds = array<i64: 1, 8, 256>}]} {
    %c0_i32 = arith.constant 0 : i32
    %0 = arith.cmpi eq, %arg1, %c0_i32 : i32
    %1 = arith.extui %0 : i1 to i32
    %c0_i32_0 = arith.constant 0 : i32
    %2 = arith.cmpi ne, %1, %c0_i32_0 : i32
    scf.if %2 {
      %cst_18 = arith.constant 0.000000e+00 : f32
      %32 = vector.broadcast %cst_18 : f32 to vector<1x8x256xf32>
      %c0_19 = arith.constant 0 : index
      %c0_20 = arith.constant 0 : index
      %c0_21 = arith.constant 0 : index
      %33 = vector.load %arg5[%c0_19, %c0_20, %c0_21] : memref<1x8x256xf32, #tpu.memory_space<vmem>>, vector<1x8x256xf32>
      tpu.vector_store %arg5[%c0_19, %c0_20, %c0_21], %32 {strides = array<i32>} : memref<1x8x256xf32, #tpu.memory_space<vmem>>, vector<1x8x256xf32>,
    } else {
    }
    %c0 = arith.constant 0 : index
    %c0_1 = arith.constant 0 : index
    %c0_2 = arith.constant 0 : index
    %3 = vector.load %arg2[%c0, %c0_1, %c0_2] : memref<1x8x2304xbf16, #tpu.memory_space<vmem>>, vector<1x8x2304xbf16>
    %4 = vector.shape_cast %3 : vector<1x8x2304xbf16> to vector<8x2304xbf16>
    %c0_3 = arith.constant 0 : index
    %c0_4 = arith.constant 0 : index
    %5 = vector.load %arg3[%c0_3, %c0_4] : memref<2304x256xbf16, #tpu.memory_space<vmem>>, vector<2304x256xbf16>
    %cst = arith.constant dense<0.000000e+00> : vector<8x256xf32>
    %6 = tpu.matmul %4, %5, %cst {dimension_numbers = #tpu.dot_dimension_numbers<[1], [0], [0], [1], [0, 0, 1, 1], [], []>} : vector<8x2304xbf16>, vector<2304x256xbf16>, vector<8x256xf32> -> vector<8x256xf32>
    %c0_5 = arith.constant 0 : index
    %c0_6 = arith.constant 0 : index
    %7 = vector.load %arg4[%c0_5, %c0_6] : memref<1x256xf32, #tpu.memory_space<vmem>>, vector<1x256xf32>
    %8 = vector.broadcast %7 : vector<1x256xf32> to vector<8x256xf32>
    %9 = arith.addf %6, %8 : vector<8x256xf32>
    %cst_7 = arith.constant 0.000000e+00 : f32
    %10 = vector.broadcast %cst_7 : f32 to vector<8x256xf32>
    %11 = arith.cmpf oge, %9, %10 : vector<8x256xf32>
    %cst_8 = arith.constant 1.000000e-01 : f32
    %12 = vector.broadcast %cst_8 : f32 to vector<8x256xf32>
    %13 = arith.mulf %12, %9 : vector<8x256xf32>
    %14 = arith.select %11, %9, %13 : vector<8x256xi1>, vector<8x256xf32>
    %15 = tpu.iota {dimensions = array<i32: 0>} : vector<8x256xi32>
    %c8_i32 = arith.constant 8 : i32
    %16 = arith.muli %arg1, %c8_i32 : i32
    %17 = vector.broadcast %16 : i32 to vector<8x256xi32>
    %18 = arith.addi %15, %17 : vector<8x256xi32>
    %c1_i32 = arith.constant 1 : i32
    %19 = vector.broadcast %c1_i32 : i32 to vector<8x256xi32>
    %20 = arith.cmpi slt, %18, %19 : vector<8x256xi32>
    %cst_9 = arith.constant 0.000000e+00 : f32
    %21 = vector.broadcast %cst_9 : f32 to vector<8x256xf32>
    %22 = arith.select %20, %14, %21 : vector<8x256xi1>, vector<8x256xf32>
    %cst_10 = arith.constant dense<0.000000e+00> : vector<256xf32>
    %23 = vector.multi_reduction <add>, %22, %cst_10 [0] : vector<8x256xf32> to vector<256xf32>
    %24 = vector.shape_cast %23 : vector<256xf32> to vector<1x256xf32>
    %cst_11 = arith.constant 1.000000e+00 : f32
    %25 = vector.broadcast %cst_11 : f32 to vector<1x256xf32>
    %26 = arith.mulf %24, %25 : vector<1x256xf32>
    %c0_12 = arith.constant 0 : index
    %c0_13 = arith.constant 0 : index
    %c0_14 = arith.constant 0 : index
    %27 = vector.load %arg5[%c0_12, %c0_13, %c0_14] : memref<1x8x256xf32, #tpu.memory_space<vmem>>, vector<1x8x256xf32>
    %28 = vector.shape_cast %26 : vector<1x256xf32> to vector<1x1x256xf32>
    %29 = vector.broadcast %28 : vector<1x1x256xf32> to vector<1x8x256xf32>
    %30 = arith.addf %27, %29 : vector<1x8x256xf32>
    %c0_15 = arith.constant 0 : index
    %c0_16 = arith.constant 0 : index
    %c0_17 = arith.constant 0 : index
    %31 = vector.load %arg5[%c0_15, %c0_16, %c0_17] : memref<1x8x256xf32, #tpu.memory_space<vmem>>, vector<1x8x256xf32>
    tpu.vector_store %arg5[%c0_15, %c0_16, %c0_17], %30 {strides = array<i32>} : memref<1x8x256xf32, #tpu.memory_space<vmem>>, vector<1x8x256xf32>,
    return
  }
  func.func @transform_0(%arg0: i32, %arg1: i32) -> (i32, i32, i32) {
    %c0_i32 = arith.constant 0 : i32
    %c0_i32_0 = arith.constant 0 : i32
    return %arg0, %arg1, %c0_i32 : i32, i32, i32
  }
  func.func @transform_1(%arg0: i32, %arg1: i32) -> (i32, i32) {
    %c0_i32 = arith.constant 0 : i32
    %c0_i32_0 = arith.constant 0 : i32
    %c0_i32_1 = arith.constant 0 : i32
    return %c0_i32, %c0_i32_0 : i32, i32
  }
  func.func @transform_2(%arg0: i32, %arg1: i32) -> (i32, i32) {
    %c0_i32 = arith.constant 0 : i32
    %c0_i32_0 = arith.constant 0 : i32
    %c0_i32_1 = arith.constant 0 : i32
    return %c0_i32, %c0_i32_0 : i32, i32
  }
  func.func @transform_3(%arg0: i32, %arg1: i32) -> (i32, i32, i32) {
    %c0_i32 = arith.constant 0 : i32
    %c0_i32_0 = arith.constant 0 : i32
    %c0_i32_1 = arith.constant 0 : i32
    return %arg0, %c0_i32, %c0_i32_0 : i32, i32, i32
  }
}

</mosaic_0001>

<bundles_post_ra>
// kernel: forward.8
= control target key start
LH: loop header
LB: loop body
LE: loop exit
PB: predicated region body
PF: predicated region fallthrough
CT: control target
= control target key end

     0   :  { %s672_s1 = inlined_call_operand.vmem [shape: bf16[128,128], index: 1, kind: input, shape index: {}]   ;;  %s673_s0 = inlined_call_operand.vmem [shape: bf16[128,128], index: 0, kind: input, shape index: {}]   ;;  %s674_s2 = inlined_call_operand.vmem [shape: f32[1,128], index: 2, kind: input, shape index: {}]   ;;  %s675_s3 = inlined_call_operand.vmem [shape: bf16[128,128], index: 3, kind: output, shape index: {}]  }
   0x1   :  { %v539_v0 = vld [vmem:[%s672_s1] sm:$0xff]   ;;  %v540_v1 = vld [vmem:[%s672_s1 + $0x8] sm:$0xff]   ;;  %v541_v2 = vld [vmem:[%s672_s1 + $0x10] sm:$0xff]  }
   0x2   :  { %491 = vmatprep.subr.bf16.mxu0 %v539_v0  ;;  %523 = vmatprep.subr.bf16.mxu1 %v539_v0  ;;  %v542_v3 = vld [vmem:[%s672_s1 + $0x18] sm:$0xff]   ;;  %v547_v4 = vld [vmem:[%s673_s0] sm:$0xff]   ;;  %v544_v7 = vld [vmem:[%s672_s1 + $0x28] sm:$0xff]  }
   0x3   :  { %492 = vmatpush3.bf16.msra.mxu0 %v539_v0  ;;  %531 = vmatpush3.bf16.msra.mxu1 %v539_v0  ;;  %v548_v5 = vld [vmem:[%s673_s0 + $0x20] sm:$0xff]   ;;  %v545_v8 = vld [vmem:[%s672_s1 + $0x30] sm:$0xff]   ;;  %v546_v9 = vld [vmem:[%s672_s1 + $0x38] sm:$0xff]  }
   0x4   :  { %493 = vmatprep.subr.bf16.mxu0 %v540_v1  ;;  %524 = vmatprep.subr.bf16.mxu1 %v540_v1  ;;  %v543_v6 = vld [vmem:[%s672_s1 + $0x20] sm:$0xff]   ;;  %v549_v10 = vld [vmem:[%s673_s0 + $0x8] sm:$0xff]   ;;  %v551_v12 = vld [vmem:[%s673_s0 + $0x10] sm:$0xff]  }
   0x5   :  { %507 = vmatprep.mubr.bf16.mxu0 %v547_v4  ;;  %515 = vmatprep.mubr.bf16.mxu1 %v548_v5  ;;  %v550_v11 = vld [vmem:[%s673_s0 + $0x28] sm:$0xff]   ;;  %v552_v13 = vld [vmem:[%s673_s0 + $0x30] sm:$0xff]   ;;  %v553_v14 = vld [vmem:[%s673_s0 + $0x18] sm:$0xff]  }
   0x6   :  { %v554_v15 = vld [vmem:[%s673_s0 + $0x38] sm:$0xff]   ;;  %v626_v16 = vld [vmem:[%s674_s2] ss:$0 sm:$0xff] }
   0x7   :  { %494 = vmatpush3.bf16.msra.mxu0 %v540_v1  ;;  %532 = vmatpush3.bf16.msra.mxu1 %v540_v1 }
   0x8   :  { %495 = vmatprep.subr.bf16.mxu0 %v541_v2  ;;  %525 = vmatprep.subr.bf16.mxu1 %v541_v2 }
   0xb   :  { %496 = vmatpush3.bf16.msra.mxu0 %v541_v2  ;;  %533 = vmatpush3.bf16.msra.mxu1 %v541_v2 }
   0xc   :  { %497 = vmatprep.subr.bf16.mxu0 %v542_v3  ;;  %526 = vmatprep.subr.bf16.mxu1 %v542_v3 }
   0xf   :  { %498 = vmatpush3.bf16.msra.mxu0 %v542_v3  ;;  %534 = vmatpush3.bf16.msra.mxu1 %v542_v3 }
  0x10   :  { %499 = vmatprep.subr.bf16.mxu0 %v543_v6  ;;  %527 = vmatprep.subr.bf16.mxu1 %v543_v6 }
  0x13   :  { %500 = vmatpush3.bf16.msra.mxu0 %v543_v6  ;;  %535 = vmatpush3.bf16.msra.mxu1 %v543_v6 }
  0x14   :  { %501 = vmatprep.subr.bf16.mxu0 %v544_v7  ;;  %528 = vmatprep.subr.bf16.mxu1 %v544_v7 }
  0x17   :  { %502 = vmatpush3.bf16.msra.mxu0 %v544_v7  ;;  %536 = vmatpush3.bf16.msra.mxu1 %v544_v7 }
  0x18   :  { %503 = vmatprep.subr.bf16.mxu0 %v545_v8  ;;  %529 = vmatprep.subr.bf16.mxu1 %v545_v8 }
  0x1b   :  { %504 = vmatpush3.bf16.msra.mxu0 %v545_v8  ;;  %537 = vmatpush3.bf16.msra.mxu1 %v545_v8 }
  0x1c   :  { %505 = vmatprep.subr.bf16.mxu0 %v546_v9  ;;  %530 = vmatprep.subr.bf16.mxu1 %v546_v9 }
  0x1f   :  { %506 = vmatpush3.bf16.msra.mxu0 %v546_v9  ;;  %538 = vmatpush3.bf16.msra.mxu1 %v546_v9 }
  0x22   :  { %508 = vmatmul.mubr.bf16.vlgmr.msra.gmra.mrb[0].mxu0 %v549_v10  ;;  %516 = vmatmul.mubr.bf16.vlgmr.msra.gmra.mrb[0].mxu1 %v550_v11 }
  0x23   :  { %511 = vmatprep.mubr.bf16.mxu0 %v551_v12  ;;  %519 = vmatprep.mubr.bf16.mxu1 %v552_v13 }
  0x2a   :  { %512 = vmatmul.mubr.bf16.gmra.mrb[4].mxu0 %v553_v14  ;;  %520 = vmatmul.mubr.bf16.gmra.mrb[4].mxu1 %v554_v15 }
  0xf5   :  { %v509_v17 = vpop.f32.mrb[0].mxu0  ;;  %v517_v18 = vpop.f32.mrb[0].mxu1 }
  0xf6   :  { %v193_v19 = vadd.f32 %v509_v17, %v626_v16  ;;  %v225_v20 = vadd.f32 %v517_v18, %v626_v16  ;;  %v184_v21 = vpop.f32.mrb[1].mxu0  ;;  %v216_v22 = vpop.f32.mrb[1].mxu1 }
  0xf7   :  { %v185_v23 = vadd.f32 %v626_v16, %v184_v21  ;;  %v217_v24 = vadd.f32 %v626_v16, %v216_v22  ;;  %v510_v25 = vpop.f32.mrb[2].mxu0  ;;  %v518_v26 = vpop.f32.mrb[2].mxu1 }
  0xf8   :  { %vm249_vm0 = vcmp.ge.f32.partialorder %v193_v19, 0.0  ;;  %v265_v27 = vmul.f32 0.1, %v193_v19  ;;  %vm257_vm1 = vcmp.ge.f32.partialorder %v225_v20, 0.0  ;;  %v273_v28 = vmul.f32 0.1, %v225_v20 }
  0xf9   :  { %vm247_vm2 = vcmp.ge.f32.partialorder %v185_v23, 0.0  ;;  %v263_v29 = vmul.f32 0.1, %v185_v23  ;;  %vm255_vm3 = vcmp.ge.f32.partialorder %v217_v24, 0.0  ;;  %v271_v30 = vmul.f32 0.1, %v217_v24 }
  0xfa   :  { %v196_v31 = vadd.f32 %v510_v25, %v626_v16  ;;  %v228_v32 = vadd.f32 %v518_v26, %v626_v16  ;;  %v187_v33 = vpop.f32.mrb[3].mxu0  ;;  %v219_v34 = vpop.f32.mrb[3].mxu1  ;;  %v281_v35 = vsel %vm249_vm0, %v193_v19, %v265_v27  ;;  %v289_v36 = vsel %vm257_vm1, %v225_v20, %v273_v28 }
  0xfb   :  { %v188_v37 = vadd.f32 %v626_v16, %v187_v33  ;;  %v220_v38 = vadd.f32 %v626_v16, %v219_v34  ;;  %v279_v43 = vsel %vm247_vm2, %v185_v23, %v263_v29  ;;  %v287_v44 = vsel %vm255_vm3, %v217_v24, %v271_v30 }
  0xfc   :  { %vm250_vm4 = vcmp.ge.f32.partialorder %v196_v31, 0.0  ;;  %v266_v39 = vmul.f32 0.1, %v196_v31  ;;  %vm258_vm5 = vcmp.ge.f32.partialorder %v228_v32, 0.0  ;;  %v274_v40 = vmul.f32 0.1, %v228_v32 }
  0xfd   :  { %vm248_vm6 = vcmp.ge.f32.partialorder %v188_v37, 0.0  ;;  %v264_v41 = vmul.f32 0.1, %v188_v37  ;;  %vm256_vm7 = vcmp.ge.f32.partialorder %v220_v38, 0.0  ;;  %v272_v42 = vmul.f32 0.1, %v220_v38 }
  0xfe   :  { %v282_v45 = vsel %vm250_vm4, %v196_v31, %v266_v39  ;;  %v290_v46 = vsel %vm258_vm5, %v228_v32, %v274_v40  ;;  %v513_v47 = vpop.f32.mrb[4].mxu0  ;;  %v521_v48 = vpop.f32.mrb[4].mxu1 }
  0xff   :  { %v436_v49 = vpack.c.bf16 %v282_v45, %v281_v35  ;;  %v456_v50 = vpack.c.bf16 %v290_v46, %v289_v36  ;;  %v280_v51 = vsel %vm248_vm6, %v188_v37, %v264_v41  ;;  %v288_v52 = vsel %vm256_vm7, %v220_v38, %v272_v42  ;;  %v200_v53 = vpop.f32.mrb[5].mxu0  ;;  %v232_v54 = vpop.f32.mrb[5].mxu1 }
 0x100   :  { %v431_v55 = vpack.c.bf16 %v280_v51, %v279_v43  ;;  %v451_v56 = vpack.c.bf16 %v288_v52, %v287_v44  ;;  %v209_v57 = vadd.f32 %v513_v47, %v626_v16  ;;  %v241_v58 = vadd.f32 %v521_v48, %v626_v16  ;;  %v514_v59 = vpop.f32.mrb[6].mxu0  ;;  %v522_v60 = vpop.f32.mrb[6].mxu1 }
 0x101   :  { %468 = vst [vmem:[%s675_s3 + $0x8] sm:$0xff] %v436_v49   ;;  %472 = vst [vmem:[%s675_s3 + $0x28] sm:$0xff] %v456_v50   ;;  %v201_v61 = vadd.f32 %v626_v16, %v200_v53  ;;  %v233_v62 = vadd.f32 %v626_v16, %v232_v54  ;;  %v212_v63 = vadd.f32 %v514_v59, %v626_v16  ;;  %v203_v1 = vpop.f32.mrb[7].mxu0  ;;  %v235_v2 = vpop.f32.mrb[7].mxu1 }
 0x102   :  { %v244_v0 = vadd.f32 %v522_v60, %v626_v16  ;;  %432 = vst [vmem:[%s675_s3] sm:$0xff] %v431_v55   ;;  %471 = vst [vmem:[%s675_s3 + $0x20] sm:$0xff] %v451_v56   ;;  %v269_v3 = vmul.f32 0.1, %v209_v57  ;;  %vm253_vm8 = vcmp.ge.f32.partialorder %v209_v57, 0.0  ;;  %v277_v4 = vmul.f32 0.1, %v241_v58 }
 0x103   :  { %vm261_vm9 = vcmp.ge.f32.partialorder %v241_v58, 0.0  ;;  %vm251_vm10 = vcmp.ge.f32.partialorder %v201_v61, 0.0  ;;  %vm254_vm11 = vcmp.ge.f32.partialorder %v212_v63, 0.0  ;;  %v270_v5 = vmul.f32 0.1, %v212_v63 }
 0x104   :  { %v267_v6 = vmul.f32 0.1, %v201_v61  ;;  %vm259_vm12 = vcmp.ge.f32.partialorder %v233_v62, 0.0  ;;  %vm262_vm13 = vcmp.ge.f32.partialorder %v244_v0, 0.0  ;;  %v278_v7 = vmul.f32 0.1, %v244_v0 }
 0x105   :  { %v285_v8 = vsel %vm253_vm8, %v209_v57, %v269_v3  ;;  %v286_v9 = vsel %vm254_vm11, %v212_v63, %v270_v5  ;;  %v204_v10 = vadd.f32 %v626_v16, %v203_v1  ;;  %v236_v11 = vadd.f32 %v626_v16, %v235_v2 }
 0x106   :  { %v293_v12 = vsel %vm261_vm9, %v241_v58, %v277_v4  ;;  %v275_v13 = vmul.f32 0.1, %v233_v62  ;;  %v446_v14 = vpack.c.bf16 %v286_v9, %v285_v8  ;;  %v294_v15 = vsel %vm262_vm13, %v244_v0, %v278_v7 }
 0x107   :  { %v466_v17 = vpack.c.bf16 %v294_v15, %v293_v12  ;;  %vm252_vm14 = vcmp.ge.f32.partialorder %v204_v10, 0.0  ;;  %v268_v18 = vmul.f32 0.1, %v204_v10  ;;  %vm260_vm15 = vcmp.ge.f32.partialorder %v236_v11, 0.0 }
 0x108   :  { %470 = vst [vmem:[%s675_s3 + $0x18] sm:$0xff] %v446_v14   ;;  %v276_v19 = vmul.f32 0.1, %v236_v11  ;;  %v283_v20 = vsel %vm251_vm10, %v201_v61, %v267_v6  ;;  %v291_v21 = vsel %vm259_vm12, %v233_v62, %v275_v13 }
 0x109   :  { %474 = vst [vmem:[%s675_s3 + $0x38] sm:$0xff] %v466_v17   ;;  %v284_v16 = vsel %vm252_vm14, %v204_v10, %v268_v18 }
 0x10a   :  { %v441_v22 = vpack.c.bf16 %v284_v16, %v283_v20  ;;  %v292_v23 = vsel %vm260_vm15, %v236_v11, %v276_v19 }
 0x10b   :  { %v461_v24 = vpack.c.bf16 %v292_v23, %v291_v21 }
 0x10c   :  { %469 = vst [vmem:[%s675_s3 + $0x10] sm:$0xff] %v441_v22  }
 0x10d   :  { %473 = vst [vmem:[%s675_s3 + $0x30] sm:$0xff] %v461_v24  }

// kernel: forward.9
= control target key start
LH: loop header
LB: loop body
LE: loop exit
PB: predicated region body
PF: predicated region fallthrough
CT: control target
= control target key end

     0   :  { %s1640_s1 = inlined_call_operand.vmem [shape: bf16[1152,128], index: 1, kind: input, shape index: {}]   ;;  %s1641_s0 = inlined_call_operand.vmem [shape: bf16[32,1152], index: 0, kind: input, shape index: {}]   ;;  %s1642_s2 = inlined_call_operand.vmem [shape: f32[1,128], index: 2, kind: input, shape index: {}]   ;;  %s1643_s3 = inlined_call_operand.vmem [shape: bf16[32,128], index: 3, kind: output, shape index: {}]  }
   0x1   :  { %v1243_v0 = vld [vmem:[%s1640_s1 + $0x40] sm:$0xff]   ;;  %v1247_v4 = vld [vmem:[%s1640_s1 + $0x48] sm:$0xff]   ;;  %v1251_v8 = vld [vmem:[%s1640_s1 + $0x50] sm:$0xff]  }
   0x2   :  { %v1244_v1 = vld [vmem:[%s1640_s1] sm:$0xff]   ;;  %1101 = vmatprep.subr.bf16.mxu0 %v1243_v0  ;;  %v1248_v5 = vld [vmem:[%s1640_s1 + $0x8] sm:$0xff]   ;;  %v1252_v9 = vld [vmem:[%s1640_s1 + $0x10] sm:$0xff]  }
   0x3   :  { %v1245_v2 = vld [vmem:[%s1640_s1 + $0xc0] sm:$0xff]   ;;  %1102 = vmatpush3.bf16.msra.mxu0 %v1244_v1  ;;  %v1249_v6 = vld [vmem:[%s1640_s1 + $0xc8] sm:$0xff]   ;;  %v1253_v10 = vld [vmem:[%s1640_s1 + $0xd0] sm:$0xff]  }
   0x4   :  { %v1246_v3 = vld [vmem:[%s1640_s1 + $0x80] sm:$0xff]   ;;  %1129 = vmatprep.subr.bf16.mxu1 %v1245_v2  ;;  %1103 = vmatprep.subr.bf16.mxu0 %v1247_v4  ;;  %v1250_v7 = vld [vmem:[%s1640_s1 + $0x88] sm:$0xff]   ;;  %v1254_v11 = vld [vmem:[%s1640_s1 + $0x90] sm:$0xff]  }
   0x5   :  { %1130 = vmatpush3.bf16.msra.mxu1 %v1246_v3  ;;  %v1255_v12 = vld [vmem:[%s1640_s1 + $0x58] sm:$0xff]   ;;  %v1259_v16 = vld [vmem:[%s1640_s1 + $0x60] sm:$0xff]   ;;  %v1263_v20 = vld [vmem:[%s1640_s1 + $0x68] sm:$0xff]  }
   0x6   :  { %1131 = vmatprep.subr.bf16.mxu1 %v1249_v6  ;;  %v1256_v13 = vld [vmem:[%s1640_s1 + $0x18] sm:$0xff]   ;;  %v1260_v17 = vld [vmem:[%s1640_s1 + $0x20] sm:$0xff]   ;;  %v1264_v21 = vld [vmem:[%s1640_s1 + $0x28] sm:$0xff]  }
   0x7   :  { %1104 = vmatpush3.bf16.msra.mxu0 %v1248_v5  ;;  %v1257_v14 = vld [vmem:[%s1640_s1 + $0xd8] sm:$0xff]   ;;  %v1261_v18 = vld [vmem:[%s1640_s1 + $0xe0] sm:$0xff]   ;;  %v1265_v22 = vld [vmem:[%s1640_s1 + $0xe8] sm:$0xff]  }
   0x8   :  { %1105 = vmatprep.subr.bf16.mxu0 %v1251_v8  ;;  %v1258_v15 = vld [vmem:[%s1640_s1 + $0x98] sm:$0xff]   ;;  %v1262_v19 = vld [vmem:[%s1640_s1 + $0xa0] sm:$0xff]   ;;  %v1266_v23 = vld [vmem:[%s1640_s1 + $0xa8] sm:$0xff]  }
   0x9   :  { %1132 = vmatpush3.bf16.msra.mxu1 %v1250_v7  ;;  %v1267_v24 = vld [vmem:[%s1640_s1 + $0x70] sm:$0xff]   ;;  %v1271_v28 = vld [vmem:[%s1640_s1 + $0x78] sm:$0xff]   ;;  %v1274_v31 = vld [vmem:[%s1641_s0] ss:$36 sps:$4 sm:$0xff]  }
   0xa   :  { %1133 = vmatprep.subr.bf16.mxu1 %v1253_v10  ;;  %v1268_v25 = vld [vmem:[%s1640_s1 + $0x30] sm:$0xff]   ;;  %v1272_v29 = vld [vmem:[%s1640_s1 + $0x38] sm:$0xff]   ;;  %v1276_v32 = vld [vmem:[%s1641_s0 + $0x4] ss:$36 sps:$4 sm:$0xff]  }
   0xb   :  { %1106 = vmatpush3.bf16.msra.mxu0 %v1252_v9  ;;  %v1269_v26 = vld [vmem:[%s1640_s1 + $0xf0] sm:$0xff]   ;;  %v1273_v30 = vld [vmem:[%s1640_s1 + $0xf8] sm:$0xff]   ;;  %742 = vmatprep.mubr.bf16.mxu0 %v1276_v32  ;;  %v1278_v34 = vld [vmem:[%s1640_s1 + $0x140] sm:$0xff]  }
   0xc   :  { %1107 = vmatprep.subr.bf16.mxu0 %v1255_v12  ;;  %v1270_v27 = vld [vmem:[%s1640_s1 + $0xb0] sm:$0xff]   ;;  %v1277_v33 = vld [vmem:[%s1640_s1 + $0xb8] sm:$0xff]   ;;  %v1279_v35 = vld [vmem:[%s1641_s0 + $0x8] ss:$36 sps:$4 sm:$0xff]  }
   0xd   :  { %1134 = vmatpush3.bf16.msra.mxu1 %v1254_v11  ;;  %v1281_v36 = vld [vmem:[%s1641_s0 + $0xc] ss:$36 sps:$4 sm:$0xff]   ;;  %v1282_v37 = vld [vmem:[%s1640_s1 + $0x100] sm:$0xff]   ;;  %v1293_v48 = vld [vmem:[%s1640_s1 + $0x158] sm:$0xff]  }
   0xe   :  { %1135 = vmatprep.subr.bf16.mxu1 %v1257_v14  ;;  %791 = vmatprep.mubr.bf16.mxu1 %v1281_v36  ;;  %v1283_v38 = vld [vmem:[%s1640_s1 + $0x1c0] sm:$0xff]   ;;  %v1285_v40 = vld [vmem:[%s1640_s1 + $0x148] sm:$0xff]   ;;  %v1289_v44 = vld [vmem:[%s1640_s1 + $0x150] sm:$0xff]  }
   0xf   :  { %1108 = vmatpush3.bf16.msra.mxu0 %v1256_v13  ;;  %v1284_v39 = vld [vmem:[%s1640_s1 + $0x180] sm:$0xff]   ;;  %v1286_v41 = vld [vmem:[%s1640_s1 + $0x108] sm:$0xff]   ;;  %v1290_v45 = vld [vmem:[%s1640_s1 + $0x110] sm:$0xff]  }
  0x10   :  { %1109 = vmatprep.subr.bf16.mxu0 %v1259_v16  ;;  %v1287_v42 = vld [vmem:[%s1640_s1 + $0x1c8] sm:$0xff]   ;;  %v1291_v46 = vld [vmem:[%s1640_s1 + $0x1d0] sm:$0xff]   ;;  %v1294_v49 = vld [vmem:[%s1640_s1 + $0x118] sm:$0xff]  }
  0x11   :  { %1136 = vmatpush3.bf16.msra.mxu1 %v1258_v15  ;;  %v1288_v43 = vld [vmem:[%s1640_s1 + $0x188] sm:$0xff]   ;;  %v1292_v47 = vld [vmem:[%s1640_s1 + $0x190] sm:$0xff]   ;;  %v1295_v50 = vld [vmem:[%s1640_s1 + $0x1d8] sm:$0xff]  }
  0x12   :  { %1137 = vmatprep.subr.bf16.mxu1 %v1261_v18  ;;  %v1296_v51 = vld [vmem:[%s1640_s1 + $0x198] sm:$0xff]   ;;  %v1297_v52 = vld [vmem:[%s1640_s1 + $0x160] sm:$0xff]   ;;  %v1301_v56 = vld [vmem:[%s1640_s1 + $0x168] sm:$0xff]  }
  0x13   :  { %1110 = vmatpush3.bf16.msra.mxu0 %v1260_v17  ;;  %v1298_v53 = vld [vmem:[%s1640_s1 + $0x120] sm:$0xff]   ;;  %v1302_v57 = vld [vmem:[%s1641_s0 + $0x4c] ss:$36 sps:$4 sm:$0xff]   ;;  %v1307_v61 = vld [vmem:[%s1641_s0 + $0x54] ss:$36 sps:$4 sm:$0xff]  }
  0x14   :  { %1111 = vmatprep.subr.bf16.mxu0 %v1263_v20  ;;  %v1299_v54 = vld [vmem:[%s1640_s1 + $0x1e0] sm:$0xff]   ;;  %v1304_v58 = vld [vmem:[%s1640_s1 + $0x128] sm:$0xff]   ;;  %v1310_v63 = vld [vmem:[%s1641_s0 + $0x50] ss:$36 sps:$4 sm:$0xff]  }
  0x15   :  { %1138 = vmatpush3.bf16.msra.mxu1 %v1262_v19  ;;  %v1300_v55 = vld [vmem:[%s1640_s1 + $0x1a0] sm:$0xff]   ;;  %v1305_v59 = vld [vmem:[%s1641_s0 + $0x48] ss:$36 sps:$4 sm:$0xff]   ;;  %v1311_v0 = vld [vmem:[%s1640_s1 + $0x170] sm:$0xff]  }
  0x16   :  { %1139 = vmatprep.subr.bf16.mxu1 %v1265_v22  ;;  %v1306_v60 = vld [vmem:[%s1640_s1 + $0x1e8] sm:$0xff]   ;;  %v1312_v1 = vld [vmem:[%s1640_s1 + $0x130] sm:$0xff]   ;;  %v1315_v4 = vld [vmem:[%s1640_s1 + $0x178] sm:$0xff]  }
  0x17   :  { %1112 = vmatpush3.bf16.msra.mxu0 %v1264_v21  ;;  %v1309_v62 = vld [vmem:[%s1640_s1 + $0x1a8] sm:$0xff]   ;;  %v1313_v2 = vld [vmem:[%s1640_s1 + $0x1f0] sm:$0xff]   ;;  %v1316_v5 = vld [vmem:[%s1640_s1 + $0x138] sm:$0xff]  }
  0x18   :  { %1113 = vmatprep.subr.bf16.mxu0 %v1267_v24  ;;  %v1314_v3 = vld [vmem:[%s1640_s1 + $0x1b0] sm:$0xff]   ;;  %v1317_v6 = vld [vmem:[%s1640_s1 + $0x1f8] sm:$0xff]   ;;  %v1322_v10 = vld [vmem:[%s1640_s1 + $0x200] sm:$0xff]  }
  0x19   :  { %1140 = vmatpush3.bf16.msra.mxu1 %v1266_v23  ;;  %v1318_v7 = vld [vmem:[%s1641_s0 + $0x10] ss:$36 sps:$4 sm:$0xff]   ;;  %v1321_v9 = vld [vmem:[%s1640_s1 + $0x1b8] sm:$0xff]   ;;  %v1326_v13 = vld [vmem:[%s1640_s1 + $0x208] sm:$0xff]  }
  0x1a   :  { %1141 = vmatprep.subr.bf16.mxu1 %v1269_v26  ;;  %v1320_v8 = vld [vmem:[%s1641_s0 + $0x14] ss:$36 sps:$4 sm:$0xff]   ;;  %v1325_v12 = vld [vmem:[%s1641_s0 + $0x1c] ss:$36 sps:$4 sm:$0xff]   ;;  %v1331_v17 = vld [vmem:[%s1641_s0 + $0x64] ss:$36 sps:$4 sm:$0xff]  }
  0x1b   :  { %1114 = vmatpush3.bf16.msra.mxu0 %v1268_v25  ;;  %v1323_v11 = vld [vmem:[%s1641_s0 + $0x18] ss:$36 sps:$4 sm:$0xff]   ;;  %v1330_v16 = vld [vmem:[%s1640_s1 + $0x210] sm:$0xff]   ;;  %v1333_v18 = vld [vmem:[%s1641_s0 + $0x60] ss:$36 sps:$4 sm:$0xff]  }
  0x1c   :  { %1115 = vmatprep.subr.bf16.mxu0 %v1271_v28  ;;  %v1327_v14 = vld [vmem:[%s1641_s0 + $0x5c] ss:$36 sps:$4 sm:$0xff]   ;;  %v1336_v22 = vld [vmem:[%s1640_s1 + $0x228] sm:$0xff]   ;;  %v1337_v23 = vld [vmem:[%s1640_s1 + $0x230] sm:$0xff]  }
  0x1d   :  { %1142 = vmatpush3.bf16.msra.mxu1 %v1270_v27  ;;  %v1329_v15 = vld [vmem:[%s1641_s0 + $0x58] ss:$36 sps:$4 sm:$0xff]   ;;  %v1335_v20 = vld [vmem:[%s1640_s1 + $0x220] sm:$0xff]   ;;  %v1340_v25 = vld [vmem:[%s1641_s0 + $0x68] ss:$36 sps:$4 sm:$0xff]  }
  0x1e   :  { %1143 = vmatprep.subr.bf16.mxu1 %v1273_v30  ;;  %v1334_v19 = vld [vmem:[%s1640_s1 + $0x218] sm:$0xff]   ;;  %v1339_v21 = vld [vmem:[%s1641_s0 + $0x20] ss:$36 sps:$4 sm:$0xff]  }
  0x1f   :  { %1116 = vmatpush3.bf16.msra.mxu0 %v1272_v29  ;;  %v1338_v24 = vld [vmem:[%s1640_s1 + $0x238] sm:$0xff]   ;;  %v991_v27 = vld [vmem:[%s1642_s2] ss:$0 sm:$0xff] }
  0x20   :  { %1157 = vmatprep.subr.bf16.mxu0 %v1278_v34 }
  0x21   :  { %1144 = vmatpush3.bf16.msra.mxu1 %v1277_v33 }
  0x22   :  { %743 = vmatmul.mubr.bf16.vlgmr.msra.gmra.mrb[0].mxu0 %v1274_v31  ;;  %1185 = vmatprep.subr.bf16.mxu1 %v1283_v38 }
  0x23   :  { %1158 = vmatpush3.bf16.msra.mxu0 %v1282_v37  ;;  %750 = vmatprep.mubr.bf16.mxu0 %v1302_v57 }
  0x24   :  { %792 = vmatmul.mubr.bf16.vlgmr.msra.gmra.mrb[0].mxu1 %v1279_v35  ;;  %1159 = vmatprep.subr.bf16.mxu0 %v1285_v40 }
  0x25   :  { %1186 = vmatpush3.bf16.msra.mxu1 %v1284_v39  ;;  %799 = vmatprep.mubr.bf16.mxu1 %v1307_v61 }
  0x26   :  { %1187 = vmatprep.subr.bf16.mxu1 %v1287_v42 }
  0x27   :  { %1160 = vmatpush3.bf16.msra.mxu0 %v1286_v41 }
  0x28   :  { %1161 = vmatprep.subr.bf16.mxu0 %v1289_v44 }
  0x29   :  { %1188 = vmatpush3.bf16.msra.mxu1 %v1288_v43 }
  0x2a   :  { %1189 = vmatprep.subr.bf16.mxu1 %v1291_v46  ;;  %751 = vmatmul.mubr.bf16.gmra.mrb[4].mxu0 %v1305_v59 }
  0x2b   :  { %1162 = vmatpush3.bf16.msra.mxu0 %v1290_v45  ;;  %840 = vmatprep.mubr.bf16.mxu0 %v1320_v8 }
  0x2c   :  { %1163 = vmatprep.subr.bf16.mxu0 %v1293_v48  ;;  %800 = vmatmul.mubr.bf16.gmra.mrb[4].mxu1 %v1310_v63 }
  0x2d   :  { %1190 = vmatpush3.bf16.msra.mxu1 %v1292_v47  ;;  %889 = vmatprep.mubr.bf16.mxu1 %v1325_v12 }
  0x2e   :  { %1191 = vmatprep.subr.bf16.mxu1 %v1295_v50 }
  0x2f   :  { %1164 = vmatpush3.bf16.msra.mxu0 %v1294_v49 }
  0x30   :  { %1165 = vmatprep.subr.bf16.mxu0 %v1297_v52 }
  0x31   :  { %1192 = vmatpush3.bf16.msra.mxu1 %v1296_v51 }
  0x32   :  { %1193 = vmatprep.subr.bf16.mxu1 %v1299_v54 }
  0x33   :  { %1166 = vmatpush3.bf16.msra.mxu0 %v1298_v53 }
  0x34   :  { %1167 = vmatprep.subr.bf16.mxu0 %v1301_v56 }
  0x35   :  { %1194 = vmatpush3.bf16.msra.mxu1 %v1300_v55 }
  0x36   :  { %1195 = vmatprep.subr.bf16.mxu1 %v1306_v60 }
  0x37   :  { %1168 = vmatpush3.bf16.msra.mxu0 %v1304_v58 }
  0x38   :  { %1169 = vmatprep.subr.bf16.mxu0 %v1311_v0 }
  0x39   :  { %1196 = vmatpush3.bf16.msra.mxu1 %v1309_v62 }
  0x3a   :  { %1197 = vmatprep.subr.bf16.mxu1 %v1313_v2 }
  0x3b   :  { %1170 = vmatpush3.bf16.msra.mxu0 %v1312_v1 }
  0x3c   :  { %1171 = vmatprep.subr.bf16.mxu0 %v1315_v4 }
  0x3d   :  { %1198 = vmatpush3.bf16.msra.mxu1 %v1314_v3 }
  0x3e   :  { %1199 = vmatprep.subr.bf16.mxu1 %v1317_v6 }
  0x3f   :  { %1172 = vmatpush3.bf16.msra.mxu0 %v1316_v5 }
  0x40   :  { %1223 = vmatprep.subr.bf16.mxu0 %v1322_v10 }
  0x41   :  { %1200 = vmatpush3.bf16.msra.mxu1 %v1321_v9 }
  0x42   :  { %841 = vmatmul.mubr.bf16.vlgmr.msra.gmra.mrb[8].mxu0 %v1318_v7 }
  0x43   :  { %1224 = vmatpush3.bf16.msra.mxu0 %v1322_v10  ;;  %848 = vmatprep.mubr.bf16.mxu0 %v1327_v14 }
  0x44   :  { %890 = vmatmul.mubr.bf16.vlgmr.msra.gmra.mrb[8].mxu1 %v1323_v11  ;;  %1225 = vmatprep.subr.bf16.mxu0 %v1326_v13 }
  0x45   :  { %897 = vmatprep.mubr.bf16.mxu1 %v1331_v17 }
  0x47   :  { %1226 = vmatpush3.bf16.msra.mxu0 %v1326_v13 }
  0x48   :  { %1227 = vmatprep.subr.bf16.mxu0 %v1330_v16 }
  0x4a   :  { %849 = vmatmul.mubr.bf16.gmra.mrb[12].mxu0 %v1329_v15 }
  0x4b   :  { %1228 = vmatpush3.bf16.msra.mxu0 %v1330_v16  ;;  %1239 = vmatprep.mubr.bf16.mxu0 %v1339_v21 }
  0x4c   :  { %898 = vmatmul.mubr.bf16.gmra.mrb[12].mxu1 %v1333_v18  ;;  %1229 = vmatprep.subr.bf16.mxu0 %v1334_v19 }
  0x4f   :  { %1230 = vmatpush3.bf16.msra.mxu0 %v1334_v19 }
  0x50   :  { %1231 = vmatprep.subr.bf16.mxu0 %v1335_v20 }
  0x53   :  { %1232 = vmatpush3.bf16.msra.mxu0 %v1335_v20 }
  0x54   :  { %1233 = vmatprep.subr.bf16.mxu0 %v1336_v22 }
  0x57   :  { %1234 = vmatpush3.bf16.msra.mxu0 %v1336_v22 }
  0x58   :  { %1235 = vmatprep.subr.bf16.mxu0 %v1337_v23 }
  0x5b   :  { %1236 = vmatpush3.bf16.msra.mxu0 %v1337_v23 }
  0x5c   :  { %1237 = vmatprep.subr.bf16.mxu0 %v1338_v24 }
  0x5f   :  { %1238 = vmatpush3.bf16.msra.mxu0 %v1338_v24 }
  0x62   :  { %1240 = vmatmul.mubr.bf16.vlgmr.msra.gmra.mrb[16].mxu0 %v1340_v25 }
  0xf5   :  { %v1117_v26 = vpop.f32.mrb[0].mxu0 }
  0xf6   :  { %v1118_v28 = vpop.f32.mrb[1].mxu0 }
  0xf7   :  { %v1119_v29 = vadd.f32 %v1118_v28, %v1117_v26  ;;  %v1120_v30 = vpop.f32.mrb[2].mxu0  ;;  %v1145_v31 = vpop.f32.mrb[0].mxu1 }
  0xf8   :  { %v1121_v32 = vpop.f32.mrb[3].mxu0  ;;  %v1146_v35 = vpop.f32.mrb[1].mxu1 }
  0xf9   :  { %v745_v33 = vadd.f32 %v1119_v29, %v991_v27  ;;  %v1122_v34 = vadd.f32 %v1121_v32, %v1120_v30  ;;  %v1147_v36 = vadd.f32 %v1146_v35, %v1145_v31  ;;  %v1148_v37 = vpop.f32.mrb[2].mxu1 }
  0xfa   :  { %v1149_v39 = vpop.f32.mrb[3].mxu1 }
  0xfb   :  { %v748_v38 = vadd.f32 %v1122_v34, %v991_v27  ;;  %v794_v40 = vadd.f32 %v1147_v36, %v745_v33  ;;  %v1150_v41 = vadd.f32 %v1149_v39, %v1148_v37 }
  0xfd   :  { %v797_v42 = vadd.f32 %v1150_v41, %v748_v38  ;;  %v1123_v43 = vpop.f32.mrb[4].mxu0 }
  0xfe   :  { %v1124_v44 = vpop.f32.mrb[5].mxu0 }
  0xff   :  { %v1125_v45 = vadd.f32 %v1124_v44, %v1123_v43  ;;  %v1126_v46 = vpop.f32.mrb[6].mxu0  ;;  %v1151_v47 = vpop.f32.mrb[4].mxu1 }
 0x100   :  { %v1127_v48 = vpop.f32.mrb[7].mxu0  ;;  %v1152_v51 = vpop.f32.mrb[5].mxu1 }
 0x101   :  { %v753_v49 = vadd.f32 %v1125_v45, %v991_v27  ;;  %v1128_v50 = vadd.f32 %v1127_v48, %v1126_v46  ;;  %v1153_v52 = vadd.f32 %v1152_v51, %v1151_v47  ;;  %v1154_v53 = vpop.f32.mrb[6].mxu1 }
 0x102   :  { %v1155_v55 = vpop.f32.mrb[7].mxu1 }
 0x103   :  { %v756_v54 = vadd.f32 %v1128_v50, %v991_v27  ;;  %v802_v56 = vadd.f32 %v1153_v52, %v753_v49  ;;  %v1156_v57 = vadd.f32 %v1155_v55, %v1154_v53 }
 0x105   :  { %v805_v58 = vadd.f32 %v1156_v57, %v756_v54 }
 0x115   :  { %v1173_v59 = vpop.f32.mrb[8].mxu0 }
 0x116   :  { %v1174_v60 = vpop.f32.mrb[9].mxu0 }
 0x117   :  { %v1175_v61 = vadd.f32 %v1174_v60, %v1173_v59  ;;  %v1176_v62 = vpop.f32.mrb[10].mxu0  ;;  %v1201_v63 = vpop.f32.mrb[8].mxu1 }
 0x118   :  { %v1177_v0 = vpop.f32.mrb[11].mxu0  ;;  %v1202_v3 = vpop.f32.mrb[9].mxu1 }
 0x119   :  { %v843_v1 = vadd.f32 %v1175_v61, %v794_v40  ;;  %v1178_v2 = vadd.f32 %v1177_v0, %v1176_v62  ;;  %v1203_v4 = vadd.f32 %v1202_v3, %v1201_v63  ;;  %v1204_v5 = vpop.f32.mrb[10].mxu1 }
 0x11a   :  { %v1205_v7 = vpop.f32.mrb[11].mxu1 }
 0x11b   :  { %v846_v6 = vadd.f32 %v1178_v2, %v797_v42  ;;  %v1206_v8 = vadd.f32 %v1205_v7, %v1204_v5  ;;  %v892_v9 = vadd.f32 %v1203_v4, %v843_v1 }
 0x11d   :  { %v1179_v10 = vpop.f32.mrb[12].mxu0  ;;  %v895_v12 = vadd.f32 %v1206_v8, %v846_v6 }
 0x11e   :  { %v1180_v11 = vpop.f32.mrb[13].mxu0 }
 0x11f   :  { %v1181_v13 = vadd.f32 %v1180_v11, %v1179_v10  ;;  %v1182_v14 = vpop.f32.mrb[14].mxu0  ;;  %v1207_v15 = vpop.f32.mrb[12].mxu1 }
 0x120   :  { %v1183_v16 = vpop.f32.mrb[15].mxu0  ;;  %v1208_v19 = vpop.f32.mrb[13].mxu1 }
 0x121   :  { %v851_v17 = vadd.f32 %v1181_v13, %v802_v56  ;;  %v1184_v18 = vadd.f32 %v1183_v16, %v1182_v14  ;;  %v1209_v20 = vadd.f32 %v1208_v19, %v1207_v15  ;;  %v1210_v21 = vpop.f32.mrb[14].mxu1 }
 0x122   :  { %v1211_v23 = vpop.f32.mrb[15].mxu1 }
 0x123   :  { %v854_v22 = vadd.f32 %v1184_v18, %v805_v58  ;;  %v1212_v24 = vadd.f32 %v1211_v23, %v1210_v21  ;;  %v900_v25 = vadd.f32 %v1209_v20, %v851_v17 }
 0x125   :  { %v903_v26 = vadd.f32 %v1212_v24, %v854_v22 }
 0x135   :  { %v1241_v27 = vpop.f32.mrb[16].mxu0 }
 0x136   :  { %v949_v28 = vadd.f32 %v1241_v27, %v900_v25  ;;  %v940_v29 = vpop.f32.mrb[17].mxu0 }
 0x137   :  { %v941_v30 = vadd.f32 %v940_v29, %v892_v9  ;;  %v1242_v31 = vpop.f32.mrb[18].mxu0 }
 0x138   :  { %v961_v32 = vmul.f32 0.1, %v949_v28  ;;  %v952_v33 = vadd.f32 %v1242_v31, %v903_v26  ;;  %v943_v34 = vpop.f32.mrb[19].mxu0  ;;  %vm957_vm0 = vcmp.ge.f32.partialorder %v949_v28, 0.0 }
 0x139   :  { %v959_v35 = vmul.f32 0.1, %v941_v30  ;;  %v944_v36 = vadd.f32 %v943_v34, %v895_v12  ;;  %vm955_vm1 = vcmp.ge.f32.partialorder %v941_v30, 0.0 }
 0x13a   :  { %vm958_vm2 = vcmp.ge.f32.partialorder %v952_v33, 0.0  ;;  %v962_v37 = vmul.f32 0.1, %v952_v33  ;;  %v965_v39 = vsel %vm957_vm0, %v949_v28, %v961_v32 }
 0x13b   :  { %vm956_vm3 = vcmp.ge.f32.partialorder %v944_v36, 0.0  ;;  %v960_v38 = vmul.f32 0.1, %v944_v36  ;;  %v963_v41 = vsel %vm955_vm1, %v941_v30, %v959_v35 }
 0x13c   :  { %v966_v40 = vsel %vm958_vm2, %v952_v33, %v962_v37 }
 0x13d   :  { %v1098_v42 = vpack.c.bf16 %v966_v40, %v965_v39  ;;  %v964_v43 = vsel %vm956_vm3, %v944_v36, %v960_v38 }
 0x13e   :  { %v1093_v44 = vpack.c.bf16 %v964_v43, %v963_v41 }
 0x13f   :  { %1100 = vst [vmem:[%s1643_s3 + $0x8] sm:$0xff] %v1098_v42  }
 0x140   :  { %1094 = vst [vmem:[%s1643_s3] sm:$0xff] %v1093_v44  }

// kernel: forward.11
= control target key start
LH: loop header
LB: loop body
LE: loop exit
PB: predicated region body
PF: predicated region fallthrough
CT: control target
= control target key end

     0   :  { %vm1127_vm0 = vmmov 0   ;;  %s1385_s1 = inlined_call_operand.vmem [shape: bf16[1152,128], index: 1, kind: input, shape index: {}]   ;;  %s1386_s0 = inlined_call_operand.vmem [shape: bf16[8,1152], index: 0, kind: input, shape index: {}]   ;;  %s1387_s2 = inlined_call_operand.vmem [shape: f32[1,128], index: 2, kind: input, shape index: {}]   ;;  %s1388_s3 = inlined_call_operand.vmem [shape: bf16[8,128], index: 3, kind: output, shape index: {}]  }
   0x1   :  { %v1045_v0 = vld [vmem:[%s1385_s1 + $0x40] sm:$0xff]   ;;  %v1049_v4 = vld [vmem:[%s1385_s1 + $0x48] sm:$0xff]   ;;  %v1053_v8 = vld [vmem:[%s1385_s1 + $0x50] sm:$0xff]  }
   0x2   :  { %v1046_v1 = vld [vmem:[%s1385_s1] sm:$0xff]   ;;  %926 = vmatprep.subr.bf16.mxu0 %v1045_v0  ;;  %v1050_v5 = vld [vmem:[%s1385_s1 + $0x8] sm:$0xff]   ;;  %v1054_v9 = vld [vmem:[%s1385_s1 + $0x10] sm:$0xff]  }
   0x3   :  { %v1047_v2 = vld [vmem:[%s1385_s1 + $0xc0] sm:$0xff]   ;;  %927 = vmatpush3.bf16.msra.mxu0 %v1046_v1  ;;  %v1051_v6 = vld [vmem:[%s1385_s1 + $0xc8] sm:$0xff]   ;;  %v1055_v10 = vld [vmem:[%s1385_s1 + $0xd0] sm:$0xff]  }
   0x4   :  { %v1048_v3 = vld [vmem:[%s1385_s1 + $0x80] sm:$0xff]   ;;  %948 = vmatprep.subr.bf16.mxu1 %v1047_v2  ;;  %928 = vmatprep.subr.bf16.mxu0 %v1049_v4  ;;  %v1052_v7 = vld [vmem:[%s1385_s1 + $0x88] sm:$0xff]   ;;  %v1056_v11 = vld [vmem:[%s1385_s1 + $0x90] sm:$0xff]  }
   0x5   :  { %949 = vmatpush3.bf16.msra.mxu1 %v1048_v3  ;;  %v1057_v12 = vld [vmem:[%s1385_s1 + $0x58] sm:$0xff]   ;;  %v1061_v16 = vld [vmem:[%s1385_s1 + $0x60] sm:$0xff]   ;;  %v1065_v20 = vld [vmem:[%s1385_s1 + $0x68] sm:$0xff]  }
   0x6   :  { %950 = vmatprep.subr.bf16.mxu1 %v1051_v6  ;;  %v1058_v13 = vld [vmem:[%s1385_s1 + $0x18] sm:$0xff]   ;;  %v1062_v17 = vld [vmem:[%s1385_s1 + $0x20] sm:$0xff]   ;;  %v1066_v21 = vld [vmem:[%s1385_s1 + $0x28] sm:$0xff]  }
   0x7   :  { %929 = vmatpush3.bf16.msra.mxu0 %v1050_v5  ;;  %v1059_v14 = vld [vmem:[%s1385_s1 + $0xd8] sm:$0xff]   ;;  %v1063_v18 = vld [vmem:[%s1385_s1 + $0xe0] sm:$0xff]   ;;  %v1067_v22 = vld [vmem:[%s1385_s1 + $0xe8] sm:$0xff]  }
   0x8   :  { %930 = vmatprep.subr.bf16.mxu0 %v1053_v8  ;;  %v1060_v15 = vld [vmem:[%s1385_s1 + $0x98] sm:$0xff]   ;;  %v1064_v19 = vld [vmem:[%s1385_s1 + $0xa0] sm:$0xff]   ;;  %v1068_v23 = vld [vmem:[%s1385_s1 + $0xa8] sm:$0xff]  }
   0x9   :  { %951 = vmatpush3.bf16.msra.mxu1 %v1052_v7  ;;  %v1069_v24 = vld [vmem:[%s1385_s1 + $0x70] sm:$0xff]   ;;  %v1073_v28 = vld [vmem:[%s1385_s1 + $0x78] sm:$0xff]   ;;  %v15_v31 = vld [vmem:[%s1386_s0] sm:$0xff] }
   0xa   :  { %952 = vmatprep.subr.bf16.mxu1 %v1055_v10  ;;  %v1070_v25 = vld [vmem:[%s1385_s1 + $0x30] sm:$0xff]   ;;  %v1074_v29 = vld [vmem:[%s1385_s1 + $0x38] sm:$0xff]   ;;  %v845_v32 = vcombine.low %v15_v31, %v15_v31  ;;  %v846_v33 = vcombine.high %v15_v31, %v15_v31  ;;  %v1079_v35 = vld [vmem:[%s1385_s1 + $0x140] sm:$0xff]  }
   0xb   :  { %931 = vmatpush3.bf16.msra.mxu0 %v1054_v9  ;;  %v1071_v26 = vld [vmem:[%s1385_s1 + $0xf0] sm:$0xff]   ;;  %v1075_v30 = vld [vmem:[%s1385_s1 + $0xf8] sm:$0xff]   ;;  %v16_v36 = vld [vmem:[%s1386_s0 + $0x8] sm:$0xff]  ;;  %v1126_v9 = vmov 0.0  }
   0xc   :  { %932 = vmatprep.subr.bf16.mxu0 %v1057_v12  ;;  %v1072_v27 = vld [vmem:[%s1385_s1 + $0xb0] sm:$0xff]   ;;  %v1078_v34 = vld [vmem:[%s1385_s1 + $0xb8] sm:$0xff]   ;;  %667 = vmatprep.mubr.bf16.mxu0 %v846_v33  ;;  %v847_v37 = vcombine.low %v16_v36, %v16_v36  ;;  %v848_v38 = vcombine.high %v16_v36, %v16_v36  ;;  %v1082_v39 = vld [vmem:[%s1385_s1 + $0x100] sm:$0xff]  }
   0xd   :  { %953 = vmatpush3.bf16.msra.mxu1 %v1056_v11  ;;  %v1083_v40 = vld [vmem:[%s1385_s1 + $0x1c0] sm:$0xff]   ;;  %v1085_v42 = vld [vmem:[%s1385_s1 + $0x148] sm:$0xff]   ;;  %v1089_v46 = vld [vmem:[%s1385_s1 + $0x150] sm:$0xff]  }
   0xe   :  { %954 = vmatprep.subr.bf16.mxu1 %v1059_v14  ;;  %707 = vmatprep.mubr.bf16.mxu1 %v848_v38  ;;  %v1084_v41 = vld [vmem:[%s1385_s1 + $0x180] sm:$0xff]   ;;  %v1086_v43 = vld [vmem:[%s1385_s1 + $0x108] sm:$0xff]   ;;  %v1090_v47 = vld [vmem:[%s1385_s1 + $0x110] sm:$0xff]  }
   0xf   :  { %933 = vmatpush3.bf16.msra.mxu0 %v1058_v13  ;;  %v1087_v44 = vld [vmem:[%s1385_s1 + $0x1c8] sm:$0xff]   ;;  %v1091_v48 = vld [vmem:[%s1385_s1 + $0x1d0] sm:$0xff]   ;;  %v1093_v50 = vld [vmem:[%s1385_s1 + $0x158] sm:$0xff]  }
  0x10   :  { %934 = vmatprep.subr.bf16.mxu0 %v1061_v16  ;;  %v1088_v45 = vld [vmem:[%s1385_s1 + $0x188] sm:$0xff]   ;;  %v1092_v49 = vld [vmem:[%s1385_s1 + $0x190] sm:$0xff]   ;;  %v1094_v51 = vld [vmem:[%s1385_s1 + $0x118] sm:$0xff]  }
  0x11   :  { %955 = vmatpush3.bf16.msra.mxu1 %v1060_v15  ;;  %v1095_v52 = vld [vmem:[%s1385_s1 + $0x1d8] sm:$0xff]   ;;  %v1097_v54 = vld [vmem:[%s1385_s1 + $0x160] sm:$0xff]   ;;  %v1101_v58 = vld [vmem:[%s1385_s1 + $0x168] sm:$0xff]  }
  0x12   :  { %956 = vmatprep.subr.bf16.mxu1 %v1063_v18  ;;  %v1096_v53 = vld [vmem:[%s1385_s1 + $0x198] sm:$0xff]   ;;  %v1098_v55 = vld [vmem:[%s1385_s1 + $0x120] sm:$0xff]   ;;  %v1102_v59 = vld [vmem:[%s1385_s1 + $0x128] sm:$0xff]  }
  0x13   :  { %935 = vmatpush3.bf16.msra.mxu0 %v1062_v17  ;;  %v1099_v56 = vld [vmem:[%s1385_s1 + $0x1e0] sm:$0xff]   ;;  %v1103_v60 = vld [vmem:[%s1385_s1 + $0x1e8] sm:$0xff]   ;;  %v1105_v62 = vld [vmem:[%s1385_s1 + $0x170] sm:$0xff]  }
  0x14   :  { %936 = vmatprep.subr.bf16.mxu0 %v1065_v20  ;;  %v1100_v57 = vld [vmem:[%s1385_s1 + $0x1a0] sm:$0xff]   ;;  %v1104_v61 = vld [vmem:[%s1385_s1 + $0x1a8] sm:$0xff]   ;;  %v1106_v63 = vld [vmem:[%s1385_s1 + $0x130] sm:$0xff]  }
  0x15   :  { %957 = vmatpush3.bf16.msra.mxu1 %v1064_v19  ;;  %v1107_v0 = vld [vmem:[%s1385_s1 + $0x1f0] sm:$0xff]   ;;  %v1109_v2 = vld [vmem:[%s1385_s1 + $0x178] sm:$0xff]   ;;  %v1117_v13 = vld [vmem:[%s1385_s1 + $0x200] sm:$0xff]  }
  0x16   :  { %958 = vmatprep.subr.bf16.mxu1 %v1067_v22  ;;  %v1108_v1 = vld [vmem:[%s1385_s1 + $0x1b0] sm:$0xff]   ;;  %v1110_v3 = vld [vmem:[%s1385_s1 + $0x138] sm:$0xff]   ;;  %v1118_v14 = vld [vmem:[%s1385_s1 + $0x208] sm:$0xff]  }
  0x17   :  { %937 = vmatpush3.bf16.msra.mxu0 %v1066_v21  ;;  %v1111_v4 = vld [vmem:[%s1385_s1 + $0x1f8] sm:$0xff]   ;;  %v17_v5 = vld [vmem:[%s1386_s0 + $0x10] sm:$0xff]  ;;  %v1121_v17 = vld [vmem:[%s1385_s1 + $0x220] sm:$0xff]  }
  0x18   :  { %938 = vmatprep.subr.bf16.mxu0 %v1069_v24  ;;  %v849_v6 = vcombine.low %v17_v5, %v17_v5  ;;  %v850_v7 = vcombine.high %v17_v5, %v17_v5  ;;  %v1114_v8 = vld [vmem:[%s1385_s1 + $0x1b8] sm:$0xff]   ;;  %v1119_v15 = vld [vmem:[%s1385_s1 + $0x210] sm:$0xff]   ;;  %v1122_v18 = vld [vmem:[%s1385_s1 + $0x228] sm:$0xff]  }
  0x19   :  { %959 = vmatpush3.bf16.msra.mxu1 %v1068_v23  ;;  %v18_v10 = vld [vmem:[%s1386_s0 + $0x18] sm:$0xff]  ;;  %v1123_v19 = vld [vmem:[%s1385_s1 + $0x230] sm:$0xff]   ;;  %v1125_v21 = vld [vmem:[%s1386_s0 + $0x20] ss:$0 sps:$4 sm:$0xff]  }
  0x1a   :  { %960 = vmatprep.subr.bf16.mxu1 %v1071_v26  ;;  %v851_v11 = vcombine.low %v18_v10, %v18_v10  ;;  %v852_v12 = vcombine.high %v18_v10, %v18_v10  ;;  %v1120_v16 = vld [vmem:[%s1385_s1 + $0x218] sm:$0xff]   ;;  %v844_v23 = vld [vmem:[%s1387_s2] ss:$0 sm:$0xff] }
  0x1b   :  { %939 = vmatpush3.bf16.msra.mxu0 %v1070_v25  ;;  %v1124_v20 = vld [vmem:[%s1385_s1 + $0x238] sm:$0xff]  }
  0x1c   :  { %940 = vmatprep.subr.bf16.mxu0 %v1073_v28 }
  0x1d   :  { %961 = vmatpush3.bf16.msra.mxu1 %v1072_v27 }
  0x1e   :  { %962 = vmatprep.subr.bf16.mxu1 %v1075_v30 }
  0x1f   :  { %941 = vmatpush3.bf16.msra.mxu0 %v1074_v29 }
  0x20   :  { %970 = vmatprep.subr.bf16.mxu0 %v1079_v35 }
  0x21   :  { %963 = vmatpush3.bf16.msra.mxu1 %v1078_v34 }
  0x22   :  { %668 = vmatmul.mubr.bf16.vlgmr.msra.gmra.mrb[0].mxu0 %v845_v32  ;;  %992 = vmatprep.subr.bf16.mxu1 %v1083_v40 }
  0x23   :  { %971 = vmatpush3.bf16.msra.mxu0 %v1082_v39  ;;  %747 = vmatprep.mubr.bf16.mxu0 %v850_v7 }
  0x24   :  { %708 = vmatmul.mubr.bf16.vlgmr.msra.gmra.mrb[0].mxu1 %v847_v37  ;;  %972 = vmatprep.subr.bf16.mxu0 %v1085_v42 }
  0x25   :  { %993 = vmatpush3.bf16.msra.mxu1 %v1084_v41  ;;  %787 = vmatprep.mubr.bf16.mxu1 %v852_v12 }
  0x26   :  { %994 = vmatprep.subr.bf16.mxu1 %v1087_v44 }
  0x27   :  { %973 = vmatpush3.bf16.msra.mxu0 %v1086_v43 }
  0x28   :  { %974 = vmatprep.subr.bf16.mxu0 %v1089_v46 }
  0x29   :  { %995 = vmatpush3.bf16.msra.mxu1 %v1088_v45 }
  0x2a   :  { %996 = vmatprep.subr.bf16.mxu1 %v1091_v48 }
  0x2b   :  { %975 = vmatpush3.bf16.msra.mxu0 %v1090_v47 }
  0x2c   :  { %976 = vmatprep.subr.bf16.mxu0 %v1093_v50 }
  0x2d   :  { %997 = vmatpush3.bf16.msra.mxu1 %v1092_v49 }
  0x2e   :  { %998 = vmatprep.subr.bf16.mxu1 %v1095_v52 }
  0x2f   :  { %977 = vmatpush3.bf16.msra.mxu0 %v1094_v51 }
  0x30   :  { %978 = vmatprep.subr.bf16.mxu0 %v1097_v54 }
  0x31   :  { %999 = vmatpush3.bf16.msra.mxu1 %v1096_v53 }
  0x32   :  { %1000 = vmatprep.subr.bf16.mxu1 %v1099_v56 }
  0x33   :  { %979 = vmatpush3.bf16.msra.mxu0 %v1098_v55 }
  0x34   :  { %980 = vmatprep.subr.bf16.mxu0 %v1101_v58 }
  0x35   :  { %1001 = vmatpush3.bf16.msra.mxu1 %v1100_v57 }
  0x36   :  { %1002 = vmatprep.subr.bf16.mxu1 %v1103_v60 }
  0x37   :  { %981 = vmatpush3.bf16.msra.mxu0 %v1102_v59 }
  0x38   :  { %982 = vmatprep.subr.bf16.mxu0 %v1105_v62 }
  0x39   :  { %1003 = vmatpush3.bf16.msra.mxu1 %v1104_v61 }
  0x3a   :  { %1004 = vmatprep.subr.bf16.mxu1 %v1107_v0 }
  0x3b   :  { %983 = vmatpush3.bf16.msra.mxu0 %v1106_v63 }
  0x3c   :  { %984 = vmatprep.subr.bf16.mxu0 %v1109_v2 }
  0x3d   :  { %1005 = vmatpush3.bf16.msra.mxu1 %v1108_v1 }
  0x3e   :  { %1006 = vmatprep.subr.bf16.mxu1 %v1111_v4 }
  0x3f   :  { %985 = vmatpush3.bf16.msra.mxu0 %v1110_v3 }
  0x40   :  { %1023 = vmatprep.subr.bf16.mxu0 %v1126_v9 }
  0x41   :  { %1007 = vmatpush3.bf16.msra.mxu1 %v1114_v8 }
  0x42   :  { %748 = vmatmul.mubr.bf16.vlgmr.msra.gmra.mrb[4].mxu0 %v849_v6 }
  0x43   :  { %1024 = vmatpush3.bf16.msra.mxu0 %v1117_v13  ;;  %1039 = vmatprep.mubr.msk.bf16.mxu0 %vm1127_vm0, %v1126_v9 }
  0x44   :  { %788 = vmatmul.mubr.bf16.vlgmr.msra.gmra.mrb[4].mxu1 %v851_v11  ;;  %1025 = vmatprep.subr.bf16.mxu0 %v1126_v9 }
  0x47   :  { %1026 = vmatpush3.bf16.msra.mxu0 %v1118_v14 }
  0x48   :  { %1027 = vmatprep.subr.bf16.mxu0 %v1126_v9 }
  0x4b   :  { %1028 = vmatpush3.bf16.msra.mxu0 %v1119_v15 }
  0x4c   :  { %1029 = vmatprep.subr.bf16.mxu0 %v1126_v9 }
  0x4f   :  { %1030 = vmatpush3.bf16.msra.mxu0 %v1120_v16 }
  0x50   :  { %1031 = vmatprep.subr.bf16.mxu0 %v1126_v9 }
  0x53   :  { %1032 = vmatpush3.bf16.msra.mxu0 %v1121_v17 }
  0x54   :  { %1033 = vmatprep.subr.bf16.mxu0 %v1126_v9 }
  0x57   :  { %1034 = vmatpush3.bf16.msra.mxu0 %v1122_v18 }
  0x58   :  { %1035 = vmatprep.subr.bf16.mxu0 %v1126_v9 }
  0x5b   :  { %1036 = vmatpush3.bf16.msra.mxu0 %v1123_v19 }
  0x5c   :  { %1037 = vmatprep.subr.bf16.mxu0 %v1126_v9 }
  0x5f   :  { %1038 = vmatpush3.bf16.msra.mxu0 %v1124_v20 }
  0x62   :  { %1040 = vmatmul.mubr.bf16.vlgmr.msra.gmra.mrb[8].mxu0 %v1125_v21 }
  0xf5   :  { %v942_v22 = vpop.f32.mrb[0].mxu0 }
  0xf6   :  { %v943_v24 = vpop.f32.mrb[1].mxu0 }
  0xf7   :  { %v944_v25 = vadd.f32 %v943_v24, %v942_v22  ;;  %v945_v26 = vpop.f32.mrb[2].mxu0  ;;  %v964_v27 = vpop.f32.mrb[0].mxu1 }
  0xf8   :  { %v946_v28 = vpop.f32.mrb[3].mxu0  ;;  %v965_v29 = vpop.f32.mrb[1].mxu1 }
  0xf9   :  { %v670_v30 = vadd.f32 %v944_v25, %v844_v23  ;;  %v966_v31 = vadd.f32 %v965_v29, %v964_v27  ;;  %v967_v32 = vpop.f32.mrb[2].mxu1 }
  0xfa   :  { %v968_v33 = vpop.f32.mrb[3].mxu1 }
  0xfb   :  { %v710_v34 = vadd.f32 %v966_v31, %v670_v30 }
 0x115   :  { %v986_v35 = vpop.f32.mrb[4].mxu0 }
 0x116   :  { %v987_v36 = vpop.f32.mrb[5].mxu0 }
 0x117   :  { %v988_v37 = vadd.f32 %v987_v36, %v986_v35  ;;  %v989_v38 = vpop.f32.mrb[6].mxu0  ;;  %v1008_v39 = vpop.f32.mrb[4].mxu1 }
 0x118   :  { %v990_v40 = vpop.f32.mrb[7].mxu0  ;;  %v1009_v41 = vpop.f32.mrb[5].mxu1 }
 0x119   :  { %v750_v42 = vadd.f32 %v988_v37, %v710_v34  ;;  %v1010_v43 = vadd.f32 %v1009_v41, %v1008_v39  ;;  %v1011_v44 = vpop.f32.mrb[6].mxu1 }
 0x11a   :  { %v1012_v45 = vpop.f32.mrb[7].mxu1 }
 0x11b   :  { %v790_v46 = vadd.f32 %v1010_v43, %v750_v42 }
 0x135   :  { %v829_v47 = vpop.f32.mrb[8].mxu0 }
 0x136   :  { %v830_v48 = vadd.f32 %v829_v47, %v790_v46  ;;  %v1041_v49 = vpop.f32.mrb[9].mxu0 }
 0x137   :  { %v832_v50 = vpop.f32.mrb[10].mxu0 }
 0x138   :  { %vm835_vm1 = vcmp.ge.f32.partialorder %v830_v48, 0.0  ;;  %v836_v51 = vmul.f32 0.1, %v830_v48  ;;  %v1042_v52 = vpop.f32.mrb[11].mxu0 }
 0x13a   :  { %v837_v53 = vsel %vm835_vm1, %v830_v48, %v836_v51 }
 0x13b   :  { %v838_v54 = vpack.c.bf16 %v837_v53, %v837_v53 }
 0x13d   :  { %839 = vst [vmem:[%s1388_s3] sm:$0xf] %v838_v54 }

// kernel: forward.13
= control target key start
LH: loop header
LB: loop body
LE: loop exit
PB: predicated region body
PF: predicated region fallthrough
CT: control target
= control target key end

     0   :  { %s2035_s1 = inlined_call_operand.vmem [shape: bf16[1152,256], index: 1, kind: input, shape index: {}]   ;;  %s2036_s0 = inlined_call_operand.vmem [shape: bf16[8,1152], index: 0, kind: input, shape index: {}]   ;;  %s2037_s2 = inlined_call_operand.vmem [shape: f32[1,256], index: 2, kind: input, shape index: {}]   ;;  %s2038_s3 = inlined_call_operand.vmem [shape: bf16[8,256], index: 3, kind: output, shape index: {}]  }
   0x1   :  { %v1324_v0 = vld [vmem:[%s2035_s1 + $0x4] ss:$8 sps:$4 sm:$0xff]   ;;  %v1328_v2 = vld [vmem:[%s2035_s1] ss:$8 sps:$4 sm:$0xff]   ;;  %v1330_v4 = vld [vmem:[%s2035_s1 + $0x14] ss:$8 sps:$4 sm:$0xff]  }
   0x2   :  { %v1326_v1 = vld [vmem:[%s2035_s1 + $0x204] ss:$8 sps:$4 sm:$0xff]   ;;  %928 = vmatprep.subr.bf16.mxu1 %v1324_v0  ;;  %v1329_v3 = vld [vmem:[%s2035_s1 + $0x200] ss:$8 sps:$4 sm:$0xff]   ;;  %v1332_v5 = vld [vmem:[%s2035_s1 + $0x214] ss:$8 sps:$4 sm:$0xff]  }
   0x3   :  { %1010 = vmatprep.subr.bf16.mxu0 %v1326_v1  ;;  %929 = vmatpush1.bf16.msra.mxu1 %v1328_v2  ;;  %v1334_v6 = vld [vmem:[%s2035_s1 + $0x10] ss:$8 sps:$4 sm:$0xff]   ;;  %v1336_v8 = vld [vmem:[%s2035_s1 + $0x24] ss:$8 sps:$4 sm:$0xff]   ;;  %v1340_v10 = vld [vmem:[%s2035_s1 + $0x20] ss:$8 sps:$4 sm:$0xff]  }
   0x4   :  { %1011 = vmatpush1.bf16.msra.mxu0 %v1329_v3  ;;  %930 = vmatprep.subr.bf16.mxu1 %v1330_v4  ;;  %v1335_v7 = vld [vmem:[%s2035_s1 + $0x210] ss:$8 sps:$4 sm:$0xff]   ;;  %v1338_v9 = vld [vmem:[%s2035_s1 + $0x224] ss:$8 sps:$4 sm:$0xff]   ;;  %v1341_v11 = vld [vmem:[%s2035_s1 + $0x220] ss:$8 sps:$4 sm:$0xff]  }
   0x5   :  { %1012 = vmatprep.subr.bf16.mxu0 %v1332_v5  ;;  %v1342_v12 = vld [vmem:[%s2035_s1 + $0x34] ss:$8 sps:$4 sm:$0xff]   ;;  %v1346_v14 = vld [vmem:[%s2035_s1 + $0x30] ss:$8 sps:$4 sm:$0xff]   ;;  %v1348_v16 = vld [vmem:[%s2035_s1 + $0x44] ss:$8 sps:$4 sm:$0xff]  }
   0x6   :  { %v1344_v13 = vld [vmem:[%s2035_s1 + $0x234] ss:$8 sps:$4 sm:$0xff]   ;;  %v1347_v15 = vld [vmem:[%s2035_s1 + $0x230] ss:$8 sps:$4 sm:$0xff]   ;;  %v1350_v17 = vld [vmem:[%s2035_s1 + $0x244] ss:$8 sps:$4 sm:$0xff]  }
   0x7   :  { %931 = vmatpush1.bf16.msra.mxu1 %v1334_v6  ;;  %v1352_v18 = vld [vmem:[%s2035_s1 + $0x40] ss:$8 sps:$4 sm:$0xff]   ;;  %v1354_v20 = vld [vmem:[%s2035_s1 + $0x54] ss:$8 sps:$4 sm:$0xff]   ;;  %v1358_v22 = vld [vmem:[%s2035_s1 + $0x50] ss:$8 sps:$4 sm:$0xff]  }
   0x8   :  { %1013 = vmatpush1.bf16.msra.mxu0 %v1335_v7  ;;  %932 = vmatprep.subr.bf16.mxu1 %v1336_v8  ;;  %v1353_v19 = vld [vmem:[%s2035_s1 + $0x240] ss:$8 sps:$4 sm:$0xff]   ;;  %v1356_v21 = vld [vmem:[%s2035_s1 + $0x254] ss:$8 sps:$4 sm:$0xff]   ;;  %v1359_v23 = vld [vmem:[%s2035_s1 + $0x250] ss:$8 sps:$4 sm:$0xff]  }
   0x9   :  { %1014 = vmatprep.subr.bf16.mxu0 %v1338_v9  ;;  %v1360_v24 = vld [vmem:[%s2035_s1 + $0x64] ss:$8 sps:$4 sm:$0xff]   ;;  %v1364_v26 = vld [vmem:[%s2035_s1 + $0x60] ss:$8 sps:$4 sm:$0xff]   ;;  %v1366_v28 = vld [vmem:[%s2035_s1 + $0x74] ss:$8 sps:$4 sm:$0xff]  }
   0xa   :  { %v1362_v25 = vld [vmem:[%s2035_s1 + $0x264] ss:$8 sps:$4 sm:$0xff]   ;;  %v1365_v27 = vld [vmem:[%s2035_s1 + $0x260] ss:$8 sps:$4 sm:$0xff]   ;;  %v1368_v29 = vld [vmem:[%s2035_s1 + $0x274] ss:$8 sps:$4 sm:$0xff]  }
   0xb   :  { %933 = vmatpush1.bf16.msra.mxu1 %v1340_v10  ;;  %v1370_v30 = vld [vmem:[%s2035_s1 + $0x70] ss:$8 sps:$4 sm:$0xff]   ;;  %v1372_v32 = vld [vmem:[%s2035_s1 + $0x84] ss:$8 sps:$4 sm:$0xff]   ;;  %v1376_v34 = vld [vmem:[%s2035_s1 + $0x80] ss:$8 sps:$4 sm:$0xff]  }
   0xc   :  { %1015 = vmatpush1.bf16.msra.mxu0 %v1341_v11  ;;  %934 = vmatprep.subr.bf16.mxu1 %v1342_v12  ;;  %v1371_v31 = vld [vmem:[%s2035_s1 + $0x270] ss:$8 sps:$4 sm:$0xff]   ;;  %v1374_v33 = vld [vmem:[%s2035_s1 + $0x284] ss:$8 sps:$4 sm:$0xff]   ;;  %v1377_v35 = vld [vmem:[%s2035_s1 + $0x280] ss:$8 sps:$4 sm:$0xff]  }
   0xd   :  { %1016 = vmatprep.subr.bf16.mxu0 %v1344_v13  ;;  %v1378_v36 = vld [vmem:[%s2035_s1 + $0x94] ss:$8 sps:$4 sm:$0xff]   ;;  %v1382_v38 = vld [vmem:[%s2035_s1 + $0x90] ss:$8 sps:$4 sm:$0xff]   ;;  %v1384_v40 = vld [vmem:[%s2035_s1 + $0xa4] ss:$8 sps:$4 sm:$0xff]  }
   0xe   :  { %v1380_v37 = vld [vmem:[%s2035_s1 + $0x294] ss:$8 sps:$4 sm:$0xff]   ;;  %v1383_v39 = vld [vmem:[%s2035_s1 + $0x290] ss:$8 sps:$4 sm:$0xff]   ;;  %v1386_v41 = vld [vmem:[%s2035_s1 + $0x2a4] ss:$8 sps:$4 sm:$0xff]  }
   0xf   :  { %935 = vmatpush1.bf16.msra.mxu1 %v1346_v14  ;;  %v1388_v42 = vld [vmem:[%s2035_s1 + $0xa0] ss:$8 sps:$4 sm:$0xff]   ;;  %v1390_v44 = vld [vmem:[%s2035_s1 + $0xb4] ss:$8 sps:$4 sm:$0xff]   ;;  %v1394_v47 = vld [vmem:[%s2035_s1 + $0xb0] ss:$8 sps:$4 sm:$0xff]  }
  0x10   :  { %1017 = vmatpush1.bf16.msra.mxu0 %v1347_v15  ;;  %936 = vmatprep.subr.bf16.mxu1 %v1348_v16  ;;  %v1389_v43 = vld [vmem:[%s2035_s1 + $0x2a0] ss:$8 sps:$4 sm:$0xff]   ;;  %v1392_v45 = vld [vmem:[%s2035_s1 + $0x2b4] ss:$8 sps:$4 sm:$0xff]   ;;  %v1395_v49 = vld [vmem:[%s2035_s1 + $0x2b0] ss:$8 sps:$4 sm:$0xff]  }
  0x11   :  { %1018 = vmatprep.subr.bf16.mxu0 %v1350_v17  ;;  %v15_v46 = vld [vmem:[%s2036_s0] sm:$0xff]  ;;  %v17_v50 = vld [vmem:[%s2036_s0 + $0x10] sm:$0xff] }
  0x12   :  { %v1153_v48 = vcombine.high %v15_v46, %v15_v46  ;;  %v1396_v51 = vld [vmem:[%s2035_s1 + $0xc4] ss:$8 sps:$4 sm:$0xff]   ;;  %v1157_v53 = vcombine.high %v17_v50, %v17_v50  ;;  %v1400_v54 = vld [vmem:[%s2035_s1 + $0xc0] ss:$8 sps:$4 sm:$0xff]   ;;  %v1402_v56 = vld [vmem:[%s2035_s1 + $0xd4] ss:$8 sps:$4 sm:$0xff]   ;;  %v1152_v6 = vcombine.low %v15_v46, %v15_v46  ;;  %v1156_v7 = vcombine.low %v17_v50, %v17_v50 }
  0x13   :  { %937 = vmatpush1.bf16.msra.mxu1 %v1352_v18  ;;  %v1398_v52 = vld [vmem:[%s2035_s1 + $0x2c4] ss:$8 sps:$4 sm:$0xff]   ;;  %v1401_v55 = vld [vmem:[%s2035_s1 + $0x2c0] ss:$8 sps:$4 sm:$0xff]   ;;  %v1404_v57 = vld [vmem:[%s2035_s1 + $0x2d4] ss:$8 sps:$4 sm:$0xff]  }
  0x14   :  { %1019 = vmatpush1.bf16.msra.mxu0 %v1353_v19  ;;  %938 = vmatprep.subr.bf16.mxu1 %v1354_v20  ;;  %v1406_v58 = vld [vmem:[%s2035_s1 + $0xd0] ss:$8 sps:$4 sm:$0xff]   ;;  %v1408_v60 = vld [vmem:[%s2035_s1 + $0xe4] ss:$8 sps:$4 sm:$0xff]   ;;  %v1412_v62 = vld [vmem:[%s2035_s1 + $0xe0] ss:$8 sps:$4 sm:$0xff]  }
  0x15   :  { %1020 = vmatprep.subr.bf16.mxu0 %v1356_v21  ;;  %960 = vmatprep.mubr.bf16.mxu1 %v1153_v48  ;;  %v1407_v59 = vld [vmem:[%s2035_s1 + $0x2d0] ss:$8 sps:$4 sm:$0xff]   ;;  %v1410_v61 = vld [vmem:[%s2035_s1 + $0x2e4] ss:$8 sps:$4 sm:$0xff]   ;;  %v1413_v63 = vld [vmem:[%s2035_s1 + $0x2e0] ss:$8 sps:$4 sm:$0xff]  }
  0x16   :  { %1042 = vmatprep.mubr.bf16.mxu0 %v1157_v53  ;;  %v1414_v0 = vld [vmem:[%s2035_s1 + $0xf4] ss:$8 sps:$4 sm:$0xff]   ;;  %v1418_v2 = vld [vmem:[%s2035_s1 + $0xf0] ss:$8 sps:$4 sm:$0xff]   ;;  %v1424_v4 = vld [vmem:[%s2035_s1 + $0x104] ss:$8 sps:$4 sm:$0xff]  }
  0x17   :  { %939 = vmatpush1.bf16.msra.mxu1 %v1358_v22  ;;  %v1416_v1 = vld [vmem:[%s2035_s1 + $0x2f4] ss:$8 sps:$4 sm:$0xff]   ;;  %v1419_v3 = vld [vmem:[%s2035_s1 + $0x2f0] ss:$8 sps:$4 sm:$0xff]   ;;  %v1429_v5 = vld [vmem:[%s2035_s1 + $0x304] ss:$8 sps:$4 sm:$0xff]  }
  0x18   :  { %1021 = vmatpush1.bf16.msra.mxu0 %v1359_v23  ;;  %940 = vmatprep.subr.bf16.mxu1 %v1360_v24  ;;  %v1422_v8 = vld [vmem:[%s2035_s1 + $0x100] ss:$8 sps:$4 sm:$0xff]   ;;  %v1432_v10 = vld [vmem:[%s2035_s1 + $0x114] ss:$8 sps:$4 sm:$0xff]   ;;  %v1430_v12 = vld [vmem:[%s2035_s1 + $0x110] ss:$8 sps:$4 sm:$0xff]  }
  0x19   :  { %1022 = vmatprep.subr.bf16.mxu0 %v1362_v25  ;;  %v1427_v9 = vld [vmem:[%s2035_s1 + $0x300] ss:$8 sps:$4 sm:$0xff]   ;;  %v1435_v11 = vld [vmem:[%s2035_s1 + $0x314] ss:$8 sps:$4 sm:$0xff]   ;;  %v1433_v13 = vld [vmem:[%s2035_s1 + $0x310] ss:$8 sps:$4 sm:$0xff]  }
  0x1a   :  { %v1438_v14 = vld [vmem:[%s2035_s1 + $0x124] ss:$8 sps:$4 sm:$0xff]   ;;  %v1436_v16 = vld [vmem:[%s2035_s1 + $0x120] ss:$8 sps:$4 sm:$0xff]   ;;  %v1444_v18 = vld [vmem:[%s2035_s1 + $0x134] ss:$8 sps:$4 sm:$0xff]  }
  0x1b   :  { %941 = vmatpush1.bf16.msra.mxu1 %v1364_v26  ;;  %v1441_v15 = vld [vmem:[%s2035_s1 + $0x324] ss:$8 sps:$4 sm:$0xff]   ;;  %v1439_v17 = vld [vmem:[%s2035_s1 + $0x320] ss:$8 sps:$4 sm:$0xff]   ;;  %v1447_v19 = vld [vmem:[%s2035_s1 + $0x334] ss:$8 sps:$4 sm:$0xff]  }
  0x1c   :  { %1023 = vmatpush1.bf16.msra.mxu0 %v1365_v27  ;;  %942 = vmatprep.subr.bf16.mxu1 %v1366_v28  ;;  %v1442_v20 = vld [vmem:[%s2035_s1 + $0x130] ss:$8 sps:$4 sm:$0xff]   ;;  %v1450_v22 = vld [vmem:[%s2035_s1 + $0x144] ss:$8 sps:$4 sm:$0xff]   ;;  %v1448_v24 = vld [vmem:[%s2035_s1 + $0x140] ss:$8 sps:$4 sm:$0xff]  }
  0x1d   :  { %1024 = vmatprep.subr.bf16.mxu0 %v1368_v29  ;;  %v1445_v21 = vld [vmem:[%s2035_s1 + $0x330] ss:$8 sps:$4 sm:$0xff]   ;;  %v1453_v23 = vld [vmem:[%s2035_s1 + $0x344] ss:$8 sps:$4 sm:$0xff]   ;;  %v1451_v25 = vld [vmem:[%s2035_s1 + $0x340] ss:$8 sps:$4 sm:$0xff]  }
  0x1e   :  { %v1456_v26 = vld [vmem:[%s2035_s1 + $0x154] ss:$8 sps:$4 sm:$0xff]   ;;  %v1454_v28 = vld [vmem:[%s2035_s1 + $0x150] ss:$8 sps:$4 sm:$0xff]   ;;  %v1486_v50 = vld [vmem:[%s2035_s1 + $0x1a4] ss:$8 sps:$4 sm:$0xff]  }
  0x1f   :  { %943 = vmatpush1.bf16.msra.mxu1 %v1370_v30  ;;  %v1459_v27 = vld [vmem:[%s2035_s1 + $0x354] ss:$8 sps:$4 sm:$0xff]   ;;  %v1457_v29 = vld [vmem:[%s2035_s1 + $0x350] ss:$8 sps:$4 sm:$0xff]   ;;  %v1462_v30 = vld [vmem:[%s2035_s1 + $0x164] ss:$8 sps:$4 sm:$0xff]  }
  0x20   :  { %1025 = vmatpush1.bf16.msra.mxu0 %v1371_v31  ;;  %944 = vmatprep.subr.bf16.mxu1 %v1372_v32  ;;  %v1465_v31 = vld [vmem:[%s2035_s1 + $0x364] ss:$8 sps:$4 sm:$0xff]   ;;  %v1480_v46 = vld [vmem:[%s2035_s1 + $0x194] ss:$8 sps:$4 sm:$0xff]   ;;  %v1478_v48 = vld [vmem:[%s2035_s1 + $0x190] ss:$8 sps:$4 sm:$0xff]  }
  0x21   :  { %1026 = vmatprep.subr.bf16.mxu0 %v1374_v33  ;;  %v1849_v32 = vld [vmem:[%s2036_s0 + $0x8] sm:$0xff]  ;;  %v1854_v33 = vld [vmem:[%s2036_s0 + $0x18] sm:$0xff] }
  0x22   :  { %v1487_v53 = vld [vmem:[%s2035_s1 + $0x3a0] ss:$8 sps:$4 sm:$0xff]  }
  0x23   :  { %945 = vmatpush1.bf16.msra.mxu1 %v1376_v34  ;;  %v1460_v34 = vld [vmem:[%s2035_s1 + $0x160] ss:$8 sps:$4 sm:$0xff]  }
  0x24   :  { %1027 = vmatpush1.bf16.msra.mxu0 %v1377_v35  ;;  %946 = vmatprep.subr.bf16.mxu1 %v1378_v36  ;;  %v1463_v35 = vld [vmem:[%s2035_s1 + $0x360] ss:$8 sps:$4 sm:$0xff]   ;;  %v1155_v36 = vcombine.high %v1849_v32, %v1849_v32 }
  0x25   :  { %1028 = vmatprep.subr.bf16.mxu0 %v1380_v37  ;;  %v1159_v37 = vcombine.high %v1854_v33, %v1854_v33 }
  0x27   :  { %947 = vmatpush1.bf16.msra.mxu1 %v1382_v38  ;;  %v1468_v38 = vld [vmem:[%s2035_s1 + $0x174] ss:$8 sps:$4 sm:$0xff]  }
  0x28   :  { %1029 = vmatpush1.bf16.msra.mxu0 %v1383_v39  ;;  %948 = vmatprep.subr.bf16.mxu1 %v1384_v40  ;;  %v1471_v39 = vld [vmem:[%s2035_s1 + $0x374] ss:$8 sps:$4 sm:$0xff]   ;;  %v1466_v40 = vld [vmem:[%s2035_s1 + $0x170] ss:$8 sps:$4 sm:$0xff]  }
  0x29   :  { %1030 = vmatprep.subr.bf16.mxu0 %v1386_v41  ;;  %v1469_v41 = vld [vmem:[%s2035_s1 + $0x370] ss:$8 sps:$4 sm:$0xff]  }
  0x2b   :  { %949 = vmatpush1.bf16.msra.mxu1 %v1388_v42  ;;  %v1474_v42 = vld [vmem:[%s2035_s1 + $0x184] ss:$8 sps:$4 sm:$0xff]  }
  0x2c   :  { %1031 = vmatpush1.bf16.msra.mxu0 %v1389_v43  ;;  %950 = vmatprep.subr.bf16.mxu1 %v1390_v44  ;;  %v1477_v43 = vld [vmem:[%s2035_s1 + $0x384] ss:$8 sps:$4 sm:$0xff]   ;;  %v1472_v44 = vld [vmem:[%s2035_s1 + $0x180] ss:$8 sps:$4 sm:$0xff]  }
  0x2d   :  { %1032 = vmatprep.subr.bf16.mxu0 %v1392_v45  ;;  %v1475_v45 = vld [vmem:[%s2035_s1 + $0x380] ss:$8 sps:$4 sm:$0xff]  }
  0x2f   :  { %951 = vmatpush1.bf16.msra.mxu1 %v1394_v47  ;;  %v1483_v47 = vld [vmem:[%s2035_s1 + $0x394] ss:$8 sps:$4 sm:$0xff]  }
  0x30   :  { %1033 = vmatpush1.bf16.msra.mxu0 %v1395_v49  ;;  %952 = vmatprep.subr.bf16.mxu1 %v1396_v51  ;;  %v1481_v49 = vld [vmem:[%s2035_s1 + $0x390] ss:$8 sps:$4 sm:$0xff]   ;;  %v1489_v51 = vld [vmem:[%s2035_s1 + $0x3a4] ss:$8 sps:$4 sm:$0xff]  }
  0x31   :  { %1034 = vmatprep.subr.bf16.mxu0 %v1398_v52  ;;  %v1484_v52 = vld [vmem:[%s2035_s1 + $0x1a0] ss:$8 sps:$4 sm:$0xff]  }
  0x33   :  { %953 = vmatpush1.bf16.msra.mxu1 %v1400_v54  ;;  %v1492_v54 = vld [vmem:[%s2035_s1 + $0x1b4] ss:$8 sps:$4 sm:$0xff]  }
  0x34   :  { %1035 = vmatpush1.bf16.msra.mxu0 %v1401_v55  ;;  %954 = vmatprep.subr.bf16.mxu1 %v1402_v56  ;;  %v1495_v55 = vld [vmem:[%s2035_s1 + $0x3b4] ss:$8 sps:$4 sm:$0xff]   ;;  %v1490_v56 = vld [vmem:[%s2035_s1 + $0x1b0] ss:$8 sps:$4 sm:$0xff]  }
  0x35   :  { %1036 = vmatprep.subr.bf16.mxu0 %v1404_v57  ;;  %v1493_v57 = vld [vmem:[%s2035_s1 + $0x3b0] ss:$8 sps:$4 sm:$0xff]  }
  0x37   :  { %955 = vmatpush1.bf16.msra.mxu1 %v1406_v58  ;;  %v1498_v58 = vld [vmem:[%s2035_s1 + $0x1c4] ss:$8 sps:$4 sm:$0xff]  }
  0x38   :  { %1037 = vmatpush1.bf16.msra.mxu0 %v1407_v59  ;;  %956 = vmatprep.subr.bf16.mxu1 %v1408_v60  ;;  %v1501_v59 = vld [vmem:[%s2035_s1 + $0x3c4] ss:$8 sps:$4 sm:$0xff]   ;;  %v1496_v60 = vld [vmem:[%s2035_s1 + $0x1c0] ss:$8 sps:$4 sm:$0xff]  }
  0x39   :  { %1038 = vmatprep.subr.bf16.mxu0 %v1410_v61  ;;  %v1499_v61 = vld [vmem:[%s2035_s1 + $0x3c0] ss:$8 sps:$4 sm:$0xff]  }
  0x3b   :  { %957 = vmatpush1.bf16.msra.mxu1 %v1412_v62  ;;  %v1504_v62 = vld [vmem:[%s2035_s1 + $0x1d4] ss:$8 sps:$4 sm:$0xff]  }
  0x3c   :  { %1039 = vmatpush1.bf16.msra.mxu0 %v1413_v63  ;;  %958 = vmatprep.subr.bf16.mxu1 %v1414_v0  ;;  %v1507_v63 = vld [vmem:[%s2035_s1 + $0x3d4] ss:$8 sps:$4 sm:$0xff]   ;;  %v1502_v0 = vld [vmem:[%s2035_s1 + $0x1d0] ss:$8 sps:$4 sm:$0xff]  }
  0x3d   :  { %1040 = vmatprep.subr.bf16.mxu0 %v1416_v1  ;;  %v1505_v1 = vld [vmem:[%s2035_s1 + $0x3d0] ss:$8 sps:$4 sm:$0xff]  }
  0x3f   :  { %959 = vmatpush1.bf16.msra.mxu1 %v1418_v2  ;;  %v1510_v2 = vld [vmem:[%s2035_s1 + $0x1e4] ss:$8 sps:$4 sm:$0xff]  }
  0x40   :  { %1041 = vmatpush1.bf16.msra.mxu0 %v1419_v3  ;;  %969 = vmatprep.subr.bf16.mxu1 %v1424_v4  ;;  %v1513_v3 = vld [vmem:[%s2035_s1 + $0x3e4] ss:$8 sps:$4 sm:$0xff]   ;;  %v1508_v4 = vld [vmem:[%s2035_s1 + $0x1e0] ss:$8 sps:$4 sm:$0xff]  }
  0x41   :  { %1051 = vmatprep.subr.bf16.mxu0 %v1429_v5  ;;  %v1511_v5 = vld [vmem:[%s2035_s1 + $0x3e0] ss:$8 sps:$4 sm:$0xff]  }
  0x42   :  { %961 = vmatmul.mubr.bf16.vlgmr.msra.gmra.mrb[0].mxu1 %v1152_v6  ;;  %v1516_v6 = vld [vmem:[%s2035_s1 + $0x1f4] ss:$8 sps:$4 sm:$0xff]  }
  0x43   :  { %1043 = vmatmul.mubr.bf16.vlgmr.msra.gmra.mrb[0].mxu0 %v1156_v7  ;;  %970 = vmatpush1.bf16.msra.mxu1 %v1422_v8  ;;  %v1519_v7 = vld [vmem:[%s2035_s1 + $0x3f4] ss:$8 sps:$4 sm:$0xff]   ;;  %v1514_v8 = vld [vmem:[%s2035_s1 + $0x1f0] ss:$8 sps:$4 sm:$0xff]  }
  0x44   :  { %1052 = vmatpush1.bf16.msra.mxu0 %v1427_v9  ;;  %971 = vmatprep.subr.bf16.mxu1 %v1432_v10  ;;  %v1517_v9 = vld [vmem:[%s2035_s1 + $0x3f0] ss:$8 sps:$4 sm:$0xff]   ;;  %v1526_v10 = vld [vmem:[%s2035_s1 + $0x404] ss:$8 sps:$4 sm:$0xff]  }
  0x45   :  { %1053 = vmatprep.subr.bf16.mxu0 %v1435_v11  ;;  %1001 = vmatprep.mubr.bf16.mxu1 %v1155_v36  ;;  %v1154_v11 = vcombine.low %v1849_v32, %v1849_v32 }
  0x46   :  { %1083 = vmatprep.mubr.bf16.mxu0 %v1159_v37  ;;  %v164_v37 = vld [vmem:[%s2037_s2] sm:$0x3] }
  0x47   :  { %972 = vmatpush1.bf16.msra.mxu1 %v1430_v12  ;;  %v1158_v12 = vcombine.low %v1854_v33, %v1854_v33 }
  0x48   :  { %1054 = vmatpush1.bf16.msra.mxu0 %v1433_v13  ;;  %973 = vmatprep.subr.bf16.mxu1 %v1438_v14  ;;  %v1524_v13 = vld [vmem:[%s2035_s1 + $0x400] ss:$8 sps:$4 sm:$0xff]   ;;  %v1529_v14 = vld [vmem:[%s2035_s1 + $0x414] ss:$8 sps:$4 sm:$0xff]  }
  0x49   :  { %1055 = vmatprep.subr.bf16.mxu0 %v1441_v15  ;;  %v1527_v15 = vld [vmem:[%s2035_s1 + $0x410] ss:$8 sps:$4 sm:$0xff]  }
  0x4b   :  { %974 = vmatpush1.bf16.msra.mxu1 %v1436_v16  ;;  %v1549_v16 = vmov 0  }
  0x4c   :  { %1056 = vmatpush1.bf16.msra.mxu0 %v1439_v17  ;;  %975 = vmatprep.subr.bf16.mxu1 %v1444_v18  ;;  %v1532_v17 = vld [vmem:[%s2035_s1 + $0x424] ss:$8 sps:$4 sm:$0xff]   ;;  %v1530_v18 = vld [vmem:[%s2035_s1 + $0x420] ss:$8 sps:$4 sm:$0xff]  }
  0x4d   :  { %1057 = vmatprep.subr.bf16.mxu0 %v1447_v19  ;;  %v1535_v19 = vld [vmem:[%s2035_s1 + $0x434] ss:$8 sps:$4 sm:$0xff]  }
  0x4f   :  { %976 = vmatpush1.bf16.msra.mxu1 %v1442_v20  ;;  %v1533_v20 = vld [vmem:[%s2035_s1 + $0x430] ss:$8 sps:$4 sm:$0xff]  }
  0x50   :  { %1058 = vmatpush1.bf16.msra.mxu0 %v1445_v21  ;;  %977 = vmatprep.subr.bf16.mxu1 %v1450_v22  ;;  %v1538_v21 = vld [vmem:[%s2035_s1 + $0x444] ss:$8 sps:$4 sm:$0xff]   ;;  %v1536_v22 = vld [vmem:[%s2035_s1 + $0x440] ss:$8 sps:$4 sm:$0xff]  }
  0x51   :  { %1059 = vmatprep.subr.bf16.mxu0 %v1453_v23  ;;  %v1541_v23 = vld [vmem:[%s2035_s1 + $0x454] ss:$8 sps:$4 sm:$0xff]  }
  0x53   :  { %978 = vmatpush1.bf16.msra.mxu1 %v1448_v24  ;;  %v1539_v24 = vld [vmem:[%s2035_s1 + $0x450] ss:$8 sps:$4 sm:$0xff]  }
  0x54   :  { %1060 = vmatpush1.bf16.msra.mxu0 %v1451_v25  ;;  %979 = vmatprep.subr.bf16.mxu1 %v1456_v26  ;;  %v1544_v25 = vld [vmem:[%s2035_s1 + $0x464] ss:$8 sps:$4 sm:$0xff]   ;;  %v1542_v26 = vld [vmem:[%s2035_s1 + $0x460] ss:$8 sps:$4 sm:$0xff]  }
  0x55   :  { %1061 = vmatprep.subr.bf16.mxu0 %v1459_v27  ;;  %v1547_v27 = vld [vmem:[%s2035_s1 + $0x474] ss:$8 sps:$4 sm:$0xff]  }
  0x57   :  { %980 = vmatpush1.bf16.msra.mxu1 %v1454_v28  ;;  %v1545_v28 = vld [vmem:[%s2035_s1 + $0x470] ss:$8 sps:$4 sm:$0xff]  }
  0x58   :  { %1062 = vmatpush1.bf16.msra.mxu0 %v1457_v29  ;;  %981 = vmatprep.subr.bf16.mxu1 %v1462_v30  ;;  %v1548_v29 = vld [vmem:[%s2036_s0 + $0x20] ss:$0 sps:$4 sm:$0xff]  }
  0x59   :  { %1063 = vmatprep.subr.bf16.mxu0 %v1465_v31 }
  0x5b   :  { %982 = vmatpush1.bf16.msra.mxu1 %v1460_v34  ;;  %v166_v34 = vlaneseq }
  0x5c   :  { %1064 = vmatpush1.bf16.msra.mxu0 %v1463_v35  ;;  %983 = vmatprep.subr.bf16.mxu1 %v1468_v38 }
  0x5d   :  { %1065 = vmatprep.subr.bf16.mxu0 %v1471_v39  ;;  %v167_v35 = vshrl.u32 %v166_v34, 7 }
  0x5f   :  { %984 = vmatpush1.bf16.msra.mxu1 %v1466_v40  ;;  %v168_v36 = vsub.s32 0, %v167_v35  ;;  %v172_v38 = vsub.s32 1, %v167_v35 }
  0x60   :  { %1066 = vmatpush1.bf16.msra.mxu0 %v1469_v41  ;;  %985 = vmatprep.subr.bf16.mxu1 %v1474_v42 }
  0x61   :  { %1067 = vmatprep.subr.bf16.mxu0 %v1477_v43  ;;  %v169_v39 = vrot.slane %v164_v37, %v168_v36  ;;  %v173_v40 = vrot.slane %v164_v37, %v172_v38 }
  0x63   :  { %986 = vmatpush1.bf16.msra.mxu1 %v1472_v44 }
  0x64   :  { %1068 = vmatpush1.bf16.msra.mxu0 %v1475_v45  ;;  %987 = vmatprep.subr.bf16.mxu1 %v1480_v46 }
  0x65   :  { %1069 = vmatprep.subr.bf16.mxu0 %v1483_v47 }
  0x67   :  { %988 = vmatpush1.bf16.msra.mxu1 %v1478_v48 }
  0x68   :  { %1070 = vmatpush1.bf16.msra.mxu0 %v1481_v49  ;;  %989 = vmatprep.subr.bf16.mxu1 %v1486_v50 }
  0x69   :  { %1071 = vmatprep.subr.bf16.mxu0 %v1489_v51 }
  0x6b   :  { %990 = vmatpush1.bf16.msra.mxu1 %v1484_v52 }
  0x6c   :  { %1072 = vmatpush1.bf16.msra.mxu0 %v1487_v53  ;;  %991 = vmatprep.subr.bf16.mxu1 %v1492_v54 }
  0x6d   :  { %1073 = vmatprep.subr.bf16.mxu0 %v1495_v55 }
  0x6f   :  { %992 = vmatpush1.bf16.msra.mxu1 %v1490_v56 }
  0x70   :  { %1074 = vmatpush1.bf16.msra.mxu0 %v1493_v57  ;;  %993 = vmatprep.subr.bf16.mxu1 %v1498_v58 }
  0x71   :  { %1075 = vmatprep.subr.bf16.mxu0 %v1501_v59 }
  0x73   :  { %994 = vmatpush1.bf16.msra.mxu1 %v1496_v60 }
  0x74   :  { %1076 = vmatpush1.bf16.msra.mxu0 %v1499_v61  ;;  %995 = vmatprep.subr.bf16.mxu1 %v1504_v62 }
  0x75   :  { %1077 = vmatprep.subr.bf16.mxu0 %v1507_v63 }
  0x77   :  { %996 = vmatpush1.bf16.msra.mxu1 %v1502_v0 }
  0x78   :  { %1078 = vmatpush1.bf16.msra.mxu0 %v1505_v1  ;;  %997 = vmatprep.subr.bf16.mxu1 %v1510_v2 }
  0x79   :  { %1079 = vmatprep.subr.bf16.mxu0 %v1513_v3 }
  0x7b   :  { %998 = vmatpush1.bf16.msra.mxu1 %v1508_v4 }
  0x7c   :  { %1080 = vmatpush1.bf16.msra.mxu0 %v1511_v5  ;;  %999 = vmatprep.subr.bf16.mxu1 %v1516_v6 }
  0x7d   :  { %1081 = vmatprep.subr.bf16.mxu0 %v1519_v7 }
  0x7f   :  { %1000 = vmatpush1.bf16.msra.mxu1 %v1514_v8 }
  0x80   :  { %1082 = vmatpush1.bf16.msra.mxu0 %v1517_v9 }
  0x81   :  { %1092 = vmatprep.subr.bf16.mxu0 %v1526_v10 }
  0x82   :  { %1002 = vmatmul.mubr.bf16.vlgmr.msra.gmra.mrb[0].mxu1 %v1154_v11 }
  0x83   :  { %1084 = vmatmul.mubr.bf16.vlgmr.msra.gmra.mrb[0].mxu0 %v1158_v12 }
  0x84   :  { %1093 = vmatpush1.bf16.msra.mxu0 %v1524_v13  ;;  %1124 = vmatprep.mubr.bf16.mxu0 %v1549_v16 }
  0x85   :  { %1094 = vmatprep.subr.bf16.mxu0 %v1529_v14 }
  0x88   :  { %1095 = vmatpush1.bf16.msra.mxu0 %v1527_v15 }
  0x89   :  { %1096 = vmatprep.subr.bf16.mxu0 %v1532_v17 }
  0x8c   :  { %1097 = vmatpush1.bf16.msra.mxu0 %v1530_v18 }
  0x8d   :  { %1098 = vmatprep.subr.bf16.mxu0 %v1535_v19 }
  0x90   :  { %1099 = vmatpush1.bf16.msra.mxu0 %v1533_v20 }
  0x91   :  { %1100 = vmatprep.subr.bf16.mxu0 %v1538_v21 }
  0x94   :  { %1101 = vmatpush1.bf16.msra.mxu0 %v1536_v22 }
  0x95   :  { %1102 = vmatprep.subr.bf16.mxu0 %v1541_v23 }
  0x98   :  { %1103 = vmatpush1.bf16.msra.mxu0 %v1539_v24 }
  0x99   :  { %1104 = vmatprep.subr.bf16.mxu0 %v1544_v25 }
  0x9c   :  { %1105 = vmatpush1.bf16.msra.mxu0 %v1542_v26 }
  0x9d   :  { %1106 = vmatprep.subr.bf16.mxu0 %v1547_v27 }
  0xa0   :  { %1107 = vmatpush1.bf16.msra.mxu0 %v1545_v28 }
  0xa3   :  { %1125 = vmatmul.mubr.bf16.vlgmr.msra.gmra.mrb[0].mxu0 %v1548_v29 }
 0x155   :  { %v1003_v30 = vpop.f32.mrb[0].mxu1 }
 0x156   :  { %v1005_v31 = vpop.f32.mrb[1].mxu1  ;;  %v1307_v41 = vadd.f32 %v1003_v30, %v169_v39 }
 0x157   :  { %v1007_v32 = vpop.f32.mrb[2].mxu1  ;;  %v1309_v42 = vadd.f32 %v1005_v31, %v173_v40 }
 0x158   :  { %v1008_v33 = vpop.f32.mrb[3].mxu1 }
 0x176   :  { %v1126_v43 = vpop.f32.mrb[0].mxu0 }
 0x177   :  { %v1308_v44 = vadd.f32 %v1307_v41, %v1126_v43  ;;  %v1128_v45 = vpop.f32.mrb[1].mxu0 }
 0x178   :  { %v1310_v46 = vadd.f32 %v1309_v42, %v1128_v45  ;;  %v1130_v47 = vpop.f32.mrb[2].mxu0 }
 0x179   :  { %vm1133_vm0 = vcmp.ge.f32.partialorder %v1308_v44, 0.0  ;;  %v1135_v48 = vmul.f32 0.1, %v1308_v44  ;;  %v1131_v49 = vpop.f32.mrb[3].mxu0 }
 0x17a   :  { %vm1134_vm1 = vcmp.ge.f32.partialorder %v1310_v46, 0.0  ;;  %v1136_v50 = vmul.f32 0.1, %v1310_v46 }
 0x17b   :  { %v1137_v51 = vsel %vm1133_vm0, %v1308_v44, %v1135_v48 }
 0x17c   :  { %v1138_v52 = vsel %vm1134_vm1, %v1310_v46, %v1136_v50 }
 0x17d   :  { %v1306_v53 = vpack.c.bf16 %v1138_v52, %v1137_v51 }
 0x17f   :  { %1147 = vst [vmem:[%s2038_s3] sm:$0xff] %v1306_v53 }

// kernel: forward.15
= control target key start
LH: loop header
LB: loop body
LE: loop exit
PB: predicated region body
PF: predicated region fallthrough
CT: control target
= control target key end

     0   :  { %v702_v7 = vmov 0.0|0.0   ;;  %s980_s0 = inlined_call_operand.vmem [shape: f32[2,256], index: 0, kind: input, shape index: {}]   ;;  %s981_s1 = inlined_call_operand.vmem [shape: f32[256,64], index: 1, kind: input, shape index: {}]   ;;  %s982_s2 = inlined_call_operand.vmem [shape: f32[1,64], index: 2, kind: input, shape index: {}]   ;;  %s983_s3 = inlined_call_operand.vmem [shape: f32[64,64], index: 3, kind: input, shape index: {}]   ;;  %s984_s4 = inlined_call_operand.vmem [shape: f32[1,64], index: 4, kind: input, shape index: {}]   ;;  %s985_s5 = inlined_call_operand.vmem [shape: f32[64,64], index: 5, kind: input, shape index: {}]   ;;  %s986_s6 = inlined_call_operand.vmem [shape: f32[1,64], index: 6, kind: input, shape index: {}]   ;;  %s987_s7 = inlined_call_operand.vmem [shape: f32[64,4], index: 7, kind: input, shape index: {}]   ;;  %s988_s8 = inlined_call_operand.vmem [shape: f32[1,4], index: 8, kind: input, shape index: {}]   ;;  %s989_s9 = inlined_call_operand.hbm [shape: f32[2,4], index: 9, kind: output, shape index: {0}]   ;;  %s990_s10 = inlined_call_operand.vmem [shape: f32[2,1], index: 10, kind: output, shape index: {1}]  }
   0x1   :  { %v52_v0 = vld [vmem:[%s981_s1 + $0x80] sm:$0xff]  ;;  %v53_v1 = vld [vmem:[%s981_s1 + $0x88] sm:$0xff]  ;;  %v54_v5 = vld [vmem:[%s981_s1 + $0x90] sm:$0xff]  ;;  %634 = vmatprep.subr.bf16.mxu1 %v702_v7 }
   0x2   :  { %v36_v2 = vld [vmem:[%s981_s1] sm:$0xff]  ;;  %v602_v3 = vpack.c.bf16 %v53_v1, %v52_v0  ;;  %v37_v4 = vld [vmem:[%s981_s1 + $0x8] sm:$0xff]  ;;  %v55_v6 = vld [vmem:[%s981_s1 + $0x98] sm:$0xff] }
   0x3   :  { %v604_v8 = vpack.c.bf16 %v37_v4, %v36_v2  ;;  %v606_v9 = vpack.c.bf16 %v55_v6, %v54_v5  ;;  %v38_v10 = vld [vmem:[%s981_s1 + $0x10] sm:$0xff]  ;;  %v39_v11 = vld [vmem:[%s981_s1 + $0x18] sm:$0xff]  ;;  %v56_v12 = vld [vmem:[%s981_s1 + $0xa0] sm:$0xff] }
   0x4   :  { %603 = vmatprep.subr.bf16.mxu0 %v602_v3  ;;  %v57_v13 = vld [vmem:[%s981_s1 + $0xa8] sm:$0xff]  ;;  %v608_v14 = vpack.c.bf16 %v39_v11, %v38_v10  ;;  %v40_v16 = vld [vmem:[%s981_s1 + $0x20] sm:$0xff]  ;;  %v58_v18 = vld [vmem:[%s981_s1 + $0xb0] sm:$0xff] }
   0x5   :  { %605 = vmatpush3.bf16.msra.mxu0 %v604_v8  ;;  %v610_v15 = vpack.c.bf16 %v57_v13, %v56_v12  ;;  %v41_v17 = vld [vmem:[%s981_s1 + $0x28] sm:$0xff]  ;;  %v59_v19 = vld [vmem:[%s981_s1 + $0xb8] sm:$0xff]  ;;  %v42_v22 = vld [vmem:[%s981_s1 + $0x30] sm:$0xff] }
   0x6   :  { %607 = vmatprep.subr.bf16.mxu0 %v606_v9  ;;  %v612_v20 = vpack.c.bf16 %v41_v17, %v40_v16  ;;  %v614_v21 = vpack.c.bf16 %v59_v19, %v58_v18  ;;  %v43_v23 = vld [vmem:[%s981_s1 + $0x38] sm:$0xff]  ;;  %v60_v24 = vld [vmem:[%s981_s1 + $0xc0] sm:$0xff]  ;;  %v61_v25 = vld [vmem:[%s981_s1 + $0xc8] sm:$0xff] }
   0x7   :  { %v475_v26 = vld.sshfl [vmem:[%s980_s0] sm:$0x33 pattern:$0x76325410]  ;;  %v158_v29 = vld [vmem:[%s983_s3 + $0x8] sm:$0xff]  ;;  %v159_v30 = vld [vmem:[%s983_s3 + $0x10] sm:$0xff]  ;;  %v616_v31 = vpack.c.bf16 %v43_v23, %v42_v22 }
   0x8   :  { %v83_v27 = vcombine.high %v475_v26, %v475_v26  ;;  %v157_v28 = vld [vmem:[%s983_s3] sm:$0xff]  ;;  %v160_v33 = vld [vmem:[%s983_s3 + $0x18] sm:$0xff] }
   0x9   :  { %609 = vmatpush3.bf16.msra.mxu0 %v608_v14  ;;  %v635_v32 = vpack.c.bf16 %v158_v29, %v157_v28 }
   0xa   :  { %611 = vmatprep.subr.bf16.mxu0 %v610_v15 }
   0xd   :  { %613 = vmatpush3.bf16.msra.mxu0 %v612_v20 }
   0xe   :  { %16 = vsyncpa [#allocation3], 0  ;;  %615 = vmatprep.subr.bf16.mxu0 %v614_v21  ;;  %v618_v34 = vpack.c.bf16 %v61_v25, %v60_v24  ;;  %v44_v35 = vld [vmem:[%s981_s1 + $0x40] sm:$0xff]  ;;  %v45_v36 = vld [vmem:[%s981_s1 + $0x48] sm:$0xff]  ;;  %150 = vmatprep.mubr.f32.mxu0 %v83_v27  ;;  %v638_v39 = vpack.c.bf16 %v160_v33, %v159_v30  ;;  %vm703_vm0 = vmmov 0   ;;  %v704_v63 = vmov 0.0  }
   0xf   :  { %v62_v37 = vld [vmem:[%s981_s1 + $0xd0] sm:$0xff]  ;;  %v63_v38 = vld [vmem:[%s981_s1 + $0xd8] sm:$0xff]  ;;  %636 = vmatpush3.bf16.msra.mxu1 %v635_v32  ;;  %v620_v40 = vpack.c.bf16 %v45_v36, %v44_v35  ;;  %v64_v44 = vld [vmem:[%s981_s1 + $0xe0] sm:$0xff]  ;;  %561 = vmatprep.mubr.msk.f32.mxu1 %vm703_vm0, %v704_v63  ;;  %vm172_vm1 = vcmask 523264   ;;  %vm434_vm5 = vcmask 25600   ;;  %vm454_vm6 = vcmask 1024  }
  0x10   :  { %637 = vmatprep.subr.bf16.mxu1 %v702_v7  ;;  %v622_v41 = vpack.c.bf16 %v63_v38, %v62_v37  ;;  %v46_v42 = vld [vmem:[%s981_s1 + $0x50] sm:$0xff]  ;;  %v47_v43 = vld [vmem:[%s981_s1 + $0x58] sm:$0xff]  ;;  %v65_v45 = vld [vmem:[%s981_s1 + $0xe8] sm:$0xff] }
  0x11   :  { %617 = vmatpush3.bf16.msra.mxu0 %v616_v31  ;;  %v624_v46 = vpack.c.bf16 %v47_v43, %v46_v42  ;;  %v626_v47 = vpack.c.bf16 %v65_v45, %v64_v44  ;;  %v48_v48 = vld [vmem:[%s981_s1 + $0x60] sm:$0xff]  ;;  %v49_v49 = vld [vmem:[%s981_s1 + $0x68] sm:$0xff]  ;;  %v66_v50 = vld [vmem:[%s981_s1 + $0xf0] sm:$0xff]  ;;  %v424_v42 = vlaneseq }
  0x12   :  { %619 = vmatprep.subr.bf16.mxu0 %v618_v34  ;;  %v67_v51 = vld [vmem:[%s981_s1 + $0xf8] sm:$0xff]  ;;  %v628_v52 = vpack.c.bf16 %v49_v49, %v48_v48  ;;  %v50_v54 = vld [vmem:[%s981_s1 + $0x70] sm:$0xff]  ;;  %v161_v57 = vld [vmem:[%s983_s3 + $0x20] sm:$0xff] }
  0x13   :  { %639 = vmatpush3.bf16.msra.mxu1 %v638_v39  ;;  %v630_v53 = vpack.c.bf16 %v67_v51, %v66_v50  ;;  %v51_v55 = vld [vmem:[%s981_s1 + $0x78] sm:$0xff]  ;;  %v162_v58 = vld [vmem:[%s983_s3 + $0x28] sm:$0xff]  ;;  %v163_v60 = vld [vmem:[%s983_s3 + $0x30] sm:$0xff] }
  0x14   :  { %640 = vmatprep.subr.bf16.mxu1 %v702_v7  ;;  %v632_v56 = vpack.c.bf16 %v51_v55, %v50_v54  ;;  %v641_v59 = vpack.c.bf16 %v162_v58, %v161_v57  ;;  %v164_v61 = vld [vmem:[%s983_s3 + $0x38] sm:$0xff]  ;;  %v474_v1 = vld [vmem:[%s982_s2] ss:$0 sm:$0xff]  ;;  %v248_v5 = vld [vmem:[%s985_s5 + $0x8] sm:$0xff] }
  0x15   :  { %621 = vmatpush3.bf16.msra.mxu0 %v620_v40  ;;  %v644_v62 = vpack.c.bf16 %v164_v61, %v163_v60  ;;  %v247_v4 = vld [vmem:[%s985_s5] sm:$0xff]  ;;  %v249_v10 = vld [vmem:[%s985_s5 + $0x10] sm:$0xff]  ;;  %v250_v11 = vld [vmem:[%s985_s5 + $0x18] sm:$0xff] }
  0x16   :  { %623 = vmatprep.subr.bf16.mxu0 %v622_v41  ;;  %v647_v8 = vpack.c.bf16 %v248_v5, %v247_v4  ;;  %v650_v12 = vpack.c.bf16 %v250_v11, %v249_v10  ;;  %v251_v13 = vld [vmem:[%s985_s5 + $0x20] sm:$0xff]  ;;  %v252_v14 = vld [vmem:[%s985_s5 + $0x28] sm:$0xff]  ;;  %v253_v16 = vld [vmem:[%s985_s5 + $0x30] sm:$0xff] }
  0x17   :  { %642 = vmatpush3.bf16.msra.mxu1 %v641_v59  ;;  %v653_v15 = vpack.c.bf16 %v252_v14, %v251_v13  ;;  %v254_v17 = vld [vmem:[%s985_s5 + $0x38] sm:$0xff]  ;;  %v336_v19 = vld [vmem:[%s987_s7] sm:$0xff]  ;;  %v337_v20 = vld [vmem:[%s987_s7 + $0x8] sm:$0xff] }
  0x18   :  { %643 = vmatprep.subr.bf16.mxu1 %v702_v7  ;;  %v656_v18 = vpack.c.bf16 %v254_v17, %v253_v16  ;;  %v338_v21 = vld [vmem:[%s987_s7 + $0x10] sm:$0xff]  ;;  %v659_v22 = vpack.c.bf16 %v337_v20, %v336_v19  ;;  %v339_v23 = vld [vmem:[%s987_s7 + $0x18] sm:$0xff]  ;;  %v340_v25 = vld [vmem:[%s987_s7 + $0x20] sm:$0xff] }
  0x19   :  { %625 = vmatpush3.bf16.msra.mxu0 %v624_v46  ;;  %v662_v24 = vpack.c.bf16 %v339_v23, %v338_v21  ;;  %v476_v28 = vld [vmem:[%s984_s4] ss:$0 sm:$0xff]  ;;  %v342_v33 = vld [vmem:[%s987_s7 + $0x30] sm:$0xff]  ;;  %v343_v34 = vld [vmem:[%s987_s7 + $0x38] sm:$0xff]  ;;  %v425_v46 = vand.u32 127, %v424_v42 }
  0x1a   :  { %627 = vmatprep.subr.bf16.mxu0 %v626_v47  ;;  %v668_v35 = vpack.c.bf16 %v343_v34, %v342_v33  ;;  %v480_v40 = vld [vmem:[%s988_s8] ss:$0 sm:$0xff]  ;;  %s705_s8 = smov [#allocation2]  }
  0x1b   :  { %645 = vmatpush3.bf16.msra.mxu1 %v644_v62  ;;  %vm426_vm2 = vcmp.eq.s32.totalorder %v425_v46, 2  ;;  %vm431_vm3 = vcmp.lt.s32.totalorder %v425_v46, 3  ;;  %vm449_vm4 = vcmp.eq.s32.totalorder %v425_v46, 3  ;;  %s462_s23 = sshll.u32 %s705_s8, 4  ;;  %s463_s23 = int_to_ptr.vmem [resolvable:$true] %s462_s23 }
  0x1c   :  { %646 = vmatprep.subr.bf16.mxu1 %v702_v7  ;;  %s678_s24 = scalar_lea.vmem %s463_s23, 32  ;;  %p683_p1 = scmp.lt.s32.totalorder %s463_s23, %s463_s23 }
  0x1d   :  { %629 = vmatpush3.bf16.msra.mxu0 %v628_v52  ;;  %p679_p0 = scmp.ne.s32.totalorder %s463_s23, %s678_s24  ;;  %p684_p2 = scmp.lt.s32.totalorder %s678_s24, %s678_s24 }
  0x1e   :  { %631 = vmatprep.subr.bf16.mxu0 %v630_v53 }
  0x1f   :  { %p685_p3 = por %p684_p2, %p683_p1 }
  0x21   :  { %633 = vmatpush3.bf16.msra.mxu0 %v632_v56  ;;  %p686_p4 = pnand %p685_p3, %p679_p0 }
  0x22   :  { %658 = vmatprep.subr.bf16.mxu0 %v702_v7 }
  0x24   :  { %151 = vmatmul.mubr.f32.vlgmr.msra.gmra.mrb[0].mxu0 %v475_v26  ;;  %v341_v26 = vld [vmem:[%s987_s7 + $0x28] sm:$0xff] }
  0x25   :  { %599 = vmatprep.mubr.msk.f32.mxu0 %vm703_vm0, %v704_v63  ;;  %660 = vmatpush3.bf16.msra.mxu0 %v659_v22  ;;  %v665_v27 = vpack.c.bf16 %v341_v26, %v340_v25 }
  0x26   :  { %661 = vmatprep.subr.bf16.mxu0 %v702_v7 }
  0x29   :  { %663 = vmatpush3.bf16.msra.mxu0 %v662_v24 }
  0x2a   :  { %664 = vmatprep.subr.bf16.mxu0 %v702_v7 }
  0x2d   :  { %666 = vmatpush3.bf16.msra.mxu0 %v665_v27 }
  0x2e   :  { %667 = vmatprep.subr.bf16.mxu0 %v702_v7 }
  0x31   :  { %669 = vmatpush3.bf16.msra.mxu0 %v668_v35 }
  0xf7   :  { %v515_v0 = vpop.f32.mrb[0].mxu0 }
  0xf8   :  { %v516_v2 = vpop.f32.mrb[1].mxu0 }
  0xf9   :  { %v517_v3 = vadd.f32 %v516_v2, %v515_v0 }
  0xfb   :  { %v153_v6 = vadd.f32 %v517_v3, %v474_v1 }
  0xfd   :  { %v156_v9 = vmax.f32 %v153_v6, 0.0 }
  0xff   :  { %562 = vmatmul.mubr.msk.f32.vlgmr.msra.gmra.mrb[0].mxu1 %vm172_vm1, %v156_v9 }
 0x100   :  { %648 = vmatpush3.bf16.msra.mxu1 %v647_v8  ;;  %580 = vmatprep.mubr.msk.f32.mxu1 %vm703_vm0, %v704_v63 }
 0x101   :  { %649 = vmatprep.subr.bf16.mxu1 %v702_v7 }
 0x104   :  { %651 = vmatpush3.bf16.msra.mxu1 %v650_v12 }
 0x105   :  { %652 = vmatprep.subr.bf16.mxu1 %v702_v7 }
 0x108   :  { %654 = vmatpush3.bf16.msra.mxu1 %v653_v15 }
 0x109   :  { %655 = vmatprep.subr.bf16.mxu1 %v702_v7  ;;  %v478_v7 = vld [vmem:[%s986_s6] ss:$0 sm:$0xff] }
 0x10c   :  { %657 = vmatpush3.bf16.msra.mxu1 %v656_v18 }
 0x1d2   :  { %v242_v29 = vpop.f32.mrb[0].mxu1 }
 0x1d3   :  { %v243_v30 = vadd.f32 %v476_v28, %v242_v29  ;;  %v563_v31 = vpop.f32.mrb[1].mxu1 }
 0x1d5   :  { %v246_v32 = vmax.f32 %v243_v30, 0.0 }
 0x1d7   :  { %581 = vmatmul.mubr.msk.f32.vlgmr.msra.gmra.mrb[2].mxu1 %vm172_vm1, %v246_v32 }
 0x2aa   :  { %v331_v36 = vpop.f32.mrb[2].mxu1 }
 0x2ab   :  { %v332_v37 = vadd.f32 %v478_v7, %v331_v36  ;;  %v582_v38 = vpop.f32.mrb[3].mxu1 }
 0x2ad   :  { %v335_v39 = vmax.f32 %v332_v37, 0.0 }
 0x2af   :  { %600 = vmatmul.mubr.msk.f32.vlgmr.msra.gmra.mrb[2].mxu0 %vm172_vm1, %v335_v39 }
 0x382   :  { %v420_v41 = vpop.f32.mrb[2].mxu0 }
 0x383   :  { %v421_v43 = vadd.f32 %v480_v40, %v420_v41  ;;  %v601_v44 = vpop.f32.mrb[3].mxu0 }
 0x385   :  { %v427_v45 = vand.u32 2147483647, %v421_v43 }
 0x387   :  { %v428_v47 = vsub.f32 0.0, %v427_v45  ;;  %v450_v53 = vsel %vm449_vm4, %v427_v45, 0.0 }
 0x388   :  { %v451_v54 = vsel %vm434_vm5, %v450_v53, 0.0 }
 0x389   :  { %v482_v48 = vadd.f32 -0.1, %v428_v47 }
 0x38b   :  { %v430_v49 = vsel %vm426_vm2, %v482_v48, %v421_v43 }
 0x38c   :  { %v432_v50 = vmul.f32 %v430_v49, %v430_v49 }
 0x38e   :  { %v433_v51 = vsel %vm431_vm3, %v432_v50, 0.0 }
 0x38f   :  { %v435_v52 = vsel %vm434_vm5, %v433_v51, 0.0 }
 0x390   :  { %436 = vadd.xlane.f32.xlu0 %v435_v52 }
 0x394   :  { %452 = vadd.xlane.f32.xlu0 %v451_v54 }
 0x41d   :  { %v437_v55 = vpop.xlane.xlu0 %436 }
 0x41e   :  { %674 = vrsqrt.f32 %v437_v55  ;;  %vm440_vm7 = vcmp.eq.f32.partialorder %v437_v55, inf  ;;  %v443_v59 = vand.u32 2147483648, %v437_v55  ;;  %vm442_vm8 = vcmp.eq.f32.partialorder %v437_v55, 0.0 }
 0x421   :  { %v453_v56 = vpop.xlane.xlu0 %452 }
 0x422   :  { %455 = vst.msk [vmem:[%s990_s10] sm:$0x3] %vm454_vm6, %v453_v56 }
 0x428   :  { %v675_v57 = vpop.eup %674 }
 0x429   :  { %v439_v58 = vmul.f32 %v675_v57, %v437_v55 }
 0x42b   :  { %v441_v60 = vsel %vm440_vm7, %v437_v55, %v439_v58 }
 0x42c   :  { %v444_v61 = vsel %vm442_vm8, %v443_v59, %v441_v60 }
 0x42d   :  { %v445_v62 = vmax.f32 %v444_v61, 1e-12 }
 0x42f   :  { %676 = vrcp.f32 %v445_v62 }
 0x439   :  { %v677_v63 = vpop.eup %676 }
 0x43a   :  { %v447_v0 = vmul.f32 %v677_v63, %v430_v49 }
 0x43c   :  { %448 = vst.msk [vmem:[#allocation2] sm:$0x3] %vm434_vm5, %v447_v0 }
 0x43d   :  { %689 = shalt.err (!%p686_p4)
}
 0x43e   :  { %s690_s26 = scalar_lea.hbm %s989_s9, 32 }
 0x43f   :  { %p691_p5 = scmp.ne.s32.totalorder %s989_s9, %s690_s26  ;;  %p694_p6 = scmp.lt.u32.totalorder %s690_s26, %s989_s9 }
 0x441   :  { %p696_p7 = pnand %p694_p6, %p691_p5 }
 0x443   :  { %699 = shalt.err (!%p696_p7)
}
 0x444   :  { %465 = dma.vmem_to_hbm [thread:$0]  %s463_s23, 32, %s989_s9, [#allocation3]  }
 0x445   :  { %700 = dma.done.wait [#allocation3], 32  }
 0x446   :  { %701 = vsyncadd [#allocation3], 4294967264 }
 0x447   :  { %473 = vsyncpa [#allocation3], 1 }

// kernel: forward.14
= control target key start
LH: loop header
LB: loop body
LE: loop exit
PB: predicated region body
PF: predicated region fallthrough
CT: control target
= control target key end

     0   :  { %s3357_s12 = smov 0   ;;  %s3359_s13 = smov 0   ;;  %s4318_s0 = inlined_call_operand.vmem [shape: bf16[2,8,2304], index: 0, kind: input, shape index: {}]   ;;  %s4319_s1 = inlined_call_operand.vmem [shape: bf16[2304,256], index: 1, kind: input, shape index: {}]   ;;  %s4320_s2 = inlined_call_operand.vmem [shape: f32[1,256], index: 2, kind: input, shape index: {}]   ;;  %s4321_s3 = inlined_call_operand.vmem [shape: f32[2,8,256], index: 3, kind: output, shape index: {}]  }
   0x1   :  { %s3361_s14 = smov 0  }
   0x2 LB: > { %s25_s15 = sadd.s32 1, %s3331_s13  ;;  %p2492_p0 = scmp.ge.s32.totalorder %s3335_s14, 1  ;;  %s3335_s14 = sphi %s3361_s14, %s13_s14   ;;  %s3331_s13 = sphi %s3359_s13, %s4323_s13   ;;  %s3327_s12 = sphi %s3357_s12, %s4322_s12  }
   0x3   : > { %p27_p1 = scmp.ge.s32.totalorder %s25_s15, 2  ;;  %p155_p2 = scmp.lt.s32.totalorder %s3335_s14, 3 }
   0x5   : > { %s4325_s15 = smov (%p27_p1, %s25_s15), 0  ;;  %p156_p3 = pnand %p2492_p0, %p155_p2 }
   0x6   : > { %v2863_v0 = vld [vmem:[%s4319_s1 + $0x4] ss:$8 sps:$4 sm:$0xff] (!%p156_p3)   ;;  %v2867_v2 = vld [vmem:[%s4319_s1] ss:$8 sps:$4 sm:$0xff] (!%p156_p3)   ;;  %v2869_v4 = vld [vmem:[%s4319_s1 + $0x14] ss:$8 sps:$4 sm:$0xff] (!%p156_p3)  }
   0x7   : > { %159 = sbr.rel (%p156_p3) target bundleno = 560 (0x230), region = 32  ;;  %v2865_v1 = vld [vmem:[%s4319_s1 + $0x404] ss:$8 sps:$4 sm:$0xff] (!%p156_p3)   ;;  %2015 = vmatprep.subr.bf16.mxu1 (!%p156_p3), %v2863_v0  ;;  %v2868_v3 = vld [vmem:[%s4319_s1 + $0x400] ss:$8 sps:$4 sm:$0xff] (!%p156_p3)   ;;  %p183_p4 = scmp.lt.s32.totalorder (!%p156_p3), %s3327_s12, 1 }
   0x8   : > { %2179 = vmatprep.subr.bf16.mxu0 (!%p156_p3), %v2865_v1  ;;  %2016 = vmatpush1.bf16.msra.mxu1 (!%p156_p3), %v2867_v2  ;;  %v2871_v5 = vld [vmem:[%s4319_s1 + $0x414] ss:$8 sps:$4 sm:$0xff] (!%p156_p3)   ;;  %v2873_v6 = vld [vmem:[%s4319_s1 + $0x10] ss:$8 sps:$4 sm:$0xff] (!%p156_p3)   ;;  %v2875_v8 = vld [vmem:[%s4319_s1 + $0x24] ss:$8 sps:$4 sm:$0xff] (!%p156_p3)  }
   0x9   : > { %2180 = vmatpush1.bf16.msra.mxu0 (!%p156_p3), %v2868_v3  ;;  %2017 = vmatprep.subr.bf16.mxu1 (!%p156_p3), %v2869_v4  ;;  %v2874_v7 = vld [vmem:[%s4319_s1 + $0x410] ss:$8 sps:$4 sm:$0xff] (!%p156_p3)   ;;  %v2877_v9 = vld [vmem:[%s4319_s1 + $0x424] ss:$8 sps:$4 sm:$0xff] (!%p156_p3)   ;;  %v2879_v10 = vld [vmem:[%s4319_s1 + $0x20] ss:$8 sps:$4 sm:$0xff] (!%p156_p3)  }
   0xa   : > { %2181 = vmatprep.subr.bf16.mxu0 (!%p156_p3), %v2871_v5  ;;  %v2880_v11 = vld [vmem:[%s4319_s1 + $0x420] ss:$8 sps:$4 sm:$0xff] (!%p156_p3)   ;;  %v2881_v12 = vld [vmem:[%s4319_s1 + $0x34] ss:$8 sps:$4 sm:$0xff] (!%p156_p3)   ;;  %v2885_v14 = vld [vmem:[%s4319_s1 + $0x30] ss:$8 sps:$4 sm:$0xff] (!%p156_p3)  }
   0xb   : > { %v2883_v13 = vld [vmem:[%s4319_s1 + $0x434] ss:$8 sps:$4 sm:$0xff] (!%p156_p3)   ;;  %v2886_v15 = vld [vmem:[%s4319_s1 + $0x430] ss:$8 sps:$4 sm:$0xff] (!%p156_p3)   ;;  %v2887_v16 = vld [vmem:[%s4319_s1 + $0x44] ss:$8 sps:$4 sm:$0xff] (!%p156_p3)  }
   0xc   : > { %2018 = vmatpush1.bf16.msra.mxu1 (!%p156_p3), %v2873_v6  ;;  %v2889_v17 = vld [vmem:[%s4319_s1 + $0x444] ss:$8 sps:$4 sm:$0xff] (!%p156_p3)   ;;  %v2891_v18 = vld [vmem:[%s4319_s1 + $0x40] ss:$8 sps:$4 sm:$0xff] (!%p156_p3)   ;;  %v2893_v20 = vld [vmem:[%s4319_s1 + $0x54] ss:$8 sps:$4 sm:$0xff] (!%p156_p3)  }
   0xd   : > { %2182 = vmatpush1.bf16.msra.mxu0 (!%p156_p3), %v2874_v7  ;;  %2019 = vmatprep.subr.bf16.mxu1 (!%p156_p3), %v2875_v8  ;;  %v2892_v19 = vld [vmem:[%s4319_s1 + $0x440] ss:$8 sps:$4 sm:$0xff] (!%p156_p3)   ;;  %v2895_v21 = vld [vmem:[%s4319_s1 + $0x454] ss:$8 sps:$4 sm:$0xff] (!%p156_p3)   ;;  %v2897_v22 = vld [vmem:[%s4319_s1 + $0x50] ss:$8 sps:$4 sm:$0xff] (!%p156_p3)  }
   0xe   : > { %2183 = vmatprep.subr.bf16.mxu0 %v2877_v9  ;;  %v2898_v23 = vld [vmem:[%s4319_s1 + $0x450] ss:$8 sps:$4 sm:$0xff]   ;;  %v2899_v24 = vld [vmem:[%s4319_s1 + $0x64] ss:$8 sps:$4 sm:$0xff]   ;;  %v2903_v26 = vld [vmem:[%s4319_s1 + $0x60] ss:$8 sps:$4 sm:$0xff]  }
   0xf   : > { %v2901_v25 = vld [vmem:[%s4319_s1 + $0x464] ss:$8 sps:$4 sm:$0xff]   ;;  %v2904_v27 = vld [vmem:[%s4319_s1 + $0x460] ss:$8 sps:$4 sm:$0xff]   ;;  %v2905_v28 = vld [vmem:[%s4319_s1 + $0x74] ss:$8 sps:$4 sm:$0xff]  }
  0x10   : > { %2020 = vmatpush1.bf16.msra.mxu1 %v2879_v10  ;;  %v2907_v29 = vld [vmem:[%s4319_s1 + $0x474] ss:$8 sps:$4 sm:$0xff]   ;;  %v2909_v30 = vld [vmem:[%s4319_s1 + $0x70] ss:$8 sps:$4 sm:$0xff]   ;;  %v2911_v32 = vld [vmem:[%s4319_s1 + $0x84] ss:$8 sps:$4 sm:$0xff]  }
  0x11   : > { %2184 = vmatpush1.bf16.msra.mxu0 %v2880_v11  ;;  %2021 = vmatprep.subr.bf16.mxu1 %v2881_v12  ;;  %v2910_v31 = vld [vmem:[%s4319_s1 + $0x470] ss:$8 sps:$4 sm:$0xff]   ;;  %v2913_v33 = vld [vmem:[%s4319_s1 + $0x484] ss:$8 sps:$4 sm:$0xff]   ;;  %v2915_v34 = vld [vmem:[%s4319_s1 + $0x80] ss:$8 sps:$4 sm:$0xff]  }
  0x12   : > { %2185 = vmatprep.subr.bf16.mxu0 %v2883_v13  ;;  %v2916_v35 = vld [vmem:[%s4319_s1 + $0x480] ss:$8 sps:$4 sm:$0xff]   ;;  %s4327_s12 = smov (!%p183_p4, %s3327_s12), 1  ;;  %v2917_v36 = vld [vmem:[%s4319_s1 + $0x94] ss:$8 sps:$4 sm:$0xff]  }
  0x13   : > { %v2919_v37 = vld [vmem:[%s4319_s1 + $0x494] ss:$8 sps:$4 sm:$0xff]   ;;  %v2921_v38 = vld [vmem:[%s4319_s1 + $0x90] ss:$8 sps:$4 sm:$0xff]   ;;  %s2837_s25 = smul.u32 72, %s4327_s12  ;;  %s2804_s19 = sshll.u32 %s4327_s12, 4 }
  0x14   : > { %2022 = vmatpush1.bf16.msra.mxu1 %v2885_v14  ;;  %v2922_v39 = vld [vmem:[%s4319_s1 + $0x490] ss:$8 sps:$4 sm:$0xff]   ;;  %v2923_v40 = vld [vmem:[%s4319_s1 + $0xa4] ss:$8 sps:$4 sm:$0xff]   ;;  %v2927_v42 = vld [vmem:[%s4319_s1 + $0xa0] ss:$8 sps:$4 sm:$0xff]   ;;  %s196_s22 = scalar_lea.vmem %s4321_s3, %s2804_s19 }
  0x15   : > { %2186 = vmatpush1.bf16.msra.mxu0 %v2886_v15  ;;  %2023 = vmatprep.subr.bf16.mxu1 %v2887_v16  ;;  %v2925_v41 = vld [vmem:[%s4319_s1 + $0x4a4] ss:$8 sps:$4 sm:$0xff]   ;;  %v2928_v43 = vld [vmem:[%s4319_s1 + $0x4a0] ss:$8 sps:$4 sm:$0xff]   ;;  %s3517_s11 = scalar_lea.vmem %s4318_s0, %s2837_s25  ;;  %v2929_v44 = vld [vmem:[%s4319_s1 + $0xb4] ss:$8 sps:$4 sm:$0xff]  }
  0x16   : > { %2187 = vmatprep.subr.bf16.mxu0 %v2889_v17  ;;  %v2931_v45 = vld [vmem:[%s4319_s1 + $0x4b4] ss:$8 sps:$4 sm:$0xff]   ;;  %v203_v46 = vld [vmem:[%s3517_s11] sm:$0xff]  ;;  %v2933_v47 = vld [vmem:[%s4319_s1 + $0xb0] ss:$8 sps:$4 sm:$0xff]  }
  0x17   : > { %v2497_v48 = vcombine.high %v203_v46, %v203_v46  ;;  %v2934_v49 = vld [vmem:[%s4319_s1 + $0x4b0] ss:$8 sps:$4 sm:$0xff]   ;;  %v207_v50 = vld [vmem:[%s3517_s11 + $0x20] sm:$0xff]  ;;  %v2941_v56 = vld [vmem:[%s4319_s1 + $0xd4] ss:$8 sps:$4 sm:$0xff]   ;;  %v2496_v6 = vcombine.low %v203_v46, %v203_v46 }
  0x18   : > { %2024 = vmatpush1.bf16.msra.mxu1 %v2891_v18  ;;  %v2935_v51 = vld [vmem:[%s4319_s1 + $0xc4] ss:$8 sps:$4 sm:$0xff]   ;;  %v2505_v53 = vcombine.high %v207_v50, %v207_v50  ;;  %v2939_v54 = vld [vmem:[%s4319_s1 + $0xc0] ss:$8 sps:$4 sm:$0xff]   ;;  %v2943_v57 = vld [vmem:[%s4319_s1 + $0x4d4] ss:$8 sps:$4 sm:$0xff]   ;;  %v2504_v7 = vcombine.low %v207_v50, %v207_v50 }
  0x19   : > { %2188 = vmatpush1.bf16.msra.mxu0 %v2892_v19  ;;  %2025 = vmatprep.subr.bf16.mxu1 %v2893_v20  ;;  %v2937_v52 = vld [vmem:[%s4319_s1 + $0x4c4] ss:$8 sps:$4 sm:$0xff]   ;;  %v2940_v55 = vld [vmem:[%s4319_s1 + $0x4c0] ss:$8 sps:$4 sm:$0xff]   ;;  %v2945_v58 = vld [vmem:[%s4319_s1 + $0xd0] ss:$8 sps:$4 sm:$0xff]  }
  0x1a   : > { %2189 = vmatprep.subr.bf16.mxu0 %v2895_v21  ;;  %2047 = vmatprep.mubr.bf16.mxu1 %v2497_v48  ;;  %v2946_v59 = vld [vmem:[%s4319_s1 + $0x4d0] ss:$8 sps:$4 sm:$0xff]   ;;  %v2947_v60 = vld [vmem:[%s4319_s1 + $0xe4] ss:$8 sps:$4 sm:$0xff]   ;;  %v2951_v62 = vld [vmem:[%s4319_s1 + $0xe0] ss:$8 sps:$4 sm:$0xff]  }
  0x1b   : > { %2211 = vmatprep.mubr.bf16.mxu0 %v2505_v53  ;;  %v2949_v61 = vld [vmem:[%s4319_s1 + $0x4e4] ss:$8 sps:$4 sm:$0xff]   ;;  %v2952_v63 = vld [vmem:[%s4319_s1 + $0x4e0] ss:$8 sps:$4 sm:$0xff]   ;;  %v2953_v0 = vld [vmem:[%s4319_s1 + $0xf4] ss:$8 sps:$4 sm:$0xff]  }
  0x1c   : > { %2026 = vmatpush1.bf16.msra.mxu1 %v2897_v22  ;;  %v2955_v1 = vld [vmem:[%s4319_s1 + $0x4f4] ss:$8 sps:$4 sm:$0xff]   ;;  %v2957_v2 = vld [vmem:[%s4319_s1 + $0xf0] ss:$8 sps:$4 sm:$0xff]   ;;  %v2963_v4 = vld [vmem:[%s4319_s1 + $0x104] ss:$8 sps:$4 sm:$0xff]  }
  0x1d   : > { %2190 = vmatpush1.bf16.msra.mxu0 %v2898_v23  ;;  %2027 = vmatprep.subr.bf16.mxu1 %v2899_v24  ;;  %v2958_v3 = vld [vmem:[%s4319_s1 + $0x4f0] ss:$8 sps:$4 sm:$0xff]   ;;  %v2968_v5 = vld [vmem:[%s4319_s1 + $0x504] ss:$8 sps:$4 sm:$0xff]   ;;  %v2961_v8 = vld [vmem:[%s4319_s1 + $0x100] ss:$8 sps:$4 sm:$0xff]  }
  0x1e   : > { %2191 = vmatprep.subr.bf16.mxu0 %v2901_v25  ;;  %v2966_v9 = vld [vmem:[%s4319_s1 + $0x500] ss:$8 sps:$4 sm:$0xff]   ;;  %v2971_v10 = vld [vmem:[%s4319_s1 + $0x114] ss:$8 sps:$4 sm:$0xff]   ;;  %v2969_v12 = vld [vmem:[%s4319_s1 + $0x110] ss:$8 sps:$4 sm:$0xff]  }
  0x1f   : > { %v2974_v11 = vld [vmem:[%s4319_s1 + $0x514] ss:$8 sps:$4 sm:$0xff]   ;;  %v2972_v13 = vld [vmem:[%s4319_s1 + $0x510] ss:$8 sps:$4 sm:$0xff]   ;;  %v2977_v14 = vld [vmem:[%s4319_s1 + $0x124] ss:$8 sps:$4 sm:$0xff]  }
  0x20   : > { %2028 = vmatpush1.bf16.msra.mxu1 %v2903_v26  ;;  %v2980_v15 = vld [vmem:[%s4319_s1 + $0x524] ss:$8 sps:$4 sm:$0xff]   ;;  %v2975_v16 = vld [vmem:[%s4319_s1 + $0x120] ss:$8 sps:$4 sm:$0xff]   ;;  %v2983_v18 = vld [vmem:[%s4319_s1 + $0x134] ss:$8 sps:$4 sm:$0xff]  }
  0x21   : > { %2192 = vmatpush1.bf16.msra.mxu0 %v2904_v27  ;;  %2029 = vmatprep.subr.bf16.mxu1 %v2905_v28  ;;  %v2978_v17 = vld [vmem:[%s4319_s1 + $0x520] ss:$8 sps:$4 sm:$0xff]   ;;  %v2986_v19 = vld [vmem:[%s4319_s1 + $0x534] ss:$8 sps:$4 sm:$0xff]   ;;  %v2981_v20 = vld [vmem:[%s4319_s1 + $0x130] ss:$8 sps:$4 sm:$0xff]  }
  0x22   : > { %2193 = vmatprep.subr.bf16.mxu0 %v2907_v29  ;;  %v2984_v21 = vld [vmem:[%s4319_s1 + $0x530] ss:$8 sps:$4 sm:$0xff]   ;;  %v2989_v22 = vld [vmem:[%s4319_s1 + $0x144] ss:$8 sps:$4 sm:$0xff]   ;;  %v2987_v24 = vld [vmem:[%s4319_s1 + $0x140] ss:$8 sps:$4 sm:$0xff]  }
  0x23   : > { %v2992_v23 = vld [vmem:[%s4319_s1 + $0x544] ss:$8 sps:$4 sm:$0xff]   ;;  %v2990_v25 = vld [vmem:[%s4319_s1 + $0x540] ss:$8 sps:$4 sm:$0xff]   ;;  %v2995_v26 = vld [vmem:[%s4319_s1 + $0x154] ss:$8 sps:$4 sm:$0xff]  }
  0x24   : > { %2030 = vmatpush1.bf16.msra.mxu1 %v2909_v30  ;;  %v2998_v27 = vld [vmem:[%s4319_s1 + $0x554] ss:$8 sps:$4 sm:$0xff]   ;;  %v2993_v28 = vld [vmem:[%s4319_s1 + $0x150] ss:$8 sps:$4 sm:$0xff]   ;;  %v3001_v30 = vld [vmem:[%s4319_s1 + $0x164] ss:$8 sps:$4 sm:$0xff]  }
  0x25   : > { %2194 = vmatpush1.bf16.msra.mxu0 %v2910_v31  ;;  %2031 = vmatprep.subr.bf16.mxu1 %v2911_v32  ;;  %v2996_v29 = vld [vmem:[%s4319_s1 + $0x550] ss:$8 sps:$4 sm:$0xff]   ;;  %v3004_v31 = vld [vmem:[%s4319_s1 + $0x564] ss:$8 sps:$4 sm:$0xff]   ;;  %v3019_v46 = vld [vmem:[%s4319_s1 + $0x194] ss:$8 sps:$4 sm:$0xff]  }
  0x26   : > { %2195 = vmatprep.subr.bf16.mxu0 %v2913_v33  ;;  %v3660_v32 = vld [vmem:[%s3517_s11 + $0x8] sm:$0xff]  ;;  %v3017_v48 = vld [vmem:[%s4319_s1 + $0x190] ss:$8 sps:$4 sm:$0xff]  }
  0x27   : > { %v2999_v33 = vld [vmem:[%s4319_s1 + $0x160] ss:$8 sps:$4 sm:$0xff]   ;;  %v3025_v50 = vld [vmem:[%s4319_s1 + $0x1a4] ss:$8 sps:$4 sm:$0xff]  }
  0x28   : > { %2032 = vmatpush1.bf16.msra.mxu1 %v2915_v34  ;;  %v3002_v34 = vld [vmem:[%s4319_s1 + $0x560] ss:$8 sps:$4 sm:$0xff]  }
  0x29   : > { %2196 = vmatpush1.bf16.msra.mxu0 %v2916_v35  ;;  %2033 = vmatprep.subr.bf16.mxu1 %v2917_v36  ;;  %v2499_v35 = vcombine.high %v3660_v32, %v3660_v32  ;;  %v3671_v36 = vld [vmem:[%s3517_s11 + $0x28] sm:$0xff] }
  0x2a   : > { %2197 = vmatprep.subr.bf16.mxu0 %v2919_v37  ;;  %v3007_v37 = vld [vmem:[%s4319_s1 + $0x174] ss:$8 sps:$4 sm:$0xff]   ;;  %v3026_v53 = vld [vmem:[%s4319_s1 + $0x5a0] ss:$8 sps:$4 sm:$0xff]  }
  0x2c   : > { %2034 = vmatpush1.bf16.msra.mxu1 %v2921_v38  ;;  %v2507_v38 = vcombine.high %v3671_v36, %v3671_v36 }
  0x2d   : > { %2198 = vmatpush1.bf16.msra.mxu0 %v2922_v39  ;;  %2035 = vmatprep.subr.bf16.mxu1 %v2923_v40  ;;  %v3010_v39 = vld [vmem:[%s4319_s1 + $0x574] ss:$8 sps:$4 sm:$0xff]   ;;  %v3005_v40 = vld [vmem:[%s4319_s1 + $0x170] ss:$8 sps:$4 sm:$0xff]  }
  0x2e   : > { %2199 = vmatprep.subr.bf16.mxu0 %v2925_v41  ;;  %v3008_v41 = vld [vmem:[%s4319_s1 + $0x570] ss:$8 sps:$4 sm:$0xff]  }
  0x30   : > { %2036 = vmatpush1.bf16.msra.mxu1 %v2927_v42  ;;  %v3013_v42 = vld [vmem:[%s4319_s1 + $0x184] ss:$8 sps:$4 sm:$0xff]  }
  0x31   : > { %2200 = vmatpush1.bf16.msra.mxu0 %v2928_v43  ;;  %2037 = vmatprep.subr.bf16.mxu1 %v2929_v44  ;;  %v3016_v43 = vld [vmem:[%s4319_s1 + $0x584] ss:$8 sps:$4 sm:$0xff]   ;;  %v3011_v44 = vld [vmem:[%s4319_s1 + $0x180] ss:$8 sps:$4 sm:$0xff]  }
  0x32   : > { %2201 = vmatprep.subr.bf16.mxu0 %v2931_v45  ;;  %v3014_v45 = vld [vmem:[%s4319_s1 + $0x580] ss:$8 sps:$4 sm:$0xff]  }
  0x34   : > { %2038 = vmatpush1.bf16.msra.mxu1 %v2933_v47  ;;  %v3022_v47 = vld [vmem:[%s4319_s1 + $0x594] ss:$8 sps:$4 sm:$0xff]  }
  0x35   : > { %2202 = vmatpush1.bf16.msra.mxu0 %v2934_v49  ;;  %2039 = vmatprep.subr.bf16.mxu1 %v2935_v51  ;;  %v3020_v49 = vld [vmem:[%s4319_s1 + $0x590] ss:$8 sps:$4 sm:$0xff]   ;;  %v3028_v51 = vld [vmem:[%s4319_s1 + $0x5a4] ss:$8 sps:$4 sm:$0xff]  }
  0x36   : > { %2203 = vmatprep.subr.bf16.mxu0 %v2937_v52  ;;  %v3023_v52 = vld [vmem:[%s4319_s1 + $0x1a0] ss:$8 sps:$4 sm:$0xff]  }
  0x38   : > { %2040 = vmatpush1.bf16.msra.mxu1 %v2939_v54  ;;  %v3031_v54 = vld [vmem:[%s4319_s1 + $0x1b4] ss:$8 sps:$4 sm:$0xff]  }
  0x39   : > { %2204 = vmatpush1.bf16.msra.mxu0 %v2940_v55  ;;  %2041 = vmatprep.subr.bf16.mxu1 %v2941_v56  ;;  %v3034_v55 = vld [vmem:[%s4319_s1 + $0x5b4] ss:$8 sps:$4 sm:$0xff]   ;;  %v3029_v56 = vld [vmem:[%s4319_s1 + $0x1b0] ss:$8 sps:$4 sm:$0xff]  }
  0x3a   : > { %2205 = vmatprep.subr.bf16.mxu0 %v2943_v57  ;;  %v3032_v57 = vld [vmem:[%s4319_s1 + $0x5b0] ss:$8 sps:$4 sm:$0xff]  }
  0x3c   : > { %2042 = vmatpush1.bf16.msra.mxu1 %v2945_v58  ;;  %v3037_v58 = vld [vmem:[%s4319_s1 + $0x1c4] ss:$8 sps:$4 sm:$0xff]  }
  0x3d   : > { %2206 = vmatpush1.bf16.msra.mxu0 %v2946_v59  ;;  %2043 = vmatprep.subr.bf16.mxu1 %v2947_v60  ;;  %v3040_v59 = vld [vmem:[%s4319_s1 + $0x5c4] ss:$8 sps:$4 sm:$0xff]   ;;  %v3035_v60 = vld [vmem:[%s4319_s1 + $0x1c0] ss:$8 sps:$4 sm:$0xff]  }
  0x3e   : > { %2207 = vmatprep.subr.bf16.mxu0 %v2949_v61  ;;  %v3038_v61 = vld [vmem:[%s4319_s1 + $0x5c0] ss:$8 sps:$4 sm:$0xff]  }
  0x40   : > { %2044 = vmatpush1.bf16.msra.mxu1 %v2951_v62  ;;  %v3043_v62 = vld [vmem:[%s4319_s1 + $0x1d4] ss:$8 sps:$4 sm:$0xff]  }
  0x41   : > { %2208 = vmatpush1.bf16.msra.mxu0 %v2952_v63  ;;  %2045 = vmatprep.subr.bf16.mxu1 %v2953_v0  ;;  %v3046_v63 = vld [vmem:[%s4319_s1 + $0x5d4] ss:$8 sps:$4 sm:$0xff]   ;;  %v3041_v0 = vld [vmem:[%s4319_s1 + $0x1d0] ss:$8 sps:$4 sm:$0xff]  }
  0x42   : > { %2209 = vmatprep.subr.bf16.mxu0 %v2955_v1  ;;  %v3044_v1 = vld [vmem:[%s4319_s1 + $0x5d0] ss:$8 sps:$4 sm:$0xff]  }
  0x44   : > { %2046 = vmatpush1.bf16.msra.mxu1 %v2957_v2  ;;  %v3049_v2 = vld [vmem:[%s4319_s1 + $0x1e4] ss:$8 sps:$4 sm:$0xff]  }
  0x45   : > { %2210 = vmatpush1.bf16.msra.mxu0 %v2958_v3  ;;  %2056 = vmatprep.subr.bf16.mxu1 %v2963_v4  ;;  %v3052_v3 = vld [vmem:[%s4319_s1 + $0x5e4] ss:$8 sps:$4 sm:$0xff]   ;;  %v3047_v4 = vld [vmem:[%s4319_s1 + $0x1e0] ss:$8 sps:$4 sm:$0xff]  }
  0x46   : > { %2220 = vmatprep.subr.bf16.mxu0 %v2968_v5  ;;  %v3050_v5 = vld [vmem:[%s4319_s1 + $0x5e0] ss:$8 sps:$4 sm:$0xff]  }
  0x47   : > { %2048 = vmatmul.mubr.bf16.vlgmr.msra.gmra.mrb[0].mxu1 %v2496_v6  ;;  %v3055_v6 = vld [vmem:[%s4319_s1 + $0x1f4] ss:$8 sps:$4 sm:$0xff]  }
  0x48   : > { %2212 = vmatmul.mubr.bf16.vlgmr.msra.gmra.mrb[0].mxu0 %v2504_v7  ;;  %2057 = vmatpush1.bf16.msra.mxu1 %v2961_v8  ;;  %v3058_v7 = vld [vmem:[%s4319_s1 + $0x5f4] ss:$8 sps:$4 sm:$0xff]   ;;  %v3053_v8 = vld [vmem:[%s4319_s1 + $0x1f0] ss:$8 sps:$4 sm:$0xff]  }
  0x49   : > { %2221 = vmatpush1.bf16.msra.mxu0 %v2966_v9  ;;  %2058 = vmatprep.subr.bf16.mxu1 %v2971_v10  ;;  %v3056_v9 = vld [vmem:[%s4319_s1 + $0x5f0] ss:$8 sps:$4 sm:$0xff]   ;;  %v3063_v10 = vld [vmem:[%s4319_s1 + $0x204] ss:$8 sps:$4 sm:$0xff]  }
  0x4a   : > { %2222 = vmatprep.subr.bf16.mxu0 %v2974_v11  ;;  %2088 = vmatprep.mubr.bf16.mxu1 %v2499_v35  ;;  %v3068_v11 = vld [vmem:[%s4319_s1 + $0x604] ss:$8 sps:$4 sm:$0xff]   ;;  %v3090_v35 = vld [vmem:[%s4319_s1 + $0x640] ss:$8 sps:$4 sm:$0xff]  }
  0x4b   : > { %2252 = vmatprep.mubr.bf16.mxu0 %v2507_v38  ;;  %v3093_v38 = vld [vmem:[%s4319_s1 + $0x250] ss:$8 sps:$4 sm:$0xff]  }
  0x4c   : > { %2059 = vmatpush1.bf16.msra.mxu1 %v2969_v12  ;;  %v2498_v12 = vcombine.low %v3660_v32, %v3660_v32  ;;  %v3089_v32 = vld [vmem:[%s4319_s1 + $0x244] ss:$8 sps:$4 sm:$0xff]  }
  0x4d   : > { %2223 = vmatpush1.bf16.msra.mxu0 %v2972_v13  ;;  %2060 = vmatprep.subr.bf16.mxu1 %v2977_v14  ;;  %v3061_v13 = vld [vmem:[%s4319_s1 + $0x200] ss:$8 sps:$4 sm:$0xff]   ;;  %v2506_v14 = vcombine.low %v3671_v36, %v3671_v36  ;;  %v3095_v36 = vld [vmem:[%s4319_s1 + $0x254] ss:$8 sps:$4 sm:$0xff]  }
  0x4e   : > { %2224 = vmatprep.subr.bf16.mxu0 %v2980_v15  ;;  %v3066_v15 = vld [vmem:[%s4319_s1 + $0x600] ss:$8 sps:$4 sm:$0xff]  }
  0x50   : > { %2061 = vmatpush1.bf16.msra.mxu1 %v2975_v16  ;;  %v3071_v16 = vld [vmem:[%s4319_s1 + $0x214] ss:$8 sps:$4 sm:$0xff]  }
  0x51   : > { %2225 = vmatpush1.bf16.msra.mxu0 %v2978_v17  ;;  %2062 = vmatprep.subr.bf16.mxu1 %v2983_v18  ;;  %v3074_v17 = vld [vmem:[%s4319_s1 + $0x614] ss:$8 sps:$4 sm:$0xff]  }
  0x52   : > { %2226 = vmatprep.subr.bf16.mxu0 %v2986_v19  ;;  %v3806_v18 = vld [vmem:[%s3517_s11 + $0x10] sm:$0xff] }
  0x53   : > { %v2501_v19 = vcombine.high %v3806_v18, %v3806_v18 }
  0x54   : > { %2063 = vmatpush1.bf16.msra.mxu1 %v2981_v20  ;;  %v3811_v20 = vld [vmem:[%s3517_s11 + $0x30] sm:$0xff] }
  0x55   : > { %2227 = vmatpush1.bf16.msra.mxu0 %v2984_v21  ;;  %2064 = vmatprep.subr.bf16.mxu1 %v2989_v22  ;;  %v3069_v21 = vld [vmem:[%s4319_s1 + $0x210] ss:$8 sps:$4 sm:$0xff]  }
  0x56   : > { %2228 = vmatprep.subr.bf16.mxu0 %v2992_v23  ;;  %v3072_v22 = vld [vmem:[%s4319_s1 + $0x610] ss:$8 sps:$4 sm:$0xff]   ;;  %v2509_v23 = vcombine.high %v3811_v20, %v3811_v20 }
  0x58   : > { %2065 = vmatpush1.bf16.msra.mxu1 %v2987_v24  ;;  %v3077_v24 = vld [vmem:[%s4319_s1 + $0x224] ss:$8 sps:$4 sm:$0xff]  }
  0x59   : > { %2229 = vmatpush1.bf16.msra.mxu0 %v2990_v25  ;;  %2066 = vmatprep.subr.bf16.mxu1 %v2995_v26  ;;  %v3080_v25 = vld [vmem:[%s4319_s1 + $0x624] ss:$8 sps:$4 sm:$0xff]   ;;  %v3075_v26 = vld [vmem:[%s4319_s1 + $0x220] ss:$8 sps:$4 sm:$0xff]  }
  0x5a   : > { %2230 = vmatprep.subr.bf16.mxu0 %v2998_v27  ;;  %v3078_v27 = vld [vmem:[%s4319_s1 + $0x620] ss:$8 sps:$4 sm:$0xff]  }
  0x5c   : > { %2067 = vmatpush1.bf16.msra.mxu1 %v2993_v28  ;;  %v3083_v28 = vld [vmem:[%s4319_s1 + $0x234] ss:$8 sps:$4 sm:$0xff]  }
  0x5d   : > { %2231 = vmatpush1.bf16.msra.mxu0 %v2996_v29  ;;  %2068 = vmatprep.subr.bf16.mxu1 %v3001_v30  ;;  %v3086_v29 = vld [vmem:[%s4319_s1 + $0x634] ss:$8 sps:$4 sm:$0xff]   ;;  %v3081_v30 = vld [vmem:[%s4319_s1 + $0x230] ss:$8 sps:$4 sm:$0xff]  }
  0x5e   : > { %2232 = vmatprep.subr.bf16.mxu0 %v3004_v31  ;;  %v3084_v31 = vld [vmem:[%s4319_s1 + $0x630] ss:$8 sps:$4 sm:$0xff]  }
  0x60   : > { %2069 = vmatpush1.bf16.msra.mxu1 %v2999_v33  ;;  %v3092_v33 = vld [vmem:[%s4319_s1 + $0x644] ss:$8 sps:$4 sm:$0xff]  }
  0x61   : > { %2233 = vmatpush1.bf16.msra.mxu0 %v3002_v34  ;;  %2070 = vmatprep.subr.bf16.mxu1 %v3007_v37  ;;  %v3087_v34 = vld [vmem:[%s4319_s1 + $0x240] ss:$8 sps:$4 sm:$0xff]   ;;  %v3098_v37 = vld [vmem:[%s4319_s1 + $0x654] ss:$8 sps:$4 sm:$0xff]  }
  0x62   : > { %2234 = vmatprep.subr.bf16.mxu0 %v3010_v39  ;;  %v3096_v39 = vld [vmem:[%s4319_s1 + $0x650] ss:$8 sps:$4 sm:$0xff]  }
  0x64   : > { %2071 = vmatpush1.bf16.msra.mxu1 %v3005_v40  ;;  %v3101_v40 = vld [vmem:[%s4319_s1 + $0x264] ss:$8 sps:$4 sm:$0xff]  }
  0x65   : > { %2235 = vmatpush1.bf16.msra.mxu0 %v3008_v41  ;;  %2072 = vmatprep.subr.bf16.mxu1 %v3013_v42  ;;  %v3104_v41 = vld [vmem:[%s4319_s1 + $0x664] ss:$8 sps:$4 sm:$0xff]   ;;  %v3099_v42 = vld [vmem:[%s4319_s1 + $0x260] ss:$8 sps:$4 sm:$0xff]  }
  0x66   : > { %2236 = vmatprep.subr.bf16.mxu0 %v3016_v43  ;;  %v3102_v43 = vld [vmem:[%s4319_s1 + $0x660] ss:$8 sps:$4 sm:$0xff]  }
  0x68   : > { %2073 = vmatpush1.bf16.msra.mxu1 %v3011_v44  ;;  %v3107_v44 = vld [vmem:[%s4319_s1 + $0x274] ss:$8 sps:$4 sm:$0xff]  }
  0x69   : > { %2237 = vmatpush1.bf16.msra.mxu0 %v3014_v45  ;;  %2074 = vmatprep.subr.bf16.mxu1 %v3019_v46  ;;  %v3110_v45 = vld [vmem:[%s4319_s1 + $0x674] ss:$8 sps:$4 sm:$0xff]   ;;  %v3105_v46 = vld [vmem:[%s4319_s1 + $0x270] ss:$8 sps:$4 sm:$0xff]  }
  0x6a   : > { %2238 = vmatprep.subr.bf16.mxu0 %v3022_v47  ;;  %v3108_v47 = vld [vmem:[%s4319_s1 + $0x670] ss:$8 sps:$4 sm:$0xff]  }
  0x6c   : > { %2075 = vmatpush1.bf16.msra.mxu1 %v3017_v48  ;;  %v3113_v48 = vld [vmem:[%s4319_s1 + $0x284] ss:$8 sps:$4 sm:$0xff]  }
  0x6d   : > { %2239 = vmatpush1.bf16.msra.mxu0 %v3020_v49  ;;  %2076 = vmatprep.subr.bf16.mxu1 %v3025_v50  ;;  %v3116_v49 = vld [vmem:[%s4319_s1 + $0x684] ss:$8 sps:$4 sm:$0xff]   ;;  %v3111_v50 = vld [vmem:[%s4319_s1 + $0x280] ss:$8 sps:$4 sm:$0xff]  }
  0x6e   : > { %2240 = vmatprep.subr.bf16.mxu0 %v3028_v51  ;;  %v3114_v51 = vld [vmem:[%s4319_s1 + $0x680] ss:$8 sps:$4 sm:$0xff]  }
  0x70   : > { %2077 = vmatpush1.bf16.msra.mxu1 %v3023_v52  ;;  %v3119_v52 = vld [vmem:[%s4319_s1 + $0x294] ss:$8 sps:$4 sm:$0xff]  }
  0x71   : > { %2241 = vmatpush1.bf16.msra.mxu0 %v3026_v53  ;;  %2078 = vmatprep.subr.bf16.mxu1 %v3031_v54  ;;  %v3122_v53 = vld [vmem:[%s4319_s1 + $0x694] ss:$8 sps:$4 sm:$0xff]   ;;  %v3117_v54 = vld [vmem:[%s4319_s1 + $0x290] ss:$8 sps:$4 sm:$0xff]  }
  0x72   : > { %2242 = vmatprep.subr.bf16.mxu0 %v3034_v55  ;;  %v3120_v55 = vld [vmem:[%s4319_s1 + $0x690] ss:$8 sps:$4 sm:$0xff]  }
  0x74   : > { %2079 = vmatpush1.bf16.msra.mxu1 %v3029_v56  ;;  %v3125_v56 = vld [vmem:[%s4319_s1 + $0x2a4] ss:$8 sps:$4 sm:$0xff]  }
  0x75   : > { %2243 = vmatpush1.bf16.msra.mxu0 %v3032_v57  ;;  %2080 = vmatprep.subr.bf16.mxu1 %v3037_v58  ;;  %v3128_v57 = vld [vmem:[%s4319_s1 + $0x6a4] ss:$8 sps:$4 sm:$0xff]   ;;  %v3123_v58 = vld [vmem:[%s4319_s1 + $0x2a0] ss:$8 sps:$4 sm:$0xff]  }
  0x76   : > { %2244 = vmatprep.subr.bf16.mxu0 %v3040_v59  ;;  %v3126_v59 = vld [vmem:[%s4319_s1 + $0x6a0] ss:$8 sps:$4 sm:$0xff]  }
  0x78   : > { %2081 = vmatpush1.bf16.msra.mxu1 %v3035_v60  ;;  %v3131_v60 = vld [vmem:[%s4319_s1 + $0x2b4] ss:$8 sps:$4 sm:$0xff]  }
  0x79   : > { %2245 = vmatpush1.bf16.msra.mxu0 %v3038_v61  ;;  %2082 = vmatprep.subr.bf16.mxu1 %v3043_v62  ;;  %v3134_v61 = vld [vmem:[%s4319_s1 + $0x6b4] ss:$8 sps:$4 sm:$0xff]   ;;  %v3129_v62 = vld [vmem:[%s4319_s1 + $0x2b0] ss:$8 sps:$4 sm:$0xff]  }
  0x7a   : > { %2246 = vmatprep.subr.bf16.mxu0 %v3046_v63  ;;  %v3132_v63 = vld [vmem:[%s4319_s1 + $0x6b0] ss:$8 sps:$4 sm:$0xff]  }
  0x7c   : > { %2083 = vmatpush1.bf16.msra.mxu1 %v3041_v0  ;;  %v3137_v0 = vld [vmem:[%s4319_s1 + $0x2c4] ss:$8 sps:$4 sm:$0xff]  }
  0x7d   : > { %2247 = vmatpush1.bf16.msra.mxu0 %v3044_v1  ;;  %2084 = vmatprep.subr.bf16.mxu1 %v3049_v2  ;;  %v3140_v1 = vld [vmem:[%s4319_s1 + $0x6c4] ss:$8 sps:$4 sm:$0xff]   ;;  %v3135_v2 = vld [vmem:[%s4319_s1 + $0x2c0] ss:$8 sps:$4 sm:$0xff]  }
  0x7e   : > { %2248 = vmatprep.subr.bf16.mxu0 %v3052_v3  ;;  %v3138_v3 = vld [vmem:[%s4319_s1 + $0x6c0] ss:$8 sps:$4 sm:$0xff]  }
  0x80   : > { %2085 = vmatpush1.bf16.msra.mxu1 %v3047_v4  ;;  %v3143_v4 = vld [vmem:[%s4319_s1 + $0x2d4] ss:$8 sps:$4 sm:$0xff]  }
  0x81   : > { %2249 = vmatpush1.bf16.msra.mxu0 %v3050_v5  ;;  %2086 = vmatprep.subr.bf16.mxu1 %v3055_v6  ;;  %v3146_v5 = vld [vmem:[%s4319_s1 + $0x6d4] ss:$8 sps:$4 sm:$0xff]   ;;  %v3141_v6 = vld [vmem:[%s4319_s1 + $0x2d0] ss:$8 sps:$4 sm:$0xff]  }
  0x82   : > { %2250 = vmatprep.subr.bf16.mxu0 %v3058_v7  ;;  %v3144_v7 = vld [vmem:[%s4319_s1 + $0x6d0] ss:$8 sps:$4 sm:$0xff]  }
  0x84   : > { %2087 = vmatpush1.bf16.msra.mxu1 %v3053_v8  ;;  %v3149_v8 = vld [vmem:[%s4319_s1 + $0x2e4] ss:$8 sps:$4 sm:$0xff]  }
  0x85   : > { %2251 = vmatpush1.bf16.msra.mxu0 %v3056_v9  ;;  %2097 = vmatprep.subr.bf16.mxu1 %v3063_v10  ;;  %v3152_v9 = vld [vmem:[%s4319_s1 + $0x6e4] ss:$8 sps:$4 sm:$0xff]   ;;  %v3147_v10 = vld [vmem:[%s4319_s1 + $0x2e0] ss:$8 sps:$4 sm:$0xff]  }
  0x86   : > { %2261 = vmatprep.subr.bf16.mxu0 %v3068_v11  ;;  %v3150_v11 = vld [vmem:[%s4319_s1 + $0x6e0] ss:$8 sps:$4 sm:$0xff]  }
  0x87   : > { %2089 = vmatmul.mubr.bf16.vlgmr.msra.gmra.mrb[0].mxu1 %v2498_v12  ;;  %v3155_v12 = vld [vmem:[%s4319_s1 + $0x2f4] ss:$8 sps:$4 sm:$0xff]  }
  0x88   : > { %2253 = vmatmul.mubr.bf16.vlgmr.msra.gmra.mrb[0].mxu0 %v2506_v14  ;;  %2098 = vmatpush1.bf16.msra.mxu1 %v3061_v13  ;;  %v3158_v13 = vld [vmem:[%s4319_s1 + $0x6f4] ss:$8 sps:$4 sm:$0xff]   ;;  %v3153_v14 = vld [vmem:[%s4319_s1 + $0x2f0] ss:$8 sps:$4 sm:$0xff]  }
  0x89   : > { %2262 = vmatpush1.bf16.msra.mxu0 %v3066_v15  ;;  %2099 = vmatprep.subr.bf16.mxu1 %v3071_v16  ;;  %v3156_v15 = vld [vmem:[%s4319_s1 + $0x6f0] ss:$8 sps:$4 sm:$0xff]   ;;  %v3163_v16 = vld [vmem:[%s4319_s1 + $0x304] ss:$8 sps:$4 sm:$0xff]  }
  0x8a   : > { %2263 = vmatprep.subr.bf16.mxu0 %v3074_v17  ;;  %2129 = vmatprep.mubr.bf16.mxu1 %v2501_v19  ;;  %v3168_v17 = vld [vmem:[%s4319_s1 + $0x704] ss:$8 sps:$4 sm:$0xff]   ;;  %v3161_v19 = vld [vmem:[%s4319_s1 + $0x300] ss:$8 sps:$4 sm:$0xff]  }
  0x8b   : > { %2293 = vmatprep.mubr.bf16.mxu0 %v2509_v23  ;;  %v2508_v23 = vcombine.low %v3811_v20, %v3811_v20 }
  0x8c   : > { %2100 = vmatpush1.bf16.msra.mxu1 %v3069_v21  ;;  %v3166_v21 = vld [vmem:[%s4319_s1 + $0x700] ss:$8 sps:$4 sm:$0xff]  }
  0x8d   : > { %2264 = vmatpush1.bf16.msra.mxu0 %v3072_v22  ;;  %2101 = vmatprep.subr.bf16.mxu1 %v3077_v24  ;;  %v2500_v22 = vcombine.low %v3806_v18, %v3806_v18  ;;  %v4006_v24 = vld [vmem:[%s3517_s11 + $0x18] sm:$0xff] }
  0x8e   : > { %2265 = vmatprep.subr.bf16.mxu0 %v3080_v25  ;;  %v4009_v25 = vld [vmem:[%s3517_s11 + $0x38] sm:$0xff]  ;;  %v2503_v18 = vcombine.high %v4006_v24, %v4006_v24 }
  0x8f   : > { %v2511_v20 = vcombine.high %v4009_v25, %v4009_v25 }
  0x90   : > { %2102 = vmatpush1.bf16.msra.mxu1 %v3075_v26  ;;  %v3171_v26 = vld [vmem:[%s4319_s1 + $0x314] ss:$8 sps:$4 sm:$0xff]  }
  0x91   : > { %2266 = vmatpush1.bf16.msra.mxu0 %v3078_v27  ;;  %2103 = vmatprep.subr.bf16.mxu1 %v3083_v28  ;;  %v3174_v27 = vld [vmem:[%s4319_s1 + $0x714] ss:$8 sps:$4 sm:$0xff]   ;;  %v3169_v28 = vld [vmem:[%s4319_s1 + $0x310] ss:$8 sps:$4 sm:$0xff]  }
  0x92   : > { %2267 = vmatprep.subr.bf16.mxu0 %v3086_v29  ;;  %v3172_v29 = vld [vmem:[%s4319_s1 + $0x710] ss:$8 sps:$4 sm:$0xff]  }
  0x94   : > { %2104 = vmatpush1.bf16.msra.mxu1 %v3081_v30  ;;  %v3177_v30 = vld [vmem:[%s4319_s1 + $0x324] ss:$8 sps:$4 sm:$0xff]  }
  0x95   : > { %2268 = vmatpush1.bf16.msra.mxu0 %v3084_v31  ;;  %2105 = vmatprep.subr.bf16.mxu1 %v3089_v32  ;;  %v3180_v31 = vld [vmem:[%s4319_s1 + $0x724] ss:$8 sps:$4 sm:$0xff]   ;;  %v3175_v32 = vld [vmem:[%s4319_s1 + $0x320] ss:$8 sps:$4 sm:$0xff]  }
  0x96   : > { %2269 = vmatprep.subr.bf16.mxu0 %v3092_v33  ;;  %v3178_v33 = vld [vmem:[%s4319_s1 + $0x720] ss:$8 sps:$4 sm:$0xff]  }
  0x98   : > { %2106 = vmatpush1.bf16.msra.mxu1 %v3087_v34  ;;  %v3183_v34 = vld [vmem:[%s4319_s1 + $0x334] ss:$8 sps:$4 sm:$0xff]  }
  0x99   : > { %2270 = vmatpush1.bf16.msra.mxu0 %v3090_v35  ;;  %2107 = vmatprep.subr.bf16.mxu1 %v3095_v36  ;;  %v3186_v35 = vld [vmem:[%s4319_s1 + $0x734] ss:$8 sps:$4 sm:$0xff]   ;;  %v3181_v36 = vld [vmem:[%s4319_s1 + $0x330] ss:$8 sps:$4 sm:$0xff]  }
  0x9a   : > { %2271 = vmatprep.subr.bf16.mxu0 %v3098_v37  ;;  %v3184_v37 = vld [vmem:[%s4319_s1 + $0x730] ss:$8 sps:$4 sm:$0xff]  }
  0x9c   : > { %2108 = vmatpush1.bf16.msra.mxu1 %v3093_v38  ;;  %v3189_v38 = vld [vmem:[%s4319_s1 + $0x344] ss:$8 sps:$4 sm:$0xff]  }
  0x9d   : > { %2272 = vmatpush1.bf16.msra.mxu0 %v3096_v39  ;;  %2109 = vmatprep.subr.bf16.mxu1 %v3101_v40  ;;  %v3192_v39 = vld [vmem:[%s4319_s1 + $0x744] ss:$8 sps:$4 sm:$0xff]   ;;  %v3187_v40 = vld [vmem:[%s4319_s1 + $0x340] ss:$8 sps:$4 sm:$0xff]  }
  0x9e   : > { %2273 = vmatprep.subr.bf16.mxu0 %v3104_v41  ;;  %v3190_v41 = vld [vmem:[%s4319_s1 + $0x740] ss:$8 sps:$4 sm:$0xff]  }
  0xa0   : > { %2110 = vmatpush1.bf16.msra.mxu1 %v3099_v42  ;;  %v3195_v42 = vld [vmem:[%s4319_s1 + $0x354] ss:$8 sps:$4 sm:$0xff]  }
  0xa1   : > { %2274 = vmatpush1.bf16.msra.mxu0 %v3102_v43  ;;  %2111 = vmatprep.subr.bf16.mxu1 %v3107_v44  ;;  %v3198_v43 = vld [vmem:[%s4319_s1 + $0x754] ss:$8 sps:$4 sm:$0xff]   ;;  %v3193_v44 = vld [vmem:[%s4319_s1 + $0x350] ss:$8 sps:$4 sm:$0xff]  }
  0xa2   : > { %2275 = vmatprep.subr.bf16.mxu0 %v3110_v45  ;;  %v3196_v45 = vld [vmem:[%s4319_s1 + $0x750] ss:$8 sps:$4 sm:$0xff]  }
  0xa4   : > { %2112 = vmatpush1.bf16.msra.mxu1 %v3105_v46  ;;  %v3201_v46 = vld [vmem:[%s4319_s1 + $0x364] ss:$8 sps:$4 sm:$0xff]  }
  0xa5   : > { %2276 = vmatpush1.bf16.msra.mxu0 %v3108_v47  ;;  %2113 = vmatprep.subr.bf16.mxu1 %v3113_v48  ;;  %v3204_v47 = vld [vmem:[%s4319_s1 + $0x764] ss:$8 sps:$4 sm:$0xff]   ;;  %v3199_v48 = vld [vmem:[%s4319_s1 + $0x360] ss:$8 sps:$4 sm:$0xff]  }
  0xa6   : > { %2277 = vmatprep.subr.bf16.mxu0 %v3116_v49  ;;  %v3202_v49 = vld [vmem:[%s4319_s1 + $0x760] ss:$8 sps:$4 sm:$0xff]  }
  0xa8   : > { %2114 = vmatpush1.bf16.msra.mxu1 %v3111_v50  ;;  %v3207_v50 = vld [vmem:[%s4319_s1 + $0x374] ss:$8 sps:$4 sm:$0xff]  }
  0xa9   : > { %2278 = vmatpush1.bf16.msra.mxu0 %v3114_v51  ;;  %2115 = vmatprep.subr.bf16.mxu1 %v3119_v52  ;;  %v3210_v51 = vld [vmem:[%s4319_s1 + $0x774] ss:$8 sps:$4 sm:$0xff]   ;;  %v3205_v52 = vld [vmem:[%s4319_s1 + $0x370] ss:$8 sps:$4 sm:$0xff]  }
  0xaa   : > { %2279 = vmatprep.subr.bf16.mxu0 %v3122_v53  ;;  %v3208_v53 = vld [vmem:[%s4319_s1 + $0x770] ss:$8 sps:$4 sm:$0xff]  }
  0xac   : > { %2116 = vmatpush1.bf16.msra.mxu1 %v3117_v54  ;;  %v3213_v54 = vld [vmem:[%s4319_s1 + $0x384] ss:$8 sps:$4 sm:$0xff]  }
  0xad   : > { %2280 = vmatpush1.bf16.msra.mxu0 %v3120_v55  ;;  %2117 = vmatprep.subr.bf16.mxu1 %v3125_v56  ;;  %v3216_v55 = vld [vmem:[%s4319_s1 + $0x784] ss:$8 sps:$4 sm:$0xff]   ;;  %v3211_v56 = vld [vmem:[%s4319_s1 + $0x380] ss:$8 sps:$4 sm:$0xff]  }
  0xae   : > { %2281 = vmatprep.subr.bf16.mxu0 %v3128_v57  ;;  %v3214_v57 = vld [vmem:[%s4319_s1 + $0x780] ss:$8 sps:$4 sm:$0xff]  }
  0xb0   : > { %2118 = vmatpush1.bf16.msra.mxu1 %v3123_v58  ;;  %v3219_v58 = vld [vmem:[%s4319_s1 + $0x394] ss:$8 sps:$4 sm:$0xff]  }
  0xb1   : > { %2282 = vmatpush1.bf16.msra.mxu0 %v3126_v59  ;;  %2119 = vmatprep.subr.bf16.mxu1 %v3131_v60  ;;  %v3222_v59 = vld [vmem:[%s4319_s1 + $0x794] ss:$8 sps:$4 sm:$0xff]   ;;  %v3217_v60 = vld [vmem:[%s4319_s1 + $0x390] ss:$8 sps:$4 sm:$0xff]  }
  0xb2   : > { %2283 = vmatprep.subr.bf16.mxu0 %v3134_v61  ;;  %v3220_v61 = vld [vmem:[%s4319_s1 + $0x790] ss:$8 sps:$4 sm:$0xff]  }
  0xb4   : > { %2120 = vmatpush1.bf16.msra.mxu1 %v3129_v62  ;;  %v3225_v62 = vld [vmem:[%s4319_s1 + $0x3a4] ss:$8 sps:$4 sm:$0xff]  }
  0xb5   : > { %2284 = vmatpush1.bf16.msra.mxu0 %v3132_v63  ;;  %2121 = vmatprep.subr.bf16.mxu1 %v3137_v0  ;;  %v3228_v63 = vld [vmem:[%s4319_s1 + $0x7a4] ss:$8 sps:$4 sm:$0xff]   ;;  %v3223_v0 = vld [vmem:[%s4319_s1 + $0x3a0] ss:$8 sps:$4 sm:$0xff]  }
  0xb6   : > { %2285 = vmatprep.subr.bf16.mxu0 %v3140_v1  ;;  %v3226_v1 = vld [vmem:[%s4319_s1 + $0x7a0] ss:$8 sps:$4 sm:$0xff]  }
  0xb8   : > { %2122 = vmatpush1.bf16.msra.mxu1 %v3135_v2  ;;  %v3231_v2 = vld [vmem:[%s4319_s1 + $0x3b4] ss:$8 sps:$4 sm:$0xff]  }
  0xb9   : > { %2286 = vmatpush1.bf16.msra.mxu0 %v3138_v3  ;;  %2123 = vmatprep.subr.bf16.mxu1 %v3143_v4  ;;  %v3234_v3 = vld [vmem:[%s4319_s1 + $0x7b4] ss:$8 sps:$4 sm:$0xff]   ;;  %v3229_v4 = vld [vmem:[%s4319_s1 + $0x3b0] ss:$8 sps:$4 sm:$0xff]  }
  0xba   : > { %2287 = vmatprep.subr.bf16.mxu0 %v3146_v5  ;;  %v3232_v5 = vld [vmem:[%s4319_s1 + $0x7b0] ss:$8 sps:$4 sm:$0xff]  }
  0xbc   : > { %2124 = vmatpush1.bf16.msra.mxu1 %v3141_v6  ;;  %v3237_v6 = vld [vmem:[%s4319_s1 + $0x3c4] ss:$8 sps:$4 sm:$0xff]  }
  0xbd   : > { %2288 = vmatpush1.bf16.msra.mxu0 %v3144_v7  ;;  %2125 = vmatprep.subr.bf16.mxu1 %v3149_v8  ;;  %v3240_v7 = vld [vmem:[%s4319_s1 + $0x7c4] ss:$8 sps:$4 sm:$0xff]   ;;  %v3235_v8 = vld [vmem:[%s4319_s1 + $0x3c0] ss:$8 sps:$4 sm:$0xff]  }
  0xbe   : > { %2289 = vmatprep.subr.bf16.mxu0 %v3152_v9  ;;  %v3238_v9 = vld [vmem:[%s4319_s1 + $0x7c0] ss:$8 sps:$4 sm:$0xff]  }
  0xc0   : > { %2126 = vmatpush1.bf16.msra.mxu1 %v3147_v10  ;;  %v3243_v10 = vld [vmem:[%s4319_s1 + $0x3d4] ss:$8 sps:$4 sm:$0xff]  }
  0xc1   : > { %2290 = vmatpush1.bf16.msra.mxu0 %v3150_v11  ;;  %2127 = vmatprep.subr.bf16.mxu1 %v3155_v12  ;;  %v3246_v11 = vld [vmem:[%s4319_s1 + $0x7d4] ss:$8 sps:$4 sm:$0xff]   ;;  %v3241_v12 = vld [vmem:[%s4319_s1 + $0x3d0] ss:$8 sps:$4 sm:$0xff]  }
  0xc2   : > { %2291 = vmatprep.subr.bf16.mxu0 %v3158_v13  ;;  %v3244_v13 = vld [vmem:[%s4319_s1 + $0x7d0] ss:$8 sps:$4 sm:$0xff]  }
  0xc4   : > { %2128 = vmatpush1.bf16.msra.mxu1 %v3153_v14  ;;  %v3249_v14 = vld [vmem:[%s4319_s1 + $0x3e4] ss:$8 sps:$4 sm:$0xff]  }
  0xc5   : > { %2292 = vmatpush1.bf16.msra.mxu0 %v3156_v15  ;;  %2138 = vmatprep.subr.bf16.mxu1 %v3163_v16  ;;  %v3252_v15 = vld [vmem:[%s4319_s1 + $0x7e4] ss:$8 sps:$4 sm:$0xff]   ;;  %v3247_v16 = vld [vmem:[%s4319_s1 + $0x3e0] ss:$8 sps:$4 sm:$0xff]  }
  0xc6   : > { %2302 = vmatprep.subr.bf16.mxu0 %v3168_v17  ;;  %v3250_v17 = vld [vmem:[%s4319_s1 + $0x7e0] ss:$8 sps:$4 sm:$0xff]  }
  0xc7   : > { %2130 = vmatmul.mubr.bf16.vlgmr.msra.gmra.mrb[0].mxu1 %v2500_v22  ;;  %v3253_v22 = vld [vmem:[%s4319_s1 + $0x3f0] ss:$8 sps:$4 sm:$0xff]  }
  0xc8   : > { %2294 = vmatmul.mubr.bf16.vlgmr.msra.gmra.mrb[0].mxu0 %v2508_v23  ;;  %2139 = vmatpush1.bf16.msra.mxu1 %v3161_v19  ;;  %v3255_v19 = vld [vmem:[%s4319_s1 + $0x3f4] ss:$8 sps:$4 sm:$0xff]   ;;  %v3256_v23 = vld [vmem:[%s4319_s1 + $0x7f0] ss:$8 sps:$4 sm:$0xff]  }
  0xc9   : > { %2303 = vmatpush1.bf16.msra.mxu0 %v3166_v21  ;;  %2140 = vmatprep.subr.bf16.mxu1 %v3171_v26  ;;  %v3258_v21 = vld [vmem:[%s4319_s1 + $0x7f4] ss:$8 sps:$4 sm:$0xff]   ;;  %v3265_v26 = vld [vmem:[%s4319_s1 + $0x804] ss:$8 sps:$4 sm:$0xff]  }
  0xca   : > { %2304 = vmatprep.subr.bf16.mxu0 %v3174_v27  ;;  %2170 = vmatprep.mubr.bf16.mxu1 %v2503_v18  ;;  %v4199_v27 = vld [vmem:[%s3517_s11 + $0x40] sm:$0xff]  ;;  %v2502_v18 = vcombine.low %v4006_v24, %v4006_v24  ;;  %v3266_v24 = vld [vmem:[%s4319_s1 + $0x810] ss:$8 sps:$4 sm:$0xff]  }
  0xcb   : > { %2334 = vmatprep.mubr.bf16.mxu0 %v2511_v20  ;;  %v2510_v20 = vcombine.low %v4009_v25, %v4009_v25  ;;  %v3271_v25 = vld [vmem:[%s4319_s1 + $0x824] ss:$8 sps:$4 sm:$0xff]  }
  0xcc   : > { %2141 = vmatpush1.bf16.msra.mxu1 %v3169_v28  ;;  %v3263_v28 = vld [vmem:[%s4319_s1 + $0x800] ss:$8 sps:$4 sm:$0xff]  }
  0xcd   : > { %2305 = vmatpush1.bf16.msra.mxu0 %v3172_v29  ;;  %2142 = vmatprep.subr.bf16.mxu1 %v3177_v30  ;;  %v2513_v29 = vcombine.high %v4199_v27, %v4199_v27  ;;  %v3268_v30 = vld [vmem:[%s4319_s1 + $0x814] ss:$8 sps:$4 sm:$0xff]  }
  0xce   : > { %2306 = vmatprep.subr.bf16.mxu0 %v3180_v31  ;;  %v3269_v31 = vld [vmem:[%s4319_s1 + $0x820] ss:$8 sps:$4 sm:$0xff]  }
  0xd0   : > { %2143 = vmatpush1.bf16.msra.mxu1 %v3175_v32  ;;  %v3274_v32 = vld [vmem:[%s4319_s1 + $0x834] ss:$8 sps:$4 sm:$0xff]  }
  0xd1   : > { %2307 = vmatpush1.bf16.msra.mxu0 %v3178_v33  ;;  %2144 = vmatprep.subr.bf16.mxu1 %v3183_v34  ;;  %v3272_v33 = vld [vmem:[%s4319_s1 + $0x830] ss:$8 sps:$4 sm:$0xff]   ;;  %v3277_v34 = vld [vmem:[%s4319_s1 + $0x844] ss:$8 sps:$4 sm:$0xff]  }
  0xd2   : > { %2308 = vmatprep.subr.bf16.mxu0 %v3186_v35  ;;  %v3275_v35 = vld [vmem:[%s4319_s1 + $0x840] ss:$8 sps:$4 sm:$0xff]  }
  0xd4   : > { %2145 = vmatpush1.bf16.msra.mxu1 %v3181_v36  ;;  %v3280_v36 = vld [vmem:[%s4319_s1 + $0x854] ss:$8 sps:$4 sm:$0xff]  }
  0xd5   : > { %2309 = vmatpush1.bf16.msra.mxu0 %v3184_v37  ;;  %2146 = vmatprep.subr.bf16.mxu1 %v3189_v38  ;;  %v3278_v37 = vld [vmem:[%s4319_s1 + $0x850] ss:$8 sps:$4 sm:$0xff]   ;;  %v3283_v38 = vld [vmem:[%s4319_s1 + $0x864] ss:$8 sps:$4 sm:$0xff]  }
  0xd6   : > { %2310 = vmatprep.subr.bf16.mxu0 %v3192_v39  ;;  %v3281_v39 = vld [vmem:[%s4319_s1 + $0x860] ss:$8 sps:$4 sm:$0xff]  }
  0xd8   : > { %2147 = vmatpush1.bf16.msra.mxu1 %v3187_v40  ;;  %v3286_v40 = vld [vmem:[%s4319_s1 + $0x874] ss:$8 sps:$4 sm:$0xff]  }
  0xd9   : > { %2311 = vmatpush1.bf16.msra.mxu0 %v3190_v41  ;;  %2148 = vmatprep.subr.bf16.mxu1 %v3195_v42  ;;  %v3284_v41 = vld [vmem:[%s4319_s1 + $0x870] ss:$8 sps:$4 sm:$0xff]   ;;  %v3289_v42 = vld [vmem:[%s4319_s1 + $0x884] ss:$8 sps:$4 sm:$0xff]  }
  0xda   : > { %2312 = vmatprep.subr.bf16.mxu0 %v3198_v43  ;;  %v3287_v43 = vld [vmem:[%s4319_s1 + $0x880] ss:$8 sps:$4 sm:$0xff]  }
  0xdc   : > { %2149 = vmatpush1.bf16.msra.mxu1 %v3193_v44  ;;  %v3292_v44 = vld [vmem:[%s4319_s1 + $0x894] ss:$8 sps:$4 sm:$0xff]  }
  0xdd   : > { %2313 = vmatpush1.bf16.msra.mxu0 %v3196_v45  ;;  %2150 = vmatprep.subr.bf16.mxu1 %v3201_v46  ;;  %v3290_v45 = vld [vmem:[%s4319_s1 + $0x890] ss:$8 sps:$4 sm:$0xff]   ;;  %v3295_v46 = vld [vmem:[%s4319_s1 + $0x8a4] ss:$8 sps:$4 sm:$0xff]  }
  0xde   : > { %2314 = vmatprep.subr.bf16.mxu0 %v3204_v47  ;;  %v3293_v47 = vld [vmem:[%s4319_s1 + $0x8a0] ss:$8 sps:$4 sm:$0xff]  }
  0xe0   : > { %2151 = vmatpush1.bf16.msra.mxu1 %v3199_v48  ;;  %v3298_v48 = vld [vmem:[%s4319_s1 + $0x8b4] ss:$8 sps:$4 sm:$0xff]  }
  0xe1   : > { %2315 = vmatpush1.bf16.msra.mxu0 %v3202_v49  ;;  %2152 = vmatprep.subr.bf16.mxu1 %v3207_v50  ;;  %v3296_v49 = vld [vmem:[%s4319_s1 + $0x8b0] ss:$8 sps:$4 sm:$0xff]   ;;  %v3301_v50 = vld [vmem:[%s4319_s1 + $0x8c4] ss:$8 sps:$4 sm:$0xff]  }
  0xe2   : > { %2316 = vmatprep.subr.bf16.mxu0 %v3210_v51  ;;  %v3299_v51 = vld [vmem:[%s4319_s1 + $0x8c0] ss:$8 sps:$4 sm:$0xff]  }
  0xe4   : > { %2153 = vmatpush1.bf16.msra.mxu1 %v3205_v52  ;;  %v3304_v52 = vld [vmem:[%s4319_s1 + $0x8d4] ss:$8 sps:$4 sm:$0xff]  }
  0xe5   : > { %2317 = vmatpush1.bf16.msra.mxu0 %v3208_v53  ;;  %2154 = vmatprep.subr.bf16.mxu1 %v3213_v54  ;;  %v3302_v53 = vld [vmem:[%s4319_s1 + $0x8d0] ss:$8 sps:$4 sm:$0xff]   ;;  %v3307_v54 = vld [vmem:[%s4319_s1 + $0x8e4] ss:$8 sps:$4 sm:$0xff]  }
  0xe6   : > { %2318 = vmatprep.subr.bf16.mxu0 %v3216_v55  ;;  %v3305_v55 = vld [vmem:[%s4319_s1 + $0x8e0] ss:$8 sps:$4 sm:$0xff]  }
  0xe8   : > { %2155 = vmatpush1.bf16.msra.mxu1 %v3211_v56  ;;  %v3310_v56 = vld [vmem:[%s4319_s1 + $0x8f4] ss:$8 sps:$4 sm:$0xff]  }
  0xe9   : > { %2319 = vmatpush1.bf16.msra.mxu0 %v3214_v57  ;;  %2156 = vmatprep.subr.bf16.mxu1 %v3219_v58  ;;  %v3308_v57 = vld [vmem:[%s4319_s1 + $0x8f0] ss:$8 sps:$4 sm:$0xff]   ;;  %v2512_v58 = vcombine.low %v4199_v27, %v4199_v27 }
  0xea   : > { %2320 = vmatprep.subr.bf16.mxu0 %v3222_v59 }
  0xec   : > { %2157 = vmatpush1.bf16.msra.mxu1 %v3217_v60 }
  0xed   : > { %2321 = vmatpush1.bf16.msra.mxu0 %v3220_v61  ;;  %2158 = vmatprep.subr.bf16.mxu1 %v3225_v62 }
  0xee   : > { %2322 = vmatprep.subr.bf16.mxu0 %v3228_v63  ;;  %v502_v63 = vlaneseq }
  0xf0   : > { %2159 = vmatpush1.bf16.msra.mxu1 %v3223_v0  ;;  %v503_v0 = vshrl.u32 %v502_v63, 7 }
  0xf1   : > { %2323 = vmatpush1.bf16.msra.mxu0 %v3226_v1  ;;  %2160 = vmatprep.subr.bf16.mxu1 %v3231_v2  ;;  %v500_v2 = vld [vmem:[%s4320_s2] sm:$0x3] }
  0xf2   : > { %2324 = vmatprep.subr.bf16.mxu0 %v3234_v3  ;;  %v504_v1 = vsub.s32 0, %v503_v0  ;;  %v508_v3 = vsub.s32 1, %v503_v0  ;;  %vm2395_vm1 = vcmp.lt.s32.totalorder %v503_v0, 1 }
  0xf4   : > { %2161 = vmatpush1.bf16.msra.mxu1 %v3229_v4  ;;  %v505_v4 = vrot.slane %v500_v2, %v504_v1 }
  0xf5   : > { %2325 = vmatpush1.bf16.msra.mxu0 %v3232_v5  ;;  %2162 = vmatprep.subr.bf16.mxu1 %v3237_v6  ;;  %v509_v5 = vrot.slane %v500_v2, %v508_v3 }
  0xf6   : > { %2326 = vmatprep.subr.bf16.mxu0 %v3240_v7 }
  0xf8   : > { %2163 = vmatpush1.bf16.msra.mxu1 %v3235_v8 }
  0xf9   : > { %2327 = vmatpush1.bf16.msra.mxu0 %v3238_v9  ;;  %2164 = vmatprep.subr.bf16.mxu1 %v3243_v10 }
  0xfa   : > { %2328 = vmatprep.subr.bf16.mxu0 %v3246_v11 }
  0xfc   : > { %2165 = vmatpush1.bf16.msra.mxu1 %v3241_v12 }
  0xfd   : > { %2329 = vmatpush1.bf16.msra.mxu0 %v3244_v13  ;;  %2166 = vmatprep.subr.bf16.mxu1 %v3249_v14 }
  0xfe   : > { %2330 = vmatprep.subr.bf16.mxu0 %v3252_v15 }
 0x100   : > { %2167 = vmatpush1.bf16.msra.mxu1 %v3247_v16 }
 0x101   : > { %2331 = vmatpush1.bf16.msra.mxu0 %v3250_v17  ;;  %2168 = vmatprep.subr.bf16.mxu1 %v3255_v19 }
 0x102   : > { %2332 = vmatprep.subr.bf16.mxu0 %v3258_v21 }
 0x104   : > { %2169 = vmatpush1.bf16.msra.mxu1 %v3253_v22 }
 0x105   : > { %2333 = vmatpush1.bf16.msra.mxu0 %v3256_v23 }
 0x106   : > { %2343 = vmatprep.subr.bf16.mxu0 %v3265_v26 }
 0x107   : > { %2171 = vmatmul.mubr.bf16.vlgmr.msra.gmra.mrb[0].mxu1 %v2502_v18 }
 0x108   : > { %2335 = vmatmul.mubr.bf16.vlgmr.msra.gmra.mrb[0].mxu0 %v2510_v20 }
 0x109   : > { %2344 = vmatpush1.bf16.msra.mxu0 %v3263_v28  ;;  %2375 = vmatprep.mubr.bf16.mxu0 %v2513_v29 }
 0x10a   : > { %2345 = vmatprep.subr.bf16.mxu0 %v3268_v30 }
 0x10d   : > { %2346 = vmatpush1.bf16.msra.mxu0 %v3266_v24 }
 0x10e   : > { %2347 = vmatprep.subr.bf16.mxu0 %v3271_v25 }
 0x111   : > { %2348 = vmatpush1.bf16.msra.mxu0 %v3269_v31 }
 0x112   : > { %2349 = vmatprep.subr.bf16.mxu0 %v3274_v32 }
 0x115   : > { %2350 = vmatpush1.bf16.msra.mxu0 %v3272_v33 }
 0x116   : > { %2351 = vmatprep.subr.bf16.mxu0 %v3277_v34 }
 0x119   : > { %2352 = vmatpush1.bf16.msra.mxu0 %v3275_v35 }
 0x11a   : > { %2353 = vmatprep.subr.bf16.mxu0 %v3280_v36 }
 0x11d   : > { %2354 = vmatpush1.bf16.msra.mxu0 %v3278_v37 }
 0x11e   : > { %2355 = vmatprep.subr.bf16.mxu0 %v3283_v38 }
 0x121   : > { %2356 = vmatpush1.bf16.msra.mxu0 %v3281_v39 }
 0x122   : > { %2357 = vmatprep.subr.bf16.mxu0 %v3286_v40 }
 0x125   : > { %2358 = vmatpush1.bf16.msra.mxu0 %v3284_v41 }
 0x126   : > { %2359 = vmatprep.subr.bf16.mxu0 %v3289_v42 }
 0x129   : > { %2360 = vmatpush1.bf16.msra.mxu0 %v3287_v43 }
 0x12a   : > { %2361 = vmatprep.subr.bf16.mxu0 %v3292_v44 }
 0x12d   : > { %2362 = vmatpush1.bf16.msra.mxu0 %v3290_v45 }
 0x12e   : > { %2363 = vmatprep.subr.bf16.mxu0 %v3295_v46 }
 0x131   : > { %2364 = vmatpush1.bf16.msra.mxu0 %v3293_v47 }
 0x132   : > { %2365 = vmatprep.subr.bf16.mxu0 %v3298_v48 }
 0x135   : > { %2366 = vmatpush1.bf16.msra.mxu0 %v3296_v49 }
 0x136   : > { %2367 = vmatprep.subr.bf16.mxu0 %v3301_v50 }
 0x139   : > { %2368 = vmatpush1.bf16.msra.mxu0 %v3299_v51 }
 0x13a   : > { %2369 = vmatprep.subr.bf16.mxu0 %v3304_v52 }
 0x13d   : > { %2370 = vmatpush1.bf16.msra.mxu0 %v3302_v53 }
 0x13e   : > { %2371 = vmatprep.subr.bf16.mxu0 %v3307_v54 }
 0x141   : > { %2372 = vmatpush1.bf16.msra.mxu0 %v3305_v55 }
 0x142   : > { %2373 = vmatprep.subr.bf16.mxu0 %v3310_v56 }
 0x145   : > { %2374 = vmatpush1.bf16.msra.mxu0 %v3308_v57 }
 0x148   : > { %2376 = vmatmul.mubr.bf16.vlgmr.msra.gmra.mrb[0].mxu0 %v2512_v58 }
 0x1da   : > { %v2172_v59 = vpop.f32.mrb[0].mxu1 }
 0x1db   : > { %v2174_v60 = vpop.f32.mrb[1].mxu1  ;;  %v2805_v6 = vadd.f32 %v2172_v59, %v505_v4 }
 0x1dc   : > { %v2176_v61 = vpop.f32.mrb[2].mxu1  ;;  %v2807_v7 = vadd.f32 %v2174_v60, %v509_v5 }
 0x1dd   : > { %v2177_v62 = vpop.f32.mrb[3].mxu1 }
 0x21b   : > { %v2377_v8 = vpop.f32.mrb[0].mxu0 }
 0x21c   : > { %v2806_v9 = vadd.f32 %v2805_v6, %v2377_v8  ;;  %v2379_v10 = vpop.f32.mrb[1].mxu0 }
 0x21d   : > { %v2808_v11 = vadd.f32 %v2807_v7, %v2379_v10  ;;  %v2381_v12 = vpop.f32.mrb[2].mxu0 }
 0x21e   : > { %vm2384_vm0 = vcmp.ge.f32.partialorder %v2806_v9, 0.0  ;;  %v2386_v13 = vmul.f32 0.1, %v2806_v9  ;;  %v2382_v14 = vpop.f32.mrb[3].mxu0 }
 0x21f   : > { %vm2385_vm2 = vcmp.ge.f32.partialorder %v2808_v11, 0.0  ;;  %v2387_v15 = vmul.f32 0.1, %v2808_v11 }
 0x220   : > { %v2388_v16 = vsel %vm2384_vm0, %v2806_v9, %v2386_v13 }
 0x221   : > { %v2396_v17 = vsel %vm2395_vm1, %v2388_v16, 0.0  ;;  %v2389_v19 = vsel %vm2385_vm2, %v2808_v11, %v2387_v15 }
 0x222   : > { %v2398_v21 = vrot.slane %v2396_v17, 4  ;;  %v2397_v22 = vsel %vm2395_vm1, %v2389_v19, 0.0 }
 0x223   : > { %v2404_v23 = vrot.slane %v2397_v22, 4 }
 0x224   : > { %v2399_v26 = vadd.f32 %v2398_v21, %v2396_v17 }
 0x225   : > { %v2405_v27 = vadd.f32 %v2404_v23, %v2397_v22 }
 0x226   : > { %v2400_v18 = vrot.slane %v2399_v26, 2 }
 0x227   : > { %v2406_v20 = vrot.slane %v2405_v27, 2 }
 0x228   : > { %v2401_v28 = vadd.f32 %v2400_v18, %v2399_v26 }
 0x229   : > { %v2407_v29 = vadd.f32 %v2406_v20, %v2405_v27 }
 0x22a   : > { %v2402_v30 = vrot.slane %v2401_v28, 1 }
 0x22b   : > { %v2408_v24 = vrot.slane %v2407_v29, 1 }
 0x22c   : > { %v2403_v25 = vadd.f32 %v2402_v30, %v2401_v28 }
 0x22d   : > { %v2409_v31 = vadd.f32 %v2408_v24, %v2407_v29 }
 0x22e   : > { %2414 = vst [vmem:[%s196_s22] sm:$0xff] %v2403_v25 }
 0x22f   : > { %2415 = vst [vmem:[%s196_s22 + $0x8] sm:$0xff] %v2409_v31 }
 0x230 PF: > { %s13_s14 = sadd.s32 1, %s3335_s14   ;;  %s4322_s12 = smov %s3331_s13 }
 0x231   : > { %p10_p5 = scmp.ge.s32.totalorder %s13_s14, 4   ;;  %s4323_s13 = smov %s4325_s15 }
 0x233   :  { %12 = sbr.rel (!%p10_p5) target bundleno = 2 (0x2), region = 66 }

</bundles_post_ra>
